<compile_context>
chip_gen: v7x
topology: tpu7x:2x2x1
jax: 0.10.0
libtpu: 0.0.40
codegen_flags: <defaults>
</compile_context>

<pallas_src>
import numpy as np
import jax
import jax.numpy as jnp
from jax import lax
from jax.experimental import pallas as pl
from jax.experimental.pallas import tpu as pltpu


LANE = 128
SUB = 8


def _round_up(n, m):
    return ((n + m - 1) // m) * m


def _next_pow2(n):
    p = 1
    while p < n:
        p *= 2
    return p


# ---------------------------------------------------------------------------
# Fused forward kernel.
# ---------------------------------------------------------------------------
def _make_seq2seq_kernel(S, B, Bp, O_real, inv_n):
    """S, B, Bp, O_real, inv_n = 1/(B*S*O_real) are compile-time constants."""

    def kernel(x_ref, trg_ref,
               enc_wih_ref, enc_whh_ref, enc_b_ref,
               dec_whh_ref, dec_wc_ref, dec_b_ref, dec_bc_ref,
               fc_w_ref, fc_b_ref,
               loss_ref,
               xw_ref, h0_ref, h1_ref):
        f32, bf16 = jnp.float32, jnp.bfloat16
        SBp, Hp4 = xw_ref.shape
        Hp = Hp4 // 4
        Op = trg_ref.shape[1]

        def gate_update(gates, c):
            # PyTorch gate order: i, f, g, o.  Gate slices are lane-aligned
            # because Hp is a multiple of 128.
            i_g = jax.nn.sigmoid(gates[:, 0 * Hp:1 * Hp])
            f_g = jax.nn.sigmoid(gates[:, 1 * Hp:2 * Hp])
            g_g = jnp.tanh(gates[:, 2 * Hp:3 * Hp])
            o_g = jax.nn.sigmoid(gates[:, 3 * Hp:4 * Hp])
            c_new = f_g * c + i_g * g_g
            h_new = o_g * jnp.tanh(c_new)
            return h_new, c_new

        # --------------------------- Encoder ---------------------------
        # Hoist all input projections out of the recurrence: one big matmul.
        xw_ref[...] = jnp.dot(x_ref[...].astype(bf16), enc_wih_ref[...],
                              preferred_element_type=f32)

        def enc_step(t, carry):
            h, c = carry
            row = pl.multiple_of(t * Bp, SUB)
            gates = (xw_ref[pl.ds(row, Bp), :]
                     + jnp.dot(h.astype(bf16), enc_whh_ref[...],
                               preferred_element_type=f32)
                     + enc_b_ref[...])
            return gate_update(gates, c)

        zeros_bh = jnp.zeros((Bp, Hp), f32)
        h_enc, c_enc = lax.fori_loop(0, S, enc_step, (zeros_bh, zeros_bh),
                                     unroll=True)

        # -------- Two decoders (predict / reconstruct), interleaved --------
        # Step 0 peeled: the feedback input is zero, so it uses the raw
        # recurrent weight/bias.  Steps >= 1 use the FC-folded weight/bias.
        h_enc_b = h_enc.astype(bf16)

        g0 = jnp.dot(h_enc_b, dec_whh_ref[0],
                     preferred_element_type=f32) + dec_b_ref[0]
        h0, c0 = gate_update(g0, c_enc)
        h0_ref[pl.ds(0, Bp), :] = h0                       # predict: time-major

        g1 = jnp.dot(h_enc_b, dec_whh_ref[1],
                     preferred_element_type=f32) + dec_b_ref[1]
        h1, c1 = gate_update(g1, c_enc)
        h1_ref[pl.ds((S - 1) * Bp, Bp), :] = h1            # reconstruct: reversed

        def dec_step(t, carry):
            h0, c0, h1, c1 = carry
            g0 = jnp.dot(h0.astype(bf16), dec_wc_ref[0],
                         preferred_element_type=f32) + dec_bc_ref[0]
            h0, c0 = gate_update(g0, c0)
            h0_ref[pl.ds(pl.multiple_of(t * Bp, SUB), Bp), :] = h0

            g1 = jnp.dot(h1.astype(bf16), dec_wc_ref[1],
                         preferred_element_type=f32) + dec_bc_ref[1]
            h1, c1 = gate_update(g1, c1)
            h1_ref[pl.ds(pl.multiple_of((S - 1 - t) * Bp, SUB), Bp), :] = h1
            return h0, c0, h1, c1

        _ = lax.fori_loop(1, S, dec_step, (h0, c0, h1, c1), unroll=True)

        # ------------- Batched FC + MSE, off the serial path -------------
        # Validity mask (safety net): only real batch rows (b < B inside each
        # Bp-row block; Bp is a power of two so this is a bitwise AND) and real
        # output lanes (< O_real) contribute to the loss.
        row_in_blk = lax.broadcasted_iota(jnp.int32, (SBp, Op), 0) & (Bp - 1)
        lane = lax.broadcasted_iota(jnp.int32, (SBp, Op), 1)
        valid = (row_in_blk < B) & (lane < O_real)

        p0 = jnp.dot(h0_ref[...].astype(bf16), fc_w_ref[0],
                     preferred_element_type=f32) + fc_b_ref[0]
        d0 = jnp.where(valid, p0 - trg_ref[...], 0.0)

        p1 = jnp.dot(h1_ref[...].astype(bf16), fc_w_ref[1],
                     preferred_element_type=f32) + fc_b_ref[1]
        d1 = jnp.where(valid, p1 - x_ref[...], 0.0)

        loss_ref[0, 0] = jnp.sum(d1 * d1) * inv_n   # reconstruct_loss
        loss_ref[0, 1] = jnp.sum(d0 * d0) * inv_n   # predict_loss

    return kernel


# ---------------------------------------------------------------------------
# Weight packing: PyTorch layout -> padded, FC-folded kernel layout.
# ---------------------------------------------------------------------------
def _pad_gates_T(w, rows_real, Rp, H, Hp):
    """w: (4H, rows_real) PyTorch -> (Rp, 4Hp); gate g at cols [g*Hp, g*Hp+H)."""
    out = jnp.zeros((Rp, 4 * Hp), jnp.float32)
    for g in range(4):  # PyTorch gate order: i, f, g, o
        out = out.at[:rows_real, g * Hp:g * Hp + H].set(
            w[g * H:(g + 1) * H, :].T)
    return out


def _pad_gate_bias(b_ih, b_hh, H, Hp):
    out = jnp.zeros((1, 4 * Hp), jnp.float32)
    for g in range(4):
        out = out.at[0, g * Hp:g * Hp + H].set(
            b_ih[g * H:(g + 1) * H] + b_hh[g * H:(g + 1) * H])
    return out


# ---------------------------------------------------------------------------
# Full Seq2Seq forward: returns (reconstruct_loss, predict_loss).
# ---------------------------------------------------------------------------
@jax.jit
def seq2seq_forward(params, src, trg):
    B, S, I = src.shape
    O = trg.shape[-1]
    H = params['enc']['w_hh'].shape[1]
    assert I == O, "autoregressive feedback requires input_size == output_size"
    Ip, Hp, Op = _round_up(I, LANE), _round_up(H, LANE), _round_up(O, LANE)
    Bp = max(SUB, _next_pow2(B))   # power of two -> in-kernel row mask is an AND
    f32, bf16 = jnp.float32, jnp.bfloat16

    # ----- encoder weights -----
    enc = params['enc']
    enc_wih = _pad_gates_T(enc['w_ih'], I, Ip, H, Hp)         # (Ip, 4Hp)
    enc_whh = _pad_gates_T(enc['w_hh'], H, Hp, H, Hp)         # (Hp, 4Hp)
    enc_b = _pad_gate_bias(enc['b_ih'], enc['b_hh'], H, Hp)   # (1, 4Hp)

    # ----- decoder weights: fold the FC into the recurrence (steps >= 1) -----
    def pack_decoder(dec):
        Wx = _pad_gates_T(dec['lstm']['w_ih'], I, Ip, H, Hp)     # (Ip, 4Hp)
        Whh = _pad_gates_T(dec['lstm']['w_hh'], H, Hp, H, Hp)    # (Hp, 4Hp)
        b = _pad_gate_bias(dec['lstm']['b_ih'], dec['lstm']['b_hh'], H, Hp)
        fw = jnp.zeros((Hp, Op), f32).at[:H, :O].set(dec['fc']['w'].T)
        fb = jnp.zeros((1, Op), f32).at[0, :O].set(dec['fc']['b'])
        # x_t = h_t @ fw + fb  =>  x_t @ Wx + h_t @ Whh
        #                        = h_t @ (fw @ Wx + Whh) + fb @ Wx
        Wc = jnp.dot(fw, Wx) + Whh                               # (Hp, 4Hp)
        bc = b + jnp.dot(fb, Wx)                                 # (1, 4Hp)
        return Whh, b, Wc, bc, fw, fb

    dp = pack_decoder(params['dec_pred'])   # decoder 0: predict
    dr = pack_decoder(params['dec_rec'])    # decoder 1: reconstruct
    dec_whh = jnp.stack([dp[0], dr[0]]).astype(bf16)   # (2, Hp, 4Hp)
    dec_b = jnp.stack([dp[1], dr[1]])                  # (2, 1, 4Hp)  f32
    dec_wc = jnp.stack([dp[2], dr[2]]).astype(bf16)    # (2, Hp, 4Hp)
    dec_bc = jnp.stack([dp[3], dr[3]])                 # (2, 1, 4Hp)  f32
    fc_w = jnp.stack([dp[4], dr[4]]).astype(bf16)      # (2, Hp, Op)
    fc_b = jnp.stack([dp[5], dr[5]])                   # (2, 1, Op)   f32
    enc_wih = enc_wih.astype(bf16)
    enc_whh = enc_whh.astype(bf16)

    # ----- flatten (S, B) onto the sublane axis; batch padded to Bp rows -----
    def flatten(x, Fp):
        F = x.shape[-1]
        buf = jnp.zeros((S, Bp, Fp), f32)
        buf = buf.at[:, :B, :F].set(x.transpose(1, 0, 2))
        return buf.reshape(S * Bp, Fp)

    src_flat = flatten(src, Ip)   # (S*Bp, Ip)
    trg_flat = flatten(trg, Op)   # (S*Bp, Op)

    # ----- explicit VMEM budget (inputs + scratch), with headroom -----
    w_bf16_bytes = 2 * (Ip * 4 * Hp + Hp * 4 * Hp
                        + 2 * Hp * 4 * Hp * 2 + 2 * Hp * Op)
    b_f32_bytes = 4 * (5 * 4 * Hp + 2 * Op)
    io_bytes = 4 * 2 * (S * Bp) * Ip
    scratch_bytes = 4 * (S * Bp) * (4 * Hp + 2 * Hp)
    vmem_needed = io_bytes + w_bf16_bytes + b_f32_bytes + scratch_bytes
    vmem_limit = int(min(max(2 * vmem_needed + (2 << 20), 8 << 20), 64 << 20))

    kernel = _make_seq2seq_kernel(S, B, Bp, O, 1.0 / float(B * S * O))
    losses = pl.pallas_call(
        kernel,
        out_shape=jax.ShapeDtypeStruct((1, 2), jnp.float32),
        in_specs=[pl.BlockSpec(memory_space=pltpu.MemorySpace.VMEM)
                  for _ in range(11)],
        out_specs=pl.BlockSpec(memory_space=pltpu.MemorySpace.SMEM),
        scratch_shapes=[pltpu.VMEM((S * Bp, 4 * Hp), jnp.float32),  # enc x@Wih
                        pltpu.VMEM((S * Bp, Hp), jnp.float32),      # h (predict)
                        pltpu.VMEM((S * Bp, Hp), jnp.float32)],     # h (reconstruct)
        compiler_params=pltpu.CompilerParams(vmem_limit_bytes=vmem_limit),
    )(src_flat, trg_flat, enc_wih, enc_whh, enc_b,
      dec_whh, dec_wc, dec_b, dec_bc, fc_w, fc_b)
    return losses[0, 0], losses[0, 1]


# ---------------------------------------------------------------------------
# Pure-JAX f32 reference (unpadded, PyTorch-layout weights).
# ---------------------------------------------------------------------------
def _lstm_cell_ref(x_t, h, c, p):
    gates = x_t @ p['w_ih'].T + h @ p['w_hh'].T + p['b_ih'] + p['b_hh']
    i_g, f_g, g_g, o_g = jnp.split(gates, 4, axis=-1)
    c = jax.nn.sigmoid(f_g) * c + jax.nn.sigmoid(i_g) * jnp.tanh(g_g)
    h = jax.nn.sigmoid(o_g) * jnp.tanh(c)
    return h, c


def seq2seq_reference(params, src, trg):
    B, S, I = src.shape
    H = params['enc']['w_hh'].shape[1]

    h = jnp.zeros((B, H), jnp.float32)
    c = jnp.zeros((B, H), jnp.float32)
    for t in range(S):
        h, c = _lstm_cell_ref(src[:, t, :], h, c, params['enc'])
    h_enc, c_enc = h, c

    def run_dec(dec):
        h, c = h_enc, c_enc
        x = jnp.zeros((B, I), jnp.float32)
        outs = []
        for t in range(S):
            h, c = _lstm_cell_ref(x, h, c, dec['lstm'])
            x = h @ dec['fc']['w'].T + dec['fc']['b']
            outs.append(x[:, None, :])
        return jnp.concatenate(outs, axis=1)

    pred_out = run_dec(params['dec_pred'])
    rec_out = run_dec(params['dec_rec'])
    predict_loss = jnp.mean((pred_out - trg) ** 2)
    reconstruct_loss = jnp.mean((rec_out - src[:, ::-1, :]) ** 2)
    return reconstruct_loss, predict_loss


# ---------------------------------------------------------------------------
# Deterministic parameter init (PyTorch-style uniform(-1/sqrt(H), 1/sqrt(H))).
# ---------------------------------------------------------------------------
def init_params(key, input_size, hidden_size, output_size):
    k = 1.0 / np.sqrt(hidden_size)

    def u(key, shape):
        return jax.random.uniform(key, shape, jnp.float32, -k, k)

    def lstm(key):
        k1, k2, k3, k4 = jax.random.split(key, 4)
        return {'w_ih': u(k1, (4 * hidden_size, input_size)),
                'w_hh': u(k2, (4 * hidden_size, hidden_size)),
                'b_ih': u(k3, (4 * hidden_size,)),
                'b_hh': u(k4, (4 * hidden_size,))}

    def fc(key):
        k1, k2 = jax.random.split(key)
        return {'w': u(k1, (output_size, hidden_size)),
                'b': u(k2, (output_size,))}

    ke, kp1, kp2, kr1, kr2 = jax.random.split(key, 5)
    return {'enc': lstm(ke),
            'dec_pred': {'lstm': lstm(kp1), 'fc': fc(kp2)},
            'dec_rec': {'lstm': lstm(kr1), 'fc': fc(kr2)}}


if __name__ == "__main__":
    # Small shapes consistent with the module (input_size == output_size).
    B, S, I, H = 2, 8, 16, 32
    O = I

    key = jax.random.PRNGKey(0)
    kp, ks, kt = jax.random.split(key, 3)
    params = init_params(kp, I, H, O)
    src = jax.random.normal(ks, (B, S, I), jnp.float32)
    trg = jax.random.normal(kt, (B, S, I), jnp.float32)

    rec_loss, pred_loss = seq2seq_forward(params, src, trg)
    jax.block_until_ready((rec_loss, pred_loss))

    # Tolerance is loosened DELIBERATELY: the kernel feeds bf16 matmul operands
    # (f32 accumulation / gate math) while the reference is pure f32.
    rec_ref, pred_ref = seq2seq_reference(params, src, trg)
    np.testing.assert_allclose(np.asarray(rec_loss), np.asarray(rec_ref),
                               rtol=3e-2, atol=3e-3)
    np.testing.assert_allclose(np.asarray(pred_loss), np.asarray(pred_ref),
                               rtol=3e-2, atol=3e-3)

    print("KERNEL_OK")
</pallas_src>

<mosaic_0001>
module attributes {stable_mosaic.version = 11 : i64} {
  func.func @kernel(%arg0: memref<64x128xf32, #tpu.memory_space<vmem>>, %arg1: memref<64x128xf32, #tpu.memory_space<vmem>>, %arg2: memref<128x512xbf16, #tpu.memory_space<vmem>>, %arg3: memref<128x512xbf16, #tpu.memory_space<vmem>>, %arg4: memref<1x512xf32, #tpu.memory_space<vmem>>, %arg5: memref<2x128x512xbf16, #tpu.memory_space<vmem>>, %arg6: memref<2x128x512xbf16, #tpu.memory_space<vmem>>, %arg7: memref<2x1x512xf32, #tpu.memory_space<vmem>>, %arg8: memref<2x1x512xf32, #tpu.memory_space<vmem>>, %arg9: memref<2x128x128xbf16, #tpu.memory_space<vmem>>, %arg10: memref<2x1x128xf32, #tpu.memory_space<vmem>>, %arg11: memref<1x2xf32, #tpu.memory_space<smem>>, %arg12: memref<64x512xf32, #tpu.memory_space<vmem>>, %arg13: memref<64x128xf32, #tpu.memory_space<vmem>>, %arg14: memref<64x128xf32, #tpu.memory_space<vmem>>) attributes {dimension_semantics = [], scalar_prefetch = 0 : i64, scratch_operands = 3 : i64, tpu.core_type = #tpu.core_type<tc>} {
    %c0 = arith.constant 0 : index
    %c0_0 = arith.constant 0 : index
    %0 = vector.load %arg0[%c0, %c0_0] : memref<64x128xf32, #tpu.memory_space<vmem>>, vector<64x128xf32>
    %1 = arith.truncf %0 : vector<64x128xf32> to vector<64x128xbf16>
    %c0_1 = arith.constant 0 : index
    %c0_2 = arith.constant 0 : index
    %2 = vector.load %arg2[%c0_1, %c0_2] : memref<128x512xbf16, #tpu.memory_space<vmem>>, vector<128x512xbf16>
    %cst = arith.constant dense<0.000000e+00> : vector<64x512xf32>
    %3 = tpu.matmul %1, %2, %cst {dimension_numbers = #tpu.dot_dimension_numbers<[1], [0], [0], [1], [0, 0, 1, 1], [], []>} : vector<64x128xbf16>, vector<128x512xbf16>, vector<64x512xf32> -> vector<64x512xf32>
    %c0_3 = arith.constant 0 : index
    %c0_4 = arith.constant 0 : index
    %4 = vector.load %arg12[%c0_3, %c0_4] : memref<64x512xf32, #tpu.memory_space<vmem>>, vector<64x512xf32>
    tpu.vector_store %arg12[%c0_3, %c0_4], %3 {strides = array<i32>} : memref<64x512xf32, #tpu.memory_space<vmem>>, vector<64x512xf32>,
    %cst_5 = arith.constant 0.000000e+00 : f32
    %5 = vector.broadcast %cst_5 : f32 to vector<8x128xf32>
    %c0_i32 = arith.constant 0 : i32
    %c8_i32 = arith.constant 8 : i32
    %6 = arith.muli %c0_i32, %c8_i32 : i32
    %7 = tpu.assume_multiple %6, 8 : i32
    %8 = arith.index_cast %7 : i32 to index
    %c0_6 = arith.constant 0 : index
    %9 = vector.load %arg12[%8, %c0_6] : memref<64x512xf32, #tpu.memory_space<vmem>>, vector<8x512xf32>
    %10 = arith.truncf %5 : vector<8x128xf32> to vector<8x128xbf16>
    %c0_7 = arith.constant 0 : index
    %c0_8 = arith.constant 0 : index
    %11 = vector.load %arg3[%c0_7, %c0_8] : memref<128x512xbf16, #tpu.memory_space<vmem>>, vector<128x512xbf16>
    %cst_9 = arith.constant dense<0.000000e+00> : vector<8x512xf32>
    %12 = tpu.matmul %10, %11, %cst_9 {dimension_numbers = #tpu.dot_dimension_numbers<[1], [0], [0], [1], [0, 0, 1, 1], [], []>} : vector<8x128xbf16>, vector<128x512xbf16>, vector<8x512xf32> -> vector<8x512xf32>
    %13 = arith.addf %9, %12 : vector<8x512xf32>
    %c0_10 = arith.constant 0 : index
    %c0_11 = arith.constant 0 : index
    %14 = vector.load %arg4[%c0_10, %c0_11] : memref<1x512xf32, #tpu.memory_space<vmem>>, vector<1x512xf32>
    %15 = vector.broadcast %14 : vector<1x512xf32> to vector<8x512xf32>
    %16 = arith.addf %13, %15 : vector<8x512xf32>
    %17 = vector.extract_strided_slice %16 {offsets = [0, 0], sizes = [8, 128], strides = [1, 1]} : vector<8x512xf32> to vector<8x128xf32>
    %18 = arith.negf %17 : vector<8x128xf32>
    %19 = math.exp %18 : vector<8x128xf32>
    %cst_12 = arith.constant 1.000000e+00 : f32
    %20 = vector.broadcast %cst_12 : f32 to vector<8x128xf32>
    %21 = arith.addf %20, %19 : vector<8x128xf32>
    %22 = arith.divf %20, %21 : vector<8x128xf32>
    %23 = vector.extract_strided_slice %16 {offsets = [0, 128], sizes = [8, 128], strides = [1, 1]} : vector<8x512xf32> to vector<8x128xf32>
    %24 = arith.negf %23 : vector<8x128xf32>
    %25 = math.exp %24 : vector<8x128xf32>
    %cst_13 = arith.constant 1.000000e+00 : f32
    %26 = vector.broadcast %cst_13 : f32 to vector<8x128xf32>
    %27 = arith.addf %26, %25 : vector<8x128xf32>
    %28 = arith.divf %26, %27 : vector<8x128xf32>
    %29 = vector.extract_strided_slice %16 {offsets = [0, 256], sizes = [8, 128], strides = [1, 1]} : vector<8x512xf32> to vector<8x128xf32>
    %30 = math.tanh %29 : vector<8x128xf32>
    %31 = vector.extract_strided_slice %16 {offsets = [0, 384], sizes = [8, 128], strides = [1, 1]} : vector<8x512xf32> to vector<8x128xf32>
    %32 = arith.negf %31 : vector<8x128xf32>
    %33 = math.exp %32 : vector<8x128xf32>
    %cst_14 = arith.constant 1.000000e+00 : f32
    %34 = vector.broadcast %cst_14 : f32 to vector<8x128xf32>
    %35 = arith.addf %34, %33 : vector<8x128xf32>
    %36 = arith.divf %34, %35 : vector<8x128xf32>
    %37 = arith.mulf %28, %5 : vector<8x128xf32>
    %38 = arith.mulf %22, %30 : vector<8x128xf32>
    %39 = arith.addf %37, %38 : vector<8x128xf32>
    %40 = math.tanh %39 : vector<8x128xf32>
    %41 = arith.mulf %36, %40 : vector<8x128xf32>
    %c1_i32 = arith.constant 1 : i32
    %c8_i32_15 = arith.constant 8 : i32
    %42 = arith.muli %c1_i32, %c8_i32_15 : i32
    %43 = tpu.assume_multiple %42, 8 : i32
    %44 = arith.index_cast %43 : i32 to index
    %c0_16 = arith.constant 0 : index
    %45 = vector.load %arg12[%44, %c0_16] : memref<64x512xf32, #tpu.memory_space<vmem>>, vector<8x512xf32>
    %46 = arith.truncf %41 : vector<8x128xf32> to vector<8x128xbf16>
    %c0_17 = arith.constant 0 : index
    %c0_18 = arith.constant 0 : index
    %47 = vector.load %arg3[%c0_17, %c0_18] : memref<128x512xbf16, #tpu.memory_space<vmem>>, vector<128x512xbf16>
    %cst_19 = arith.constant dense<0.000000e+00> : vector<8x512xf32>
    %48 = tpu.matmul %46, %47, %cst_19 {dimension_numbers = #tpu.dot_dimension_numbers<[1], [0], [0], [1], [0, 0, 1, 1], [], []>} : vector<8x128xbf16>, vector<128x512xbf16>, vector<8x512xf32> -> vector<8x512xf32>
    %49 = arith.addf %45, %48 : vector<8x512xf32>
    %c0_20 = arith.constant 0 : index
    %c0_21 = arith.constant 0 : index
    %50 = vector.load %arg4[%c0_20, %c0_21] : memref<1x512xf32, #tpu.memory_space<vmem>>, vector<1x512xf32>
    %51 = vector.broadcast %50 : vector<1x512xf32> to vector<8x512xf32>
    %52 = arith.addf %49, %51 : vector<8x512xf32>
    %53 = vector.extract_strided_slice %52 {offsets = [0, 0], sizes = [8, 128], strides = [1, 1]} : vector<8x512xf32> to vector<8x128xf32>
    %54 = arith.negf %53 : vector<8x128xf32>
    %55 = math.exp %54 : vector<8x128xf32>
    %cst_22 = arith.constant 1.000000e+00 : f32
    %56 = vector.broadcast %cst_22 : f32 to vector<8x128xf32>
    %57 = arith.addf %56, %55 : vector<8x128xf32>
    %58 = arith.divf %56, %57 : vector<8x128xf32>
    %59 = vector.extract_strided_slice %52 {offsets = [0, 128], sizes = [8, 128], strides = [1, 1]} : vector<8x512xf32> to vector<8x128xf32>
    %60 = arith.negf %59 : vector<8x128xf32>
    %61 = math.exp %60 : vector<8x128xf32>
    %cst_23 = arith.constant 1.000000e+00 : f32
    %62 = vector.broadcast %cst_23 : f32 to vector<8x128xf32>
    %63 = arith.addf %62, %61 : vector<8x128xf32>
    %64 = arith.divf %62, %63 : vector<8x128xf32>
    %65 = vector.extract_strided_slice %52 {offsets = [0, 256], sizes = [8, 128], strides = [1, 1]} : vector<8x512xf32> to vector<8x128xf32>
    %66 = math.tanh %65 : vector<8x128xf32>
    %67 = vector.extract_strided_slice %52 {offsets = [0, 384], sizes = [8, 128], strides = [1, 1]} : vector<8x512xf32> to vector<8x128xf32>
    %68 = arith.negf %67 : vector<8x128xf32>
    %69 = math.exp %68 : vector<8x128xf32>
    %cst_24 = arith.constant 1.000000e+00 : f32
    %70 = vector.broadcast %cst_24 : f32 to vector<8x128xf32>
    %71 = arith.addf %70, %69 : vector<8x128xf32>
    %72 = arith.divf %70, %71 : vector<8x128xf32>
    %73 = arith.mulf %64, %39 : vector<8x128xf32>
    %74 = arith.mulf %58, %66 : vector<8x128xf32>
    %75 = arith.addf %73, %74 : vector<8x128xf32>
    %76 = math.tanh %75 : vector<8x128xf32>
    %77 = arith.mulf %72, %76 : vector<8x128xf32>
    %c2_i32 = arith.constant 2 : i32
    %c8_i32_25 = arith.constant 8 : i32
    %78 = arith.muli %c2_i32, %c8_i32_25 : i32
    %79 = tpu.assume_multiple %78, 8 : i32
    %80 = arith.index_cast %79 : i32 to index
    %c0_26 = arith.constant 0 : index
    %81 = vector.load %arg12[%80, %c0_26] : memref<64x512xf32, #tpu.memory_space<vmem>>, vector<8x512xf32>
    %82 = arith.truncf %77 : vector<8x128xf32> to vector<8x128xbf16>
    %c0_27 = arith.constant 0 : index
    %c0_28 = arith.constant 0 : index
    %83 = vector.load %arg3[%c0_27, %c0_28] : memref<128x512xbf16, #tpu.memory_space<vmem>>, vector<128x512xbf16>
    %cst_29 = arith.constant dense<0.000000e+00> : vector<8x512xf32>
    %84 = tpu.matmul %82, %83, %cst_29 {dimension_numbers = #tpu.dot_dimension_numbers<[1], [0], [0], [1], [0, 0, 1, 1], [], []>} : vector<8x128xbf16>, vector<128x512xbf16>, vector<8x512xf32> -> vector<8x512xf32>
    %85 = arith.addf %81, %84 : vector<8x512xf32>
    %c0_30 = arith.constant 0 : index
    %c0_31 = arith.constant 0 : index
    %86 = vector.load %arg4[%c0_30, %c0_31] : memref<1x512xf32, #tpu.memory_space<vmem>>, vector<1x512xf32>
    %87 = vector.broadcast %86 : vector<1x512xf32> to vector<8x512xf32>
    %88 = arith.addf %85, %87 : vector<8x512xf32>
    %89 = vector.extract_strided_slice %88 {offsets = [0, 0], sizes = [8, 128], strides = [1, 1]} : vector<8x512xf32> to vector<8x128xf32>
    %90 = arith.negf %89 : vector<8x128xf32>
    %91 = math.exp %90 : vector<8x128xf32>
    %cst_32 = arith.constant 1.000000e+00 : f32
    %92 = vector.broadcast %cst_32 : f32 to vector<8x128xf32>
    %93 = arith.addf %92, %91 : vector<8x128xf32>
    %94 = arith.divf %92, %93 : vector<8x128xf32>
    %95 = vector.extract_strided_slice %88 {offsets = [0, 128], sizes = [8, 128], strides = [1, 1]} : vector<8x512xf32> to vector<8x128xf32>
    %96 = arith.negf %95 : vector<8x128xf32>
    %97 = math.exp %96 : vector<8x128xf32>
    %cst_33 = arith.constant 1.000000e+00 : f32
    %98 = vector.broadcast %cst_33 : f32 to vector<8x128xf32>
    %99 = arith.addf %98, %97 : vector<8x128xf32>
    %100 = arith.divf %98, %99 : vector<8x128xf32>
    %101 = vector.extract_strided_slice %88 {offsets = [0, 256], sizes = [8, 128], strides = [1, 1]} : vector<8x512xf32> to vector<8x128xf32>
    %102 = math.tanh %101 : vector<8x128xf32>
    %103 = vector.extract_strided_slice %88 {offsets = [0, 384], sizes = [8, 128], strides = [1, 1]} : vector<8x512xf32> to vector<8x128xf32>
    %104 = arith.negf %103 : vector<8x128xf32>
    %105 = math.exp %104 : vector<8x128xf32>
    %cst_34 = arith.constant 1.000000e+00 : f32
    %106 = vector.broadcast %cst_34 : f32 to vector<8x128xf32>
    %107 = arith.addf %106, %105 : vector<8x128xf32>
    %108 = arith.divf %106, %107 : vector<8x128xf32>
    %109 = arith.mulf %100, %75 : vector<8x128xf32>
    %110 = arith.mulf %94, %102 : vector<8x128xf32>
    %111 = arith.addf %109, %110 : vector<8x128xf32>
    %112 = math.tanh %111 : vector<8x128xf32>
    %113 = arith.mulf %108, %112 : vector<8x128xf32>
    %c3_i32 = arith.constant 3 : i32
    %c8_i32_35 = arith.constant 8 : i32
    %114 = arith.muli %c3_i32, %c8_i32_35 : i32
    %115 = tpu.assume_multiple %114, 8 : i32
    %116 = arith.index_cast %115 : i32 to index
    %c0_36 = arith.constant 0 : index
    %117 = vector.load %arg12[%116, %c0_36] : memref<64x512xf32, #tpu.memory_space<vmem>>, vector<8x512xf32>
    %118 = arith.truncf %113 : vector<8x128xf32> to vector<8x128xbf16>
    %c0_37 = arith.constant 0 : index
    %c0_38 = arith.constant 0 : index
    %119 = vector.load %arg3[%c0_37, %c0_38] : memref<128x512xbf16, #tpu.memory_space<vmem>>, vector<128x512xbf16>
    %cst_39 = arith.constant dense<0.000000e+00> : vector<8x512xf32>
    %120 = tpu.matmul %118, %119, %cst_39 {dimension_numbers = #tpu.dot_dimension_numbers<[1], [0], [0], [1], [0, 0, 1, 1], [], []>} : vector<8x128xbf16>, vector<128x512xbf16>, vector<8x512xf32> -> vector<8x512xf32>
    %121 = arith.addf %117, %120 : vector<8x512xf32>
    %c0_40 = arith.constant 0 : index
    %c0_41 = arith.constant 0 : index
    %122 = vector.load %arg4[%c0_40, %c0_41] : memref<1x512xf32, #tpu.memory_space<vmem>>, vector<1x512xf32>
    %123 = vector.broadcast %122 : vector<1x512xf32> to vector<8x512xf32>
    %124 = arith.addf %121, %123 : vector<8x512xf32>
    %125 = vector.extract_strided_slice %124 {offsets = [0, 0], sizes = [8, 128], strides = [1, 1]} : vector<8x512xf32> to vector<8x128xf32>
    %126 = arith.negf %125 : vector<8x128xf32>
    %127 = math.exp %126 : vector<8x128xf32>
    %cst_42 = arith.constant 1.000000e+00 : f32
    %128 = vector.broadcast %cst_42 : f32 to vector<8x128xf32>
    %129 = arith.addf %128, %127 : vector<8x128xf32>
    %130 = arith.divf %128, %129 : vector<8x128xf32>
    %131 = vector.extract_strided_slice %124 {offsets = [0, 128], sizes = [8, 128], strides = [1, 1]} : vector<8x512xf32> to vector<8x128xf32>
    %132 = arith.negf %131 : vector<8x128xf32>
    %133 = math.exp %132 : vector<8x128xf32>
    %cst_43 = arith.constant 1.000000e+00 : f32
    %134 = vector.broadcast %cst_43 : f32 to vector<8x128xf32>
    %135 = arith.addf %134, %133 : vector<8x128xf32>
    %136 = arith.divf %134, %135 : vector<8x128xf32>
    %137 = vector.extract_strided_slice %124 {offsets = [0, 256], sizes = [8, 128], strides = [1, 1]} : vector<8x512xf32> to vector<8x128xf32>
    %138 = math.tanh %137 : vector<8x128xf32>
    %139 = vector.extract_strided_slice %124 {offsets = [0, 384], sizes = [8, 128], strides = [1, 1]} : vector<8x512xf32> to vector<8x128xf32>
    %140 = arith.negf %139 : vector<8x128xf32>
    %141 = math.exp %140 : vector<8x128xf32>
    %cst_44 = arith.constant 1.000000e+00 : f32
    %142 = vector.broadcast %cst_44 : f32 to vector<8x128xf32>
    %143 = arith.addf %142, %141 : vector<8x128xf32>
    %144 = arith.divf %142, %143 : vector<8x128xf32>
    %145 = arith.mulf %136, %111 : vector<8x128xf32>
    %146 = arith.mulf %130, %138 : vector<8x128xf32>
    %147 = arith.addf %145, %146 : vector<8x128xf32>
    %148 = math.tanh %147 : vector<8x128xf32>
    %149 = arith.mulf %144, %148 : vector<8x128xf32>
    %c4_i32 = arith.constant 4 : i32
    %c8_i32_45 = arith.constant 8 : i32
    %150 = arith.muli %c4_i32, %c8_i32_45 : i32
    %151 = tpu.assume_multiple %150, 8 : i32
    %152 = arith.index_cast %151 : i32 to index
    %c0_46 = arith.constant 0 : index
    %153 = vector.load %arg12[%152, %c0_46] : memref<64x512xf32, #tpu.memory_space<vmem>>, vector<8x512xf32>
    %154 = arith.truncf %149 : vector<8x128xf32> to vector<8x128xbf16>
    %c0_47 = arith.constant 0 : index
    %c0_48 = arith.constant 0 : index
    %155 = vector.load %arg3[%c0_47, %c0_48] : memref<128x512xbf16, #tpu.memory_space<vmem>>, vector<128x512xbf16>
    %cst_49 = arith.constant dense<0.000000e+00> : vector<8x512xf32>
    %156 = tpu.matmul %154, %155, %cst_49 {dimension_numbers = #tpu.dot_dimension_numbers<[1], [0], [0], [1], [0, 0, 1, 1], [], []>} : vector<8x128xbf16>, vector<128x512xbf16>, vector<8x512xf32> -> vector<8x512xf32>
    %157 = arith.addf %153, %156 : vector<8x512xf32>
    %c0_50 = arith.constant 0 : index
    %c0_51 = arith.constant 0 : index
    %158 = vector.load %arg4[%c0_50, %c0_51] : memref<1x512xf32, #tpu.memory_space<vmem>>, vector<1x512xf32>
    %159 = vector.broadcast %158 : vector<1x512xf32> to vector<8x512xf32>
    %160 = arith.addf %157, %159 : vector<8x512xf32>
    %161 = vector.extract_strided_slice %160 {offsets = [0, 0], sizes = [8, 128], strides = [1, 1]} : vector<8x512xf32> to vector<8x128xf32>
    %162 = arith.negf %161 : vector<8x128xf32>
    %163 = math.exp %162 : vector<8x128xf32>
    %cst_52 = arith.constant 1.000000e+00 : f32
    %164 = vector.broadcast %cst_52 : f32 to vector<8x128xf32>
    %165 = arith.addf %164, %163 : vector<8x128xf32>
    %166 = arith.divf %164, %165 : vector<8x128xf32>
    %167 = vector.extract_strided_slice %160 {offsets = [0, 128], sizes = [8, 128], strides = [1, 1]} : vector<8x512xf32> to vector<8x128xf32>
    %168 = arith.negf %167 : vector<8x128xf32>
    %169 = math.exp %168 : vector<8x128xf32>
    %cst_53 = arith.constant 1.000000e+00 : f32
    %170 = vector.broadcast %cst_53 : f32 to vector<8x128xf32>
    %171 = arith.addf %170, %169 : vector<8x128xf32>
    %172 = arith.divf %170, %171 : vector<8x128xf32>
    %173 = vector.extract_strided_slice %160 {offsets = [0, 256], sizes = [8, 128], strides = [1, 1]} : vector<8x512xf32> to vector<8x128xf32>
    %174 = math.tanh %173 : vector<8x128xf32>
    %175 = vector.extract_strided_slice %160 {offsets = [0, 384], sizes = [8, 128], strides = [1, 1]} : vector<8x512xf32> to vector<8x128xf32>
    %176 = arith.negf %175 : vector<8x128xf32>
    %177 = math.exp %176 : vector<8x128xf32>
    %cst_54 = arith.constant 1.000000e+00 : f32
    %178 = vector.broadcast %cst_54 : f32 to vector<8x128xf32>
    %179 = arith.addf %178, %177 : vector<8x128xf32>
    %180 = arith.divf %178, %179 : vector<8x128xf32>
    %181 = arith.mulf %172, %147 : vector<8x128xf32>
    %182 = arith.mulf %166, %174 : vector<8x128xf32>
    %183 = arith.addf %181, %182 : vector<8x128xf32>
    %184 = math.tanh %183 : vector<8x128xf32>
    %185 = arith.mulf %180, %184 : vector<8x128xf32>
    %c5_i32 = arith.constant 5 : i32
    %c8_i32_55 = arith.constant 8 : i32
    %186 = arith.muli %c5_i32, %c8_i32_55 : i32
    %187 = tpu.assume_multiple %186, 8 : i32
    %188 = arith.index_cast %187 : i32 to index
    %c0_56 = arith.constant 0 : index
    %189 = vector.load %arg12[%188, %c0_56] : memref<64x512xf32, #tpu.memory_space<vmem>>, vector<8x512xf32>
    %190 = arith.truncf %185 : vector<8x128xf32> to vector<8x128xbf16>
    %c0_57 = arith.constant 0 : index
    %c0_58 = arith.constant 0 : index
    %191 = vector.load %arg3[%c0_57, %c0_58] : memref<128x512xbf16, #tpu.memory_space<vmem>>, vector<128x512xbf16>
    %cst_59 = arith.constant dense<0.000000e+00> : vector<8x512xf32>
    %192 = tpu.matmul %190, %191, %cst_59 {dimension_numbers = #tpu.dot_dimension_numbers<[1], [0], [0], [1], [0, 0, 1, 1], [], []>} : vector<8x128xbf16>, vector<128x512xbf16>, vector<8x512xf32> -> vector<8x512xf32>
    %193 = arith.addf %189, %192 : vector<8x512xf32>
    %c0_60 = arith.constant 0 : index
    %c0_61 = arith.constant 0 : index
    %194 = vector.load %arg4[%c0_60, %c0_61] : memref<1x512xf32, #tpu.memory_space<vmem>>, vector<1x512xf32>
    %195 = vector.broadcast %194 : vector<1x512xf32> to vector<8x512xf32>
    %196 = arith.addf %193, %195 : vector<8x512xf32>
    %197 = vector.extract_strided_slice %196 {offsets = [0, 0], sizes = [8, 128], strides = [1, 1]} : vector<8x512xf32> to vector<8x128xf32>
    %198 = arith.negf %197 : vector<8x128xf32>
    %199 = math.exp %198 : vector<8x128xf32>
    %cst_62 = arith.constant 1.000000e+00 : f32
    %200 = vector.broadcast %cst_62 : f32 to vector<8x128xf32>
    %201 = arith.addf %200, %199 : vector<8x128xf32>
    %202 = arith.divf %200, %201 : vector<8x128xf32>
    %203 = vector.extract_strided_slice %196 {offsets = [0, 128], sizes = [8, 128], strides = [1, 1]} : vector<8x512xf32> to vector<8x128xf32>
    %204 = arith.negf %203 : vector<8x128xf32>
    %205 = math.exp %204 : vector<8x128xf32>
    %cst_63 = arith.constant 1.000000e+00 : f32
    %206 = vector.broadcast %cst_63 : f32 to vector<8x128xf32>
    %207 = arith.addf %206, %205 : vector<8x128xf32>
    %208 = arith.divf %206, %207 : vector<8x128xf32>
    %209 = vector.extract_strided_slice %196 {offsets = [0, 256], sizes = [8, 128], strides = [1, 1]} : vector<8x512xf32> to vector<8x128xf32>
    %210 = math.tanh %209 : vector<8x128xf32>
    %211 = vector.extract_strided_slice %196 {offsets = [0, 384], sizes = [8, 128], strides = [1, 1]} : vector<8x512xf32> to vector<8x128xf32>
    %212 = arith.negf %211 : vector<8x128xf32>
    %213 = math.exp %212 : vector<8x128xf32>
    %cst_64 = arith.constant 1.000000e+00 : f32
    %214 = vector.broadcast %cst_64 : f32 to vector<8x128xf32>
    %215 = arith.addf %214, %213 : vector<8x128xf32>
    %216 = arith.divf %214, %215 : vector<8x128xf32>
    %217 = arith.mulf %208, %183 : vector<8x128xf32>
    %218 = arith.mulf %202, %210 : vector<8x128xf32>
    %219 = arith.addf %217, %218 : vector<8x128xf32>
    %220 = math.tanh %219 : vector<8x128xf32>
    %221 = arith.mulf %216, %220 : vector<8x128xf32>
    %c6_i32 = arith.constant 6 : i32
    %c8_i32_65 = arith.constant 8 : i32
    %222 = arith.muli %c6_i32, %c8_i32_65 : i32
    %223 = tpu.assume_multiple %222, 8 : i32
    %224 = arith.index_cast %223 : i32 to index
    %c0_66 = arith.constant 0 : index
    %225 = vector.load %arg12[%224, %c0_66] : memref<64x512xf32, #tpu.memory_space<vmem>>, vector<8x512xf32>
    %226 = arith.truncf %221 : vector<8x128xf32> to vector<8x128xbf16>
    %c0_67 = arith.constant 0 : index
    %c0_68 = arith.constant 0 : index
    %227 = vector.load %arg3[%c0_67, %c0_68] : memref<128x512xbf16, #tpu.memory_space<vmem>>, vector<128x512xbf16>
    %cst_69 = arith.constant dense<0.000000e+00> : vector<8x512xf32>
    %228 = tpu.matmul %226, %227, %cst_69 {dimension_numbers = #tpu.dot_dimension_numbers<[1], [0], [0], [1], [0, 0, 1, 1], [], []>} : vector<8x128xbf16>, vector<128x512xbf16>, vector<8x512xf32> -> vector<8x512xf32>
    %229 = arith.addf %225, %228 : vector<8x512xf32>
    %c0_70 = arith.constant 0 : index
    %c0_71 = arith.constant 0 : index
    %230 = vector.load %arg4[%c0_70, %c0_71] : memref<1x512xf32, #tpu.memory_space<vmem>>, vector<1x512xf32>
    %231 = vector.broadcast %230 : vector<1x512xf32> to vector<8x512xf32>
    %232 = arith.addf %229, %231 : vector<8x512xf32>
    %233 = vector.extract_strided_slice %232 {offsets = [0, 0], sizes = [8, 128], strides = [1, 1]} : vector<8x512xf32> to vector<8x128xf32>
    %234 = arith.negf %233 : vector<8x128xf32>
    %235 = math.exp %234 : vector<8x128xf32>
    %cst_72 = arith.constant 1.000000e+00 : f32
    %236 = vector.broadcast %cst_72 : f32 to vector<8x128xf32>
    %237 = arith.addf %236, %235 : vector<8x128xf32>
    %238 = arith.divf %236, %237 : vector<8x128xf32>
    %239 = vector.extract_strided_slice %232 {offsets = [0, 128], sizes = [8, 128], strides = [1, 1]} : vector<8x512xf32> to vector<8x128xf32>
    %240 = arith.negf %239 : vector<8x128xf32>
    %241 = math.exp %240 : vector<8x128xf32>
    %cst_73 = arith.constant 1.000000e+00 : f32
    %242 = vector.broadcast %cst_73 : f32 to vector<8x128xf32>
    %243 = arith.addf %242, %241 : vector<8x128xf32>
    %244 = arith.divf %242, %243 : vector<8x128xf32>
    %245 = vector.extract_strided_slice %232 {offsets = [0, 256], sizes = [8, 128], strides = [1, 1]} : vector<8x512xf32> to vector<8x128xf32>
    %246 = math.tanh %245 : vector<8x128xf32>
    %247 = vector.extract_strided_slice %232 {offsets = [0, 384], sizes = [8, 128], strides = [1, 1]} : vector<8x512xf32> to vector<8x128xf32>
    %248 = arith.negf %247 : vector<8x128xf32>
    %249 = math.exp %248 : vector<8x128xf32>
    %cst_74 = arith.constant 1.000000e+00 : f32
    %250 = vector.broadcast %cst_74 : f32 to vector<8x128xf32>
    %251 = arith.addf %250, %249 : vector<8x128xf32>
    %252 = arith.divf %250, %251 : vector<8x128xf32>
    %253 = arith.mulf %244, %219 : vector<8x128xf32>
    %254 = arith.mulf %238, %246 : vector<8x128xf32>
    %255 = arith.addf %253, %254 : vector<8x128xf32>
    %256 = math.tanh %255 : vector<8x128xf32>
    %257 = arith.mulf %252, %256 : vector<8x128xf32>
    %c7_i32 = arith.constant 7 : i32
    %c8_i32_75 = arith.constant 8 : i32
    %258 = arith.muli %c7_i32, %c8_i32_75 : i32
    %259 = tpu.assume_multiple %258, 8 : i32
    %260 = arith.index_cast %259 : i32 to index
    %c0_76 = arith.constant 0 : index
    %261 = vector.load %arg12[%260, %c0_76] : memref<64x512xf32, #tpu.memory_space<vmem>>, vector<8x512xf32>
    %262 = arith.truncf %257 : vector<8x128xf32> to vector<8x128xbf16>
    %c0_77 = arith.constant 0 : index
    %c0_78 = arith.constant 0 : index
    %263 = vector.load %arg3[%c0_77, %c0_78] : memref<128x512xbf16, #tpu.memory_space<vmem>>, vector<128x512xbf16>
    %cst_79 = arith.constant dense<0.000000e+00> : vector<8x512xf32>
    %264 = tpu.matmul %262, %263, %cst_79 {dimension_numbers = #tpu.dot_dimension_numbers<[1], [0], [0], [1], [0, 0, 1, 1], [], []>} : vector<8x128xbf16>, vector<128x512xbf16>, vector<8x512xf32> -> vector<8x512xf32>
    %265 = arith.addf %261, %264 : vector<8x512xf32>
    %c0_80 = arith.constant 0 : index
    %c0_81 = arith.constant 0 : index
    %266 = vector.load %arg4[%c0_80, %c0_81] : memref<1x512xf32, #tpu.memory_space<vmem>>, vector<1x512xf32>
    %267 = vector.broadcast %266 : vector<1x512xf32> to vector<8x512xf32>
    %268 = arith.addf %265, %267 : vector<8x512xf32>
    %269 = vector.extract_strided_slice %268 {offsets = [0, 0], sizes = [8, 128], strides = [1, 1]} : vector<8x512xf32> to vector<8x128xf32>
    %270 = arith.negf %269 : vector<8x128xf32>
    %271 = math.exp %270 : vector<8x128xf32>
    %cst_82 = arith.constant 1.000000e+00 : f32
    %272 = vector.broadcast %cst_82 : f32 to vector<8x128xf32>
    %273 = arith.addf %272, %271 : vector<8x128xf32>
    %274 = arith.divf %272, %273 : vector<8x128xf32>
    %275 = vector.extract_strided_slice %268 {offsets = [0, 128], sizes = [8, 128], strides = [1, 1]} : vector<8x512xf32> to vector<8x128xf32>
    %276 = arith.negf %275 : vector<8x128xf32>
    %277 = math.exp %276 : vector<8x128xf32>
    %cst_83 = arith.constant 1.000000e+00 : f32
    %278 = vector.broadcast %cst_83 : f32 to vector<8x128xf32>
    %279 = arith.addf %278, %277 : vector<8x128xf32>
    %280 = arith.divf %278, %279 : vector<8x128xf32>
    %281 = vector.extract_strided_slice %268 {offsets = [0, 256], sizes = [8, 128], strides = [1, 1]} : vector<8x512xf32> to vector<8x128xf32>
    %282 = math.tanh %281 : vector<8x128xf32>
    %283 = vector.extract_strided_slice %268 {offsets = [0, 384], sizes = [8, 128], strides = [1, 1]} : vector<8x512xf32> to vector<8x128xf32>
    %284 = arith.negf %283 : vector<8x128xf32>
    %285 = math.exp %284 : vector<8x128xf32>
    %cst_84 = arith.constant 1.000000e+00 : f32
    %286 = vector.broadcast %cst_84 : f32 to vector<8x128xf32>
    %287 = arith.addf %286, %285 : vector<8x128xf32>
    %288 = arith.divf %286, %287 : vector<8x128xf32>
    %289 = arith.mulf %280, %255 : vector<8x128xf32>
    %290 = arith.mulf %274, %282 : vector<8x128xf32>
    %291 = arith.addf %289, %290 : vector<8x128xf32>
    %292 = math.tanh %291 : vector<8x128xf32>
    %293 = arith.mulf %288, %292 : vector<8x128xf32>
    %c8_i32_85 = arith.constant 8 : i32
    %294 = arith.truncf %293 : vector<8x128xf32> to vector<8x128xbf16>
    %c0_86 = arith.constant 0 : index
    %c0_87 = arith.constant 0 : index
    %c0_88 = arith.constant 0 : index
    %295 = vector.load %arg5[%c0_86, %c0_87, %c0_88] : memref<2x128x512xbf16, #tpu.memory_space<vmem>>, vector<1x128x512xbf16>
    %296 = vector.shape_cast %295 : vector<1x128x512xbf16> to vector<128x512xbf16>
    %cst_89 = arith.constant dense<0.000000e+00> : vector<8x512xf32>
    %297 = tpu.matmul %294, %296, %cst_89 {dimension_numbers = #tpu.dot_dimension_numbers<[1], [0], [0], [1], [0, 0, 1, 1], [], []>} : vector<8x128xbf16>, vector<128x512xbf16>, vector<8x512xf32> -> vector<8x512xf32>
    %c0_90 = arith.constant 0 : index
    %c0_91 = arith.constant 0 : index
    %c0_92 = arith.constant 0 : index
    %298 = vector.load %arg7[%c0_90, %c0_91, %c0_92] : memref<2x1x512xf32, #tpu.memory_space<vmem>>, vector<1x1x512xf32>
    %299 = vector.shape_cast %298 : vector<1x1x512xf32> to vector<1x512xf32>
    %300 = vector.broadcast %299 : vector<1x512xf32> to vector<8x512xf32>
    %301 = arith.addf %297, %300 : vector<8x512xf32>
    %302 = vector.extract_strided_slice %301 {offsets = [0, 0], sizes = [8, 128], strides = [1, 1]} : vector<8x512xf32> to vector<8x128xf32>
    %303 = arith.negf %302 : vector<8x128xf32>
    %304 = math.exp %303 : vector<8x128xf32>
    %cst_93 = arith.constant 1.000000e+00 : f32
    %305 = vector.broadcast %cst_93 : f32 to vector<8x128xf32>
    %306 = arith.addf %305, %304 : vector<8x128xf32>
    %307 = arith.divf %305, %306 : vector<8x128xf32>
    %308 = vector.extract_strided_slice %301 {offsets = [0, 128], sizes = [8, 128], strides = [1, 1]} : vector<8x512xf32> to vector<8x128xf32>
    %309 = arith.negf %308 : vector<8x128xf32>
    %310 = math.exp %309 : vector<8x128xf32>
    %cst_94 = arith.constant 1.000000e+00 : f32
    %311 = vector.broadcast %cst_94 : f32 to vector<8x128xf32>
    %312 = arith.addf %311, %310 : vector<8x128xf32>
    %313 = arith.divf %311, %312 : vector<8x128xf32>
    %314 = vector.extract_strided_slice %301 {offsets = [0, 256], sizes = [8, 128], strides = [1, 1]} : vector<8x512xf32> to vector<8x128xf32>
    %315 = math.tanh %314 : vector<8x128xf32>
    %316 = vector.extract_strided_slice %301 {offsets = [0, 384], sizes = [8, 128], strides = [1, 1]} : vector<8x512xf32> to vector<8x128xf32>
    %317 = arith.negf %316 : vector<8x128xf32>
    %318 = math.exp %317 : vector<8x128xf32>
    %cst_95 = arith.constant 1.000000e+00 : f32
    %319 = vector.broadcast %cst_95 : f32 to vector<8x128xf32>
    %320 = arith.addf %319, %318 : vector<8x128xf32>
    %321 = arith.divf %319, %320 : vector<8x128xf32>
    %322 = arith.mulf %313, %291 : vector<8x128xf32>
    %323 = arith.mulf %307, %315 : vector<8x128xf32>
    %324 = arith.addf %322, %323 : vector<8x128xf32>
    %325 = math.tanh %324 : vector<8x128xf32>
    %326 = arith.mulf %321, %325 : vector<8x128xf32>
    %c0_96 = arith.constant 0 : index
    %c0_97 = arith.constant 0 : index
    %327 = vector.load %arg13[%c0_96, %c0_97] : memref<64x128xf32, #tpu.memory_space<vmem>>, vector<8x128xf32>
    tpu.vector_store %arg13[%c0_96, %c0_97], %326 {strides = array<i32>} : memref<64x128xf32, #tpu.memory_space<vmem>>, vector<8x128xf32>,
    %c1 = arith.constant 1 : index
    %c0_98 = arith.constant 0 : index
    %c0_99 = arith.constant 0 : index
    %328 = vector.load %arg5[%c1, %c0_98, %c0_99] : memref<2x128x512xbf16, #tpu.memory_space<vmem>>, vector<1x128x512xbf16>
    %329 = vector.shape_cast %328 : vector<1x128x512xbf16> to vector<128x512xbf16>
    %cst_100 = arith.constant dense<0.000000e+00> : vector<8x512xf32>
    %330 = tpu.matmul %294, %329, %cst_100 {dimension_numbers = #tpu.dot_dimension_numbers<[1], [0], [0], [1], [0, 0, 1, 1], [], []>} : vector<8x128xbf16>, vector<128x512xbf16>, vector<8x512xf32> -> vector<8x512xf32>
    %c1_101 = arith.constant 1 : index
    %c0_102 = arith.constant 0 : index
    %c0_103 = arith.constant 0 : index
    %331 = vector.load %arg7[%c1_101, %c0_102, %c0_103] : memref<2x1x512xf32, #tpu.memory_space<vmem>>, vector<1x1x512xf32>
    %332 = vector.shape_cast %331 : vector<1x1x512xf32> to vector<1x512xf32>
    %333 = vector.broadcast %332 : vector<1x512xf32> to vector<8x512xf32>
    %334 = arith.addf %330, %333 : vector<8x512xf32>
    %335 = vector.extract_strided_slice %334 {offsets = [0, 0], sizes = [8, 128], strides = [1, 1]} : vector<8x512xf32> to vector<8x128xf32>
    %336 = arith.negf %335 : vector<8x128xf32>
    %337 = math.exp %336 : vector<8x128xf32>
    %cst_104 = arith.constant 1.000000e+00 : f32
    %338 = vector.broadcast %cst_104 : f32 to vector<8x128xf32>
    %339 = arith.addf %338, %337 : vector<8x128xf32>
    %340 = arith.divf %338, %339 : vector<8x128xf32>
    %341 = vector.extract_strided_slice %334 {offsets = [0, 128], sizes = [8, 128], strides = [1, 1]} : vector<8x512xf32> to vector<8x128xf32>
    %342 = arith.negf %341 : vector<8x128xf32>
    %343 = math.exp %342 : vector<8x128xf32>
    %cst_105 = arith.constant 1.000000e+00 : f32
    %344 = vector.broadcast %cst_105 : f32 to vector<8x128xf32>
    %345 = arith.addf %344, %343 : vector<8x128xf32>
    %346 = arith.divf %344, %345 : vector<8x128xf32>
    %347 = vector.extract_strided_slice %334 {offsets = [0, 256], sizes = [8, 128], strides = [1, 1]} : vector<8x512xf32> to vector<8x128xf32>
    %348 = math.tanh %347 : vector<8x128xf32>
    %349 = vector.extract_strided_slice %334 {offsets = [0, 384], sizes = [8, 128], strides = [1, 1]} : vector<8x512xf32> to vector<8x128xf32>
    %350 = arith.negf %349 : vector<8x128xf32>
    %351 = math.exp %350 : vector<8x128xf32>
    %cst_106 = arith.constant 1.000000e+00 : f32
    %352 = vector.broadcast %cst_106 : f32 to vector<8x128xf32>
    %353 = arith.addf %352, %351 : vector<8x128xf32>
    %354 = arith.divf %352, %353 : vector<8x128xf32>
    %355 = arith.mulf %346, %291 : vector<8x128xf32>
    %356 = arith.mulf %340, %348 : vector<8x128xf32>
    %357 = arith.addf %355, %356 : vector<8x128xf32>
    %358 = math.tanh %357 : vector<8x128xf32>
    %359 = arith.mulf %354, %358 : vector<8x128xf32>
    %c56 = arith.constant 56 : index
    %c0_107 = arith.constant 0 : index
    %360 = vector.load %arg14[%c56, %c0_107] : memref<64x128xf32, #tpu.memory_space<vmem>>, vector<8x128xf32>
    tpu.vector_store %arg14[%c56, %c0_107], %359 {strides = array<i32>} : memref<64x128xf32, #tpu.memory_space<vmem>>, vector<8x128xf32>,
    %c1_i32_108 = arith.constant 1 : i32
    %361 = arith.truncf %326 : vector<8x128xf32> to vector<8x128xbf16>
    %c0_109 = arith.constant 0 : index
    %c0_110 = arith.constant 0 : index
    %c0_111 = arith.constant 0 : index
    %362 = vector.load %arg6[%c0_109, %c0_110, %c0_111] : memref<2x128x512xbf16, #tpu.memory_space<vmem>>, vector<1x128x512xbf16>
    %363 = vector.shape_cast %362 : vector<1x128x512xbf16> to vector<128x512xbf16>
    %cst_112 = arith.constant dense<0.000000e+00> : vector<8x512xf32>
    %364 = tpu.matmul %361, %363, %cst_112 {dimension_numbers = #tpu.dot_dimension_numbers<[1], [0], [0], [1], [0, 0, 1, 1], [], []>} : vector<8x128xbf16>, vector<128x512xbf16>, vector<8x512xf32> -> vector<8x512xf32>
    %c0_113 = arith.constant 0 : index
    %c0_114 = arith.constant 0 : index
    %c0_115 = arith.constant 0 : index
    %365 = vector.load %arg8[%c0_113, %c0_114, %c0_115] : memref<2x1x512xf32, #tpu.memory_space<vmem>>, vector<1x1x512xf32>
    %366 = vector.shape_cast %365 : vector<1x1x512xf32> to vector<1x512xf32>
    %367 = vector.broadcast %366 : vector<1x512xf32> to vector<8x512xf32>
    %368 = arith.addf %364, %367 : vector<8x512xf32>
    %369 = vector.extract_strided_slice %368 {offsets = [0, 0], sizes = [8, 128], strides = [1, 1]} : vector<8x512xf32> to vector<8x128xf32>
    %370 = arith.negf %369 : vector<8x128xf32>
    %371 = math.exp %370 : vector<8x128xf32>
    %cst_116 = arith.constant 1.000000e+00 : f32
    %372 = vector.broadcast %cst_116 : f32 to vector<8x128xf32>
    %373 = arith.addf %372, %371 : vector<8x128xf32>
    %374 = arith.divf %372, %373 : vector<8x128xf32>
    %375 = vector.extract_strided_slice %368 {offsets = [0, 128], sizes = [8, 128], strides = [1, 1]} : vector<8x512xf32> to vector<8x128xf32>
    %376 = arith.negf %375 : vector<8x128xf32>
    %377 = math.exp %376 : vector<8x128xf32>
    %cst_117 = arith.constant 1.000000e+00 : f32
    %378 = vector.broadcast %cst_117 : f32 to vector<8x128xf32>
    %379 = arith.addf %378, %377 : vector<8x128xf32>
    %380 = arith.divf %378, %379 : vector<8x128xf32>
    %381 = vector.extract_strided_slice %368 {offsets = [0, 256], sizes = [8, 128], strides = [1, 1]} : vector<8x512xf32> to vector<8x128xf32>
    %382 = math.tanh %381 : vector<8x128xf32>
    %383 = vector.extract_strided_slice %368 {offsets = [0, 384], sizes = [8, 128], strides = [1, 1]} : vector<8x512xf32> to vector<8x128xf32>
    %384 = arith.negf %383 : vector<8x128xf32>
    %385 = math.exp %384 : vector<8x128xf32>
    %cst_118 = arith.constant 1.000000e+00 : f32
    %386 = vector.broadcast %cst_118 : f32 to vector<8x128xf32>
    %387 = arith.addf %386, %385 : vector<8x128xf32>
    %388 = arith.divf %386, %387 : vector<8x128xf32>
    %389 = arith.mulf %380, %324 : vector<8x128xf32>
    %390 = arith.mulf %374, %382 : vector<8x128xf32>
    %391 = arith.addf %389, %390 : vector<8x128xf32>
    %392 = math.tanh %391 : vector<8x128xf32>
    %393 = arith.mulf %388, %392 : vector<8x128xf32>
    %c8_i32_119 = arith.constant 8 : i32
    %394 = arith.muli %c1_i32_108, %c8_i32_119 : i32
    %395 = tpu.assume_multiple %394, 8 : i32
    %396 = arith.index_cast %395 : i32 to index
    %c0_120 = arith.constant 0 : index
    %397 = vector.load %arg13[%396, %c0_120] : memref<64x128xf32, #tpu.memory_space<vmem>>, vector<8x128xf32>
    tpu.vector_store %arg13[%396, %c0_120], %393 {strides = array<i32>} : memref<64x128xf32, #tpu.memory_space<vmem>>, vector<8x128xf32>,
    %398 = arith.truncf %359 : vector<8x128xf32> to vector<8x128xbf16>
    %c1_121 = arith.constant 1 : index
    %c0_122 = arith.constant 0 : index
    %c0_123 = arith.constant 0 : index
    %399 = vector.load %arg6[%c1_121, %c0_122, %c0_123] : memref<2x128x512xbf16, #tpu.memory_space<vmem>>, vector<1x128x512xbf16>
    %400 = vector.shape_cast %399 : vector<1x128x512xbf16> to vector<128x512xbf16>
    %cst_124 = arith.constant dense<0.000000e+00> : vector<8x512xf32>
    %401 = tpu.matmul %398, %400, %cst_124 {dimension_numbers = #tpu.dot_dimension_numbers<[1], [0], [0], [1], [0, 0, 1, 1], [], []>} : vector<8x128xbf16>, vector<128x512xbf16>, vector<8x512xf32> -> vector<8x512xf32>
    %c1_125 = arith.constant 1 : index
    %c0_126 = arith.constant 0 : index
    %c0_127 = arith.constant 0 : index
    %402 = vector.load %arg8[%c1_125, %c0_126, %c0_127] : memref<2x1x512xf32, #tpu.memory_space<vmem>>, vector<1x1x512xf32>
    %403 = vector.shape_cast %402 : vector<1x1x512xf32> to vector<1x512xf32>
    %404 = vector.broadcast %403 : vector<1x512xf32> to vector<8x512xf32>
    %405 = arith.addf %401, %404 : vector<8x512xf32>
    %406 = vector.extract_strided_slice %405 {offsets = [0, 0], sizes = [8, 128], strides = [1, 1]} : vector<8x512xf32> to vector<8x128xf32>
    %407 = arith.negf %406 : vector<8x128xf32>
    %408 = math.exp %407 : vector<8x128xf32>
    %cst_128 = arith.constant 1.000000e+00 : f32
    %409 = vector.broadcast %cst_128 : f32 to vector<8x128xf32>
    %410 = arith.addf %409, %408 : vector<8x128xf32>
    %411 = arith.divf %409, %410 : vector<8x128xf32>
    %412 = vector.extract_strided_slice %405 {offsets = [0, 128], sizes = [8, 128], strides = [1, 1]} : vector<8x512xf32> to vector<8x128xf32>
    %413 = arith.negf %412 : vector<8x128xf32>
    %414 = math.exp %413 : vector<8x128xf32>
    %cst_129 = arith.constant 1.000000e+00 : f32
    %415 = vector.broadcast %cst_129 : f32 to vector<8x128xf32>
    %416 = arith.addf %415, %414 : vector<8x128xf32>
    %417 = arith.divf %415, %416 : vector<8x128xf32>
    %418 = vector.extract_strided_slice %405 {offsets = [0, 256], sizes = [8, 128], strides = [1, 1]} : vector<8x512xf32> to vector<8x128xf32>
    %419 = math.tanh %418 : vector<8x128xf32>
    %420 = vector.extract_strided_slice %405 {offsets = [0, 384], sizes = [8, 128], strides = [1, 1]} : vector<8x512xf32> to vector<8x128xf32>
    %421 = arith.negf %420 : vector<8x128xf32>
    %422 = math.exp %421 : vector<8x128xf32>
    %cst_130 = arith.constant 1.000000e+00 : f32
    %423 = vector.broadcast %cst_130 : f32 to vector<8x128xf32>
    %424 = arith.addf %423, %422 : vector<8x128xf32>
    %425 = arith.divf %423, %424 : vector<8x128xf32>
    %426 = arith.mulf %417, %357 : vector<8x128xf32>
    %427 = arith.mulf %411, %419 : vector<8x128xf32>
    %428 = arith.addf %426, %427 : vector<8x128xf32>
    %429 = math.tanh %428 : vector<8x128xf32>
    %430 = arith.mulf %425, %429 : vector<8x128xf32>
    %c7_i32_131 = arith.constant 7 : i32
    %431 = arith.subi %c7_i32_131, %c1_i32_108 : i32
    %c8_i32_132 = arith.constant 8 : i32
    %432 = arith.muli %431, %c8_i32_132 : i32
    %433 = tpu.assume_multiple %432, 8 : i32
    %434 = arith.index_cast %433 : i32 to index
    %c0_133 = arith.constant 0 : index
    %435 = vector.load %arg14[%434, %c0_133] : memref<64x128xf32, #tpu.memory_space<vmem>>, vector<8x128xf32>
    tpu.vector_store %arg14[%434, %c0_133], %430 {strides = array<i32>} : memref<64x128xf32, #tpu.memory_space<vmem>>, vector<8x128xf32>,
    %c2_i32_134 = arith.constant 2 : i32
    %436 = arith.truncf %393 : vector<8x128xf32> to vector<8x128xbf16>
    %c0_135 = arith.constant 0 : index
    %c0_136 = arith.constant 0 : index
    %c0_137 = arith.constant 0 : index
    %437 = vector.load %arg6[%c0_135, %c0_136, %c0_137] : memref<2x128x512xbf16, #tpu.memory_space<vmem>>, vector<1x128x512xbf16>
    %438 = vector.shape_cast %437 : vector<1x128x512xbf16> to vector<128x512xbf16>
    %cst_138 = arith.constant dense<0.000000e+00> : vector<8x512xf32>
    %439 = tpu.matmul %436, %438, %cst_138 {dimension_numbers = #tpu.dot_dimension_numbers<[1], [0], [0], [1], [0, 0, 1, 1], [], []>} : vector<8x128xbf16>, vector<128x512xbf16>, vector<8x512xf32> -> vector<8x512xf32>
    %c0_139 = arith.constant 0 : index
    %c0_140 = arith.constant 0 : index
    %c0_141 = arith.constant 0 : index
    %440 = vector.load %arg8[%c0_139, %c0_140, %c0_141] : memref<2x1x512xf32, #tpu.memory_space<vmem>>, vector<1x1x512xf32>
    %441 = vector.shape_cast %440 : vector<1x1x512xf32> to vector<1x512xf32>
    %442 = vector.broadcast %441 : vector<1x512xf32> to vector<8x512xf32>
    %443 = arith.addf %439, %442 : vector<8x512xf32>
    %444 = vector.extract_strided_slice %443 {offsets = [0, 0], sizes = [8, 128], strides = [1, 1]} : vector<8x512xf32> to vector<8x128xf32>
    %445 = arith.negf %444 : vector<8x128xf32>
    %446 = math.exp %445 : vector<8x128xf32>
    %cst_142 = arith.constant 1.000000e+00 : f32
    %447 = vector.broadcast %cst_142 : f32 to vector<8x128xf32>
    %448 = arith.addf %447, %446 : vector<8x128xf32>
    %449 = arith.divf %447, %448 : vector<8x128xf32>
    %450 = vector.extract_strided_slice %443 {offsets = [0, 128], sizes = [8, 128], strides = [1, 1]} : vector<8x512xf32> to vector<8x128xf32>
    %451 = arith.negf %450 : vector<8x128xf32>
    %452 = math.exp %451 : vector<8x128xf32>
    %cst_143 = arith.constant 1.000000e+00 : f32
    %453 = vector.broadcast %cst_143 : f32 to vector<8x128xf32>
    %454 = arith.addf %453, %452 : vector<8x128xf32>
    %455 = arith.divf %453, %454 : vector<8x128xf32>
    %456 = vector.extract_strided_slice %443 {offsets = [0, 256], sizes = [8, 128], strides = [1, 1]} : vector<8x512xf32> to vector<8x128xf32>
    %457 = math.tanh %456 : vector<8x128xf32>
    %458 = vector.extract_strided_slice %443 {offsets = [0, 384], sizes = [8, 128], strides = [1, 1]} : vector<8x512xf32> to vector<8x128xf32>
    %459 = arith.negf %458 : vector<8x128xf32>
    %460 = math.exp %459 : vector<8x128xf32>
    %cst_144 = arith.constant 1.000000e+00 : f32
    %461 = vector.broadcast %cst_144 : f32 to vector<8x128xf32>
    %462 = arith.addf %461, %460 : vector<8x128xf32>
    %463 = arith.divf %461, %462 : vector<8x128xf32>
    %464 = arith.mulf %455, %391 : vector<8x128xf32>
    %465 = arith.mulf %449, %457 : vector<8x128xf32>
    %466 = arith.addf %464, %465 : vector<8x128xf32>
    %467 = math.tanh %466 : vector<8x128xf32>
    %468 = arith.mulf %463, %467 : vector<8x128xf32>
    %c8_i32_145 = arith.constant 8 : i32
    %469 = arith.muli %c2_i32_134, %c8_i32_145 : i32
    %470 = tpu.assume_multiple %469, 8 : i32
    %471 = arith.index_cast %470 : i32 to index
    %c0_146 = arith.constant 0 : index
    %472 = vector.load %arg13[%471, %c0_146] : memref<64x128xf32, #tpu.memory_space<vmem>>, vector<8x128xf32>
    tpu.vector_store %arg13[%471, %c0_146], %468 {strides = array<i32>} : memref<64x128xf32, #tpu.memory_space<vmem>>, vector<8x128xf32>,
    %473 = arith.truncf %430 : vector<8x128xf32> to vector<8x128xbf16>
    %c1_147 = arith.constant 1 : index
    %c0_148 = arith.constant 0 : index
    %c0_149 = arith.constant 0 : index
    %474 = vector.load %arg6[%c1_147, %c0_148, %c0_149] : memref<2x128x512xbf16, #tpu.memory_space<vmem>>, vector<1x128x512xbf16>
    %475 = vector.shape_cast %474 : vector<1x128x512xbf16> to vector<128x512xbf16>
    %cst_150 = arith.constant dense<0.000000e+00> : vector<8x512xf32>
    %476 = tpu.matmul %473, %475, %cst_150 {dimension_numbers = #tpu.dot_dimension_numbers<[1], [0], [0], [1], [0, 0, 1, 1], [], []>} : vector<8x128xbf16>, vector<128x512xbf16>, vector<8x512xf32> -> vector<8x512xf32>
    %c1_151 = arith.constant 1 : index
    %c0_152 = arith.constant 0 : index
    %c0_153 = arith.constant 0 : index
    %477 = vector.load %arg8[%c1_151, %c0_152, %c0_153] : memref<2x1x512xf32, #tpu.memory_space<vmem>>, vector<1x1x512xf32>
    %478 = vector.shape_cast %477 : vector<1x1x512xf32> to vector<1x512xf32>
    %479 = vector.broadcast %478 : vector<1x512xf32> to vector<8x512xf32>
    %480 = arith.addf %476, %479 : vector<8x512xf32>
    %481 = vector.extract_strided_slice %480 {offsets = [0, 0], sizes = [8, 128], strides = [1, 1]} : vector<8x512xf32> to vector<8x128xf32>
    %482 = arith.negf %481 : vector<8x128xf32>
    %483 = math.exp %482 : vector<8x128xf32>
    %cst_154 = arith.constant 1.000000e+00 : f32
    %484 = vector.broadcast %cst_154 : f32 to vector<8x128xf32>
    %485 = arith.addf %484, %483 : vector<8x128xf32>
    %486 = arith.divf %484, %485 : vector<8x128xf32>
    %487 = vector.extract_strided_slice %480 {offsets = [0, 128], sizes = [8, 128], strides = [1, 1]} : vector<8x512xf32> to vector<8x128xf32>
    %488 = arith.negf %487 : vector<8x128xf32>
    %489 = math.exp %488 : vector<8x128xf32>
    %cst_155 = arith.constant 1.000000e+00 : f32
    %490 = vector.broadcast %cst_155 : f32 to vector<8x128xf32>
    %491 = arith.addf %490, %489 : vector<8x128xf32>
    %492 = arith.divf %490, %491 : vector<8x128xf32>
    %493 = vector.extract_strided_slice %480 {offsets = [0, 256], sizes = [8, 128], strides = [1, 1]} : vector<8x512xf32> to vector<8x128xf32>
    %494 = math.tanh %493 : vector<8x128xf32>
    %495 = vector.extract_strided_slice %480 {offsets = [0, 384], sizes = [8, 128], strides = [1, 1]} : vector<8x512xf32> to vector<8x128xf32>
    %496 = arith.negf %495 : vector<8x128xf32>
    %497 = math.exp %496 : vector<8x128xf32>
    %cst_156 = arith.constant 1.000000e+00 : f32
    %498 = vector.broadcast %cst_156 : f32 to vector<8x128xf32>
    %499 = arith.addf %498, %497 : vector<8x128xf32>
    %500 = arith.divf %498, %499 : vector<8x128xf32>
    %501 = arith.mulf %492, %428 : vector<8x128xf32>
    %502 = arith.mulf %486, %494 : vector<8x128xf32>
    %503 = arith.addf %501, %502 : vector<8x128xf32>
    %504 = math.tanh %503 : vector<8x128xf32>
    %505 = arith.mulf %500, %504 : vector<8x128xf32>
    %c7_i32_157 = arith.constant 7 : i32
    %506 = arith.subi %c7_i32_157, %c2_i32_134 : i32
    %c8_i32_158 = arith.constant 8 : i32
    %507 = arith.muli %506, %c8_i32_158 : i32
    %508 = tpu.assume_multiple %507, 8 : i32
    %509 = arith.index_cast %508 : i32 to index
    %c0_159 = arith.constant 0 : index
    %510 = vector.load %arg14[%509, %c0_159] : memref<64x128xf32, #tpu.memory_space<vmem>>, vector<8x128xf32>
    tpu.vector_store %arg14[%509, %c0_159], %505 {strides = array<i32>} : memref<64x128xf32, #tpu.memory_space<vmem>>, vector<8x128xf32>,
    %c3_i32_160 = arith.constant 3 : i32
    %511 = arith.truncf %468 : vector<8x128xf32> to vector<8x128xbf16>
    %c0_161 = arith.constant 0 : index
    %c0_162 = arith.constant 0 : index
    %c0_163 = arith.constant 0 : index
    %512 = vector.load %arg6[%c0_161, %c0_162, %c0_163] : memref<2x128x512xbf16, #tpu.memory_space<vmem>>, vector<1x128x512xbf16>
    %513 = vector.shape_cast %512 : vector<1x128x512xbf16> to vector<128x512xbf16>
    %cst_164 = arith.constant dense<0.000000e+00> : vector<8x512xf32>
    %514 = tpu.matmul %511, %513, %cst_164 {dimension_numbers = #tpu.dot_dimension_numbers<[1], [0], [0], [1], [0, 0, 1, 1], [], []>} : vector<8x128xbf16>, vector<128x512xbf16>, vector<8x512xf32> -> vector<8x512xf32>
    %c0_165 = arith.constant 0 : index
    %c0_166 = arith.constant 0 : index
    %c0_167 = arith.constant 0 : index
    %515 = vector.load %arg8[%c0_165, %c0_166, %c0_167] : memref<2x1x512xf32, #tpu.memory_space<vmem>>, vector<1x1x512xf32>
    %516 = vector.shape_cast %515 : vector<1x1x512xf32> to vector<1x512xf32>
    %517 = vector.broadcast %516 : vector<1x512xf32> to vector<8x512xf32>
    %518 = arith.addf %514, %517 : vector<8x512xf32>
    %519 = vector.extract_strided_slice %518 {offsets = [0, 0], sizes = [8, 128], strides = [1, 1]} : vector<8x512xf32> to vector<8x128xf32>
    %520 = arith.negf %519 : vector<8x128xf32>
    %521 = math.exp %520 : vector<8x128xf32>
    %cst_168 = arith.constant 1.000000e+00 : f32
    %522 = vector.broadcast %cst_168 : f32 to vector<8x128xf32>
    %523 = arith.addf %522, %521 : vector<8x128xf32>
    %524 = arith.divf %522, %523 : vector<8x128xf32>
    %525 = vector.extract_strided_slice %518 {offsets = [0, 128], sizes = [8, 128], strides = [1, 1]} : vector<8x512xf32> to vector<8x128xf32>
    %526 = arith.negf %525 : vector<8x128xf32>
    %527 = math.exp %526 : vector<8x128xf32>
    %cst_169 = arith.constant 1.000000e+00 : f32
    %528 = vector.broadcast %cst_169 : f32 to vector<8x128xf32>
    %529 = arith.addf %528, %527 : vector<8x128xf32>
    %530 = arith.divf %528, %529 : vector<8x128xf32>
    %531 = vector.extract_strided_slice %518 {offsets = [0, 256], sizes = [8, 128], strides = [1, 1]} : vector<8x512xf32> to vector<8x128xf32>
    %532 = math.tanh %531 : vector<8x128xf32>
    %533 = vector.extract_strided_slice %518 {offsets = [0, 384], sizes = [8, 128], strides = [1, 1]} : vector<8x512xf32> to vector<8x128xf32>
    %534 = arith.negf %533 : vector<8x128xf32>
    %535 = math.exp %534 : vector<8x128xf32>
    %cst_170 = arith.constant 1.000000e+00 : f32
    %536 = vector.broadcast %cst_170 : f32 to vector<8x128xf32>
    %537 = arith.addf %536, %535 : vector<8x128xf32>
    %538 = arith.divf %536, %537 : vector<8x128xf32>
    %539 = arith.mulf %530, %466 : vector<8x128xf32>
    %540 = arith.mulf %524, %532 : vector<8x128xf32>
    %541 = arith.addf %539, %540 : vector<8x128xf32>
    %542 = math.tanh %541 : vector<8x128xf32>
    %543 = arith.mulf %538, %542 : vector<8x128xf32>
    %c8_i32_171 = arith.constant 8 : i32
    %544 = arith.muli %c3_i32_160, %c8_i32_171 : i32
    %545 = tpu.assume_multiple %544, 8 : i32
    %546 = arith.index_cast %545 : i32 to index
    %c0_172 = arith.constant 0 : index
    %547 = vector.load %arg13[%546, %c0_172] : memref<64x128xf32, #tpu.memory_space<vmem>>, vector<8x128xf32>
    tpu.vector_store %arg13[%546, %c0_172], %543 {strides = array<i32>} : memref<64x128xf32, #tpu.memory_space<vmem>>, vector<8x128xf32>,
    %548 = arith.truncf %505 : vector<8x128xf32> to vector<8x128xbf16>
    %c1_173 = arith.constant 1 : index
    %c0_174 = arith.constant 0 : index
    %c0_175 = arith.constant 0 : index
    %549 = vector.load %arg6[%c1_173, %c0_174, %c0_175] : memref<2x128x512xbf16, #tpu.memory_space<vmem>>, vector<1x128x512xbf16>
    %550 = vector.shape_cast %549 : vector<1x128x512xbf16> to vector<128x512xbf16>
    %cst_176 = arith.constant dense<0.000000e+00> : vector<8x512xf32>
    %551 = tpu.matmul %548, %550, %cst_176 {dimension_numbers = #tpu.dot_dimension_numbers<[1], [0], [0], [1], [0, 0, 1, 1], [], []>} : vector<8x128xbf16>, vector<128x512xbf16>, vector<8x512xf32> -> vector<8x512xf32>
    %c1_177 = arith.constant 1 : index
    %c0_178 = arith.constant 0 : index
    %c0_179 = arith.constant 0 : index
    %552 = vector.load %arg8[%c1_177, %c0_178, %c0_179] : memref<2x1x512xf32, #tpu.memory_space<vmem>>, vector<1x1x512xf32>
    %553 = vector.shape_cast %552 : vector<1x1x512xf32> to vector<1x512xf32>
    %554 = vector.broadcast %553 : vector<1x512xf32> to vector<8x512xf32>
    %555 = arith.addf %551, %554 : vector<8x512xf32>
    %556 = vector.extract_strided_slice %555 {offsets = [0, 0], sizes = [8, 128], strides = [1, 1]} : vector<8x512xf32> to vector<8x128xf32>
    %557 = arith.negf %556 : vector<8x128xf32>
    %558 = math.exp %557 : vector<8x128xf32>
    %cst_180 = arith.constant 1.000000e+00 : f32
    %559 = vector.broadcast %cst_180 : f32 to vector<8x128xf32>
    %560 = arith.addf %559, %558 : vector<8x128xf32>
    %561 = arith.divf %559, %560 : vector<8x128xf32>
    %562 = vector.extract_strided_slice %555 {offsets = [0, 128], sizes = [8, 128], strides = [1, 1]} : vector<8x512xf32> to vector<8x128xf32>
    %563 = arith.negf %562 : vector<8x128xf32>
    %564 = math.exp %563 : vector<8x128xf32>
    %cst_181 = arith.constant 1.000000e+00 : f32
    %565 = vector.broadcast %cst_181 : f32 to vector<8x128xf32>
    %566 = arith.addf %565, %564 : vector<8x128xf32>
    %567 = arith.divf %565, %566 : vector<8x128xf32>
    %568 = vector.extract_strided_slice %555 {offsets = [0, 256], sizes = [8, 128], strides = [1, 1]} : vector<8x512xf32> to vector<8x128xf32>
    %569 = math.tanh %568 : vector<8x128xf32>
    %570 = vector.extract_strided_slice %555 {offsets = [0, 384], sizes = [8, 128], strides = [1, 1]} : vector<8x512xf32> to vector<8x128xf32>
    %571 = arith.negf %570 : vector<8x128xf32>
    %572 = math.exp %571 : vector<8x128xf32>
    %cst_182 = arith.constant 1.000000e+00 : f32
    %573 = vector.broadcast %cst_182 : f32 to vector<8x128xf32>
    %574 = arith.addf %573, %572 : vector<8x128xf32>
    %575 = arith.divf %573, %574 : vector<8x128xf32>
    %576 = arith.mulf %567, %503 : vector<8x128xf32>
    %577 = arith.mulf %561, %569 : vector<8x128xf32>
    %578 = arith.addf %576, %577 : vector<8x128xf32>
    %579 = math.tanh %578 : vector<8x128xf32>
    %580 = arith.mulf %575, %579 : vector<8x128xf32>
    %c7_i32_183 = arith.constant 7 : i32
    %581 = arith.subi %c7_i32_183, %c3_i32_160 : i32
    %c8_i32_184 = arith.constant 8 : i32
    %582 = arith.muli %581, %c8_i32_184 : i32
    %583 = tpu.assume_multiple %582, 8 : i32
    %584 = arith.index_cast %583 : i32 to index
    %c0_185 = arith.constant 0 : index
    %585 = vector.load %arg14[%584, %c0_185] : memref<64x128xf32, #tpu.memory_space<vmem>>, vector<8x128xf32>
    tpu.vector_store %arg14[%584, %c0_185], %580 {strides = array<i32>} : memref<64x128xf32, #tpu.memory_space<vmem>>, vector<8x128xf32>,
    %c4_i32_186 = arith.constant 4 : i32
    %586 = arith.truncf %543 : vector<8x128xf32> to vector<8x128xbf16>
    %c0_187 = arith.constant 0 : index
    %c0_188 = arith.constant 0 : index
    %c0_189 = arith.constant 0 : index
    %587 = vector.load %arg6[%c0_187, %c0_188, %c0_189] : memref<2x128x512xbf16, #tpu.memory_space<vmem>>, vector<1x128x512xbf16>
    %588 = vector.shape_cast %587 : vector<1x128x512xbf16> to vector<128x512xbf16>
    %cst_190 = arith.constant dense<0.000000e+00> : vector<8x512xf32>
    %589 = tpu.matmul %586, %588, %cst_190 {dimension_numbers = #tpu.dot_dimension_numbers<[1], [0], [0], [1], [0, 0, 1, 1], [], []>} : vector<8x128xbf16>, vector<128x512xbf16>, vector<8x512xf32> -> vector<8x512xf32>
    %c0_191 = arith.constant 0 : index
    %c0_192 = arith.constant 0 : index
    %c0_193 = arith.constant 0 : index
    %590 = vector.load %arg8[%c0_191, %c0_192, %c0_193] : memref<2x1x512xf32, #tpu.memory_space<vmem>>, vector<1x1x512xf32>
    %591 = vector.shape_cast %590 : vector<1x1x512xf32> to vector<1x512xf32>
    %592 = vector.broadcast %591 : vector<1x512xf32> to vector<8x512xf32>
    %593 = arith.addf %589, %592 : vector<8x512xf32>
    %594 = vector.extract_strided_slice %593 {offsets = [0, 0], sizes = [8, 128], strides = [1, 1]} : vector<8x512xf32> to vector<8x128xf32>
    %595 = arith.negf %594 : vector<8x128xf32>
    %596 = math.exp %595 : vector<8x128xf32>
    %cst_194 = arith.constant 1.000000e+00 : f32
    %597 = vector.broadcast %cst_194 : f32 to vector<8x128xf32>
    %598 = arith.addf %597, %596 : vector<8x128xf32>
    %599 = arith.divf %597, %598 : vector<8x128xf32>
    %600 = vector.extract_strided_slice %593 {offsets = [0, 128], sizes = [8, 128], strides = [1, 1]} : vector<8x512xf32> to vector<8x128xf32>
    %601 = arith.negf %600 : vector<8x128xf32>
    %602 = math.exp %601 : vector<8x128xf32>
    %cst_195 = arith.constant 1.000000e+00 : f32
    %603 = vector.broadcast %cst_195 : f32 to vector<8x128xf32>
    %604 = arith.addf %603, %602 : vector<8x128xf32>
    %605 = arith.divf %603, %604 : vector<8x128xf32>
    %606 = vector.extract_strided_slice %593 {offsets = [0, 256], sizes = [8, 128], strides = [1, 1]} : vector<8x512xf32> to vector<8x128xf32>
    %607 = math.tanh %606 : vector<8x128xf32>
    %608 = vector.extract_strided_slice %593 {offsets = [0, 384], sizes = [8, 128], strides = [1, 1]} : vector<8x512xf32> to vector<8x128xf32>
    %609 = arith.negf %608 : vector<8x128xf32>
    %610 = math.exp %609 : vector<8x128xf32>
    %cst_196 = arith.constant 1.000000e+00 : f32
    %611 = vector.broadcast %cst_196 : f32 to vector<8x128xf32>
    %612 = arith.addf %611, %610 : vector<8x128xf32>
    %613 = arith.divf %611, %612 : vector<8x128xf32>
    %614 = arith.mulf %605, %541 : vector<8x128xf32>
    %615 = arith.mulf %599, %607 : vector<8x128xf32>
    %616 = arith.addf %614, %615 : vector<8x128xf32>
    %617 = math.tanh %616 : vector<8x128xf32>
    %618 = arith.mulf %613, %617 : vector<8x128xf32>
    %c8_i32_197 = arith.constant 8 : i32
    %619 = arith.muli %c4_i32_186, %c8_i32_197 : i32
    %620 = tpu.assume_multiple %619, 8 : i32
    %621 = arith.index_cast %620 : i32 to index
    %c0_198 = arith.constant 0 : index
    %622 = vector.load %arg13[%621, %c0_198] : memref<64x128xf32, #tpu.memory_space<vmem>>, vector<8x128xf32>
    tpu.vector_store %arg13[%621, %c0_198], %618 {strides = array<i32>} : memref<64x128xf32, #tpu.memory_space<vmem>>, vector<8x128xf32>,
    %623 = arith.truncf %580 : vector<8x128xf32> to vector<8x128xbf16>
    %c1_199 = arith.constant 1 : index
    %c0_200 = arith.constant 0 : index
    %c0_201 = arith.constant 0 : index
    %624 = vector.load %arg6[%c1_199, %c0_200, %c0_201] : memref<2x128x512xbf16, #tpu.memory_space<vmem>>, vector<1x128x512xbf16>
    %625 = vector.shape_cast %624 : vector<1x128x512xbf16> to vector<128x512xbf16>
    %cst_202 = arith.constant dense<0.000000e+00> : vector<8x512xf32>
    %626 = tpu.matmul %623, %625, %cst_202 {dimension_numbers = #tpu.dot_dimension_numbers<[1], [0], [0], [1], [0, 0, 1, 1], [], []>} : vector<8x128xbf16>, vector<128x512xbf16>, vector<8x512xf32> -> vector<8x512xf32>
    %c1_203 = arith.constant 1 : index
    %c0_204 = arith.constant 0 : index
    %c0_205 = arith.constant 0 : index
    %627 = vector.load %arg8[%c1_203, %c0_204, %c0_205] : memref<2x1x512xf32, #tpu.memory_space<vmem>>, vector<1x1x512xf32>
    %628 = vector.shape_cast %627 : vector<1x1x512xf32> to vector<1x512xf32>
    %629 = vector.broadcast %628 : vector<1x512xf32> to vector<8x512xf32>
    %630 = arith.addf %626, %629 : vector<8x512xf32>
    %631 = vector.extract_strided_slice %630 {offsets = [0, 0], sizes = [8, 128], strides = [1, 1]} : vector<8x512xf32> to vector<8x128xf32>
    %632 = arith.negf %631 : vector<8x128xf32>
    %633 = math.exp %632 : vector<8x128xf32>
    %cst_206 = arith.constant 1.000000e+00 : f32
    %634 = vector.broadcast %cst_206 : f32 to vector<8x128xf32>
    %635 = arith.addf %634, %633 : vector<8x128xf32>
    %636 = arith.divf %634, %635 : vector<8x128xf32>
    %637 = vector.extract_strided_slice %630 {offsets = [0, 128], sizes = [8, 128], strides = [1, 1]} : vector<8x512xf32> to vector<8x128xf32>
    %638 = arith.negf %637 : vector<8x128xf32>
    %639 = math.exp %638 : vector<8x128xf32>
    %cst_207 = arith.constant 1.000000e+00 : f32
    %640 = vector.broadcast %cst_207 : f32 to vector<8x128xf32>
    %641 = arith.addf %640, %639 : vector<8x128xf32>
    %642 = arith.divf %640, %641 : vector<8x128xf32>
    %643 = vector.extract_strided_slice %630 {offsets = [0, 256], sizes = [8, 128], strides = [1, 1]} : vector<8x512xf32> to vector<8x128xf32>
    %644 = math.tanh %643 : vector<8x128xf32>
    %645 = vector.extract_strided_slice %630 {offsets = [0, 384], sizes = [8, 128], strides = [1, 1]} : vector<8x512xf32> to vector<8x128xf32>
    %646 = arith.negf %645 : vector<8x128xf32>
    %647 = math.exp %646 : vector<8x128xf32>
    %cst_208 = arith.constant 1.000000e+00 : f32
    %648 = vector.broadcast %cst_208 : f32 to vector<8x128xf32>
    %649 = arith.addf %648, %647 : vector<8x128xf32>
    %650 = arith.divf %648, %649 : vector<8x128xf32>
    %651 = arith.mulf %642, %578 : vector<8x128xf32>
    %652 = arith.mulf %636, %644 : vector<8x128xf32>
    %653 = arith.addf %651, %652 : vector<8x128xf32>
    %654 = math.tanh %653 : vector<8x128xf32>
    %655 = arith.mulf %650, %654 : vector<8x128xf32>
    %c7_i32_209 = arith.constant 7 : i32
    %656 = arith.subi %c7_i32_209, %c4_i32_186 : i32
    %c8_i32_210 = arith.constant 8 : i32
    %657 = arith.muli %656, %c8_i32_210 : i32
    %658 = tpu.assume_multiple %657, 8 : i32
    %659 = arith.index_cast %658 : i32 to index
    %c0_211 = arith.constant 0 : index
    %660 = vector.load %arg14[%659, %c0_211] : memref<64x128xf32, #tpu.memory_space<vmem>>, vector<8x128xf32>
    tpu.vector_store %arg14[%659, %c0_211], %655 {strides = array<i32>} : memref<64x128xf32, #tpu.memory_space<vmem>>, vector<8x128xf32>,
    %c5_i32_212 = arith.constant 5 : i32
    %661 = arith.truncf %618 : vector<8x128xf32> to vector<8x128xbf16>
    %c0_213 = arith.constant 0 : index
    %c0_214 = arith.constant 0 : index
    %c0_215 = arith.constant 0 : index
    %662 = vector.load %arg6[%c0_213, %c0_214, %c0_215] : memref<2x128x512xbf16, #tpu.memory_space<vmem>>, vector<1x128x512xbf16>
    %663 = vector.shape_cast %662 : vector<1x128x512xbf16> to vector<128x512xbf16>
    %cst_216 = arith.constant dense<0.000000e+00> : vector<8x512xf32>
    %664 = tpu.matmul %661, %663, %cst_216 {dimension_numbers = #tpu.dot_dimension_numbers<[1], [0], [0], [1], [0, 0, 1, 1], [], []>} : vector<8x128xbf16>, vector<128x512xbf16>, vector<8x512xf32> -> vector<8x512xf32>
    %c0_217 = arith.constant 0 : index
    %c0_218 = arith.constant 0 : index
    %c0_219 = arith.constant 0 : index
    %665 = vector.load %arg8[%c0_217, %c0_218, %c0_219] : memref<2x1x512xf32, #tpu.memory_space<vmem>>, vector<1x1x512xf32>
    %666 = vector.shape_cast %665 : vector<1x1x512xf32> to vector<1x512xf32>
    %667 = vector.broadcast %666 : vector<1x512xf32> to vector<8x512xf32>
    %668 = arith.addf %664, %667 : vector<8x512xf32>
    %669 = vector.extract_strided_slice %668 {offsets = [0, 0], sizes = [8, 128], strides = [1, 1]} : vector<8x512xf32> to vector<8x128xf32>
    %670 = arith.negf %669 : vector<8x128xf32>
    %671 = math.exp %670 : vector<8x128xf32>
    %cst_220 = arith.constant 1.000000e+00 : f32
    %672 = vector.broadcast %cst_220 : f32 to vector<8x128xf32>
    %673 = arith.addf %672, %671 : vector<8x128xf32>
    %674 = arith.divf %672, %673 : vector<8x128xf32>
    %675 = vector.extract_strided_slice %668 {offsets = [0, 128], sizes = [8, 128], strides = [1, 1]} : vector<8x512xf32> to vector<8x128xf32>
    %676 = arith.negf %675 : vector<8x128xf32>
    %677 = math.exp %676 : vector<8x128xf32>
    %cst_221 = arith.constant 1.000000e+00 : f32
    %678 = vector.broadcast %cst_221 : f32 to vector<8x128xf32>
    %679 = arith.addf %678, %677 : vector<8x128xf32>
    %680 = arith.divf %678, %679 : vector<8x128xf32>
    %681 = vector.extract_strided_slice %668 {offsets = [0, 256], sizes = [8, 128], strides = [1, 1]} : vector<8x512xf32> to vector<8x128xf32>
    %682 = math.tanh %681 : vector<8x128xf32>
    %683 = vector.extract_strided_slice %668 {offsets = [0, 384], sizes = [8, 128], strides = [1, 1]} : vector<8x512xf32> to vector<8x128xf32>
    %684 = arith.negf %683 : vector<8x128xf32>
    %685 = math.exp %684 : vector<8x128xf32>
    %cst_222 = arith.constant 1.000000e+00 : f32
    %686 = vector.broadcast %cst_222 : f32 to vector<8x128xf32>
    %687 = arith.addf %686, %685 : vector<8x128xf32>
    %688 = arith.divf %686, %687 : vector<8x128xf32>
    %689 = arith.mulf %680, %616 : vector<8x128xf32>
    %690 = arith.mulf %674, %682 : vector<8x128xf32>
    %691 = arith.addf %689, %690 : vector<8x128xf32>
    %692 = math.tanh %691 : vector<8x128xf32>
    %693 = arith.mulf %688, %692 : vector<8x128xf32>
    %c8_i32_223 = arith.constant 8 : i32
    %694 = arith.muli %c5_i32_212, %c8_i32_223 : i32
    %695 = tpu.assume_multiple %694, 8 : i32
    %696 = arith.index_cast %695 : i32 to index
    %c0_224 = arith.constant 0 : index
    %697 = vector.load %arg13[%696, %c0_224] : memref<64x128xf32, #tpu.memory_space<vmem>>, vector<8x128xf32>
    tpu.vector_store %arg13[%696, %c0_224], %693 {strides = array<i32>} : memref<64x128xf32, #tpu.memory_space<vmem>>, vector<8x128xf32>,
    %698 = arith.truncf %655 : vector<8x128xf32> to vector<8x128xbf16>
    %c1_225 = arith.constant 1 : index
    %c0_226 = arith.constant 0 : index
    %c0_227 = arith.constant 0 : index
    %699 = vector.load %arg6[%c1_225, %c0_226, %c0_227] : memref<2x128x512xbf16, #tpu.memory_space<vmem>>, vector<1x128x512xbf16>
    %700 = vector.shape_cast %699 : vector<1x128x512xbf16> to vector<128x512xbf16>
    %cst_228 = arith.constant dense<0.000000e+00> : vector<8x512xf32>
    %701 = tpu.matmul %698, %700, %cst_228 {dimension_numbers = #tpu.dot_dimension_numbers<[1], [0], [0], [1], [0, 0, 1, 1], [], []>} : vector<8x128xbf16>, vector<128x512xbf16>, vector<8x512xf32> -> vector<8x512xf32>
    %c1_229 = arith.constant 1 : index
    %c0_230 = arith.constant 0 : index
    %c0_231 = arith.constant 0 : index
    %702 = vector.load %arg8[%c1_229, %c0_230, %c0_231] : memref<2x1x512xf32, #tpu.memory_space<vmem>>, vector<1x1x512xf32>
    %703 = vector.shape_cast %702 : vector<1x1x512xf32> to vector<1x512xf32>
    %704 = vector.broadcast %703 : vector<1x512xf32> to vector<8x512xf32>
    %705 = arith.addf %701, %704 : vector<8x512xf32>
    %706 = vector.extract_strided_slice %705 {offsets = [0, 0], sizes = [8, 128], strides = [1, 1]} : vector<8x512xf32> to vector<8x128xf32>
    %707 = arith.negf %706 : vector<8x128xf32>
    %708 = math.exp %707 : vector<8x128xf32>
    %cst_232 = arith.constant 1.000000e+00 : f32
    %709 = vector.broadcast %cst_232 : f32 to vector<8x128xf32>
    %710 = arith.addf %709, %708 : vector<8x128xf32>
    %711 = arith.divf %709, %710 : vector<8x128xf32>
    %712 = vector.extract_strided_slice %705 {offsets = [0, 128], sizes = [8, 128], strides = [1, 1]} : vector<8x512xf32> to vector<8x128xf32>
    %713 = arith.negf %712 : vector<8x128xf32>
    %714 = math.exp %713 : vector<8x128xf32>
    %cst_233 = arith.constant 1.000000e+00 : f32
    %715 = vector.broadcast %cst_233 : f32 to vector<8x128xf32>
    %716 = arith.addf %715, %714 : vector<8x128xf32>
    %717 = arith.divf %715, %716 : vector<8x128xf32>
    %718 = vector.extract_strided_slice %705 {offsets = [0, 256], sizes = [8, 128], strides = [1, 1]} : vector<8x512xf32> to vector<8x128xf32>
    %719 = math.tanh %718 : vector<8x128xf32>
    %720 = vector.extract_strided_slice %705 {offsets = [0, 384], sizes = [8, 128], strides = [1, 1]} : vector<8x512xf32> to vector<8x128xf32>
    %721 = arith.negf %720 : vector<8x128xf32>
    %722 = math.exp %721 : vector<8x128xf32>
    %cst_234 = arith.constant 1.000000e+00 : f32
    %723 = vector.broadcast %cst_234 : f32 to vector<8x128xf32>
    %724 = arith.addf %723, %722 : vector<8x128xf32>
    %725 = arith.divf %723, %724 : vector<8x128xf32>
    %726 = arith.mulf %717, %653 : vector<8x128xf32>
    %727 = arith.mulf %711, %719 : vector<8x128xf32>
    %728 = arith.addf %726, %727 : vector<8x128xf32>
    %729 = math.tanh %728 : vector<8x128xf32>
    %730 = arith.mulf %725, %729 : vector<8x128xf32>
    %c7_i32_235 = arith.constant 7 : i32
    %731 = arith.subi %c7_i32_235, %c5_i32_212 : i32
    %c8_i32_236 = arith.constant 8 : i32
    %732 = arith.muli %731, %c8_i32_236 : i32
    %733 = tpu.assume_multiple %732, 8 : i32
    %734 = arith.index_cast %733 : i32 to index
    %c0_237 = arith.constant 0 : index
    %735 = vector.load %arg14[%734, %c0_237] : memref<64x128xf32, #tpu.memory_space<vmem>>, vector<8x128xf32>
    tpu.vector_store %arg14[%734, %c0_237], %730 {strides = array<i32>} : memref<64x128xf32, #tpu.memory_space<vmem>>, vector<8x128xf32>,
    %c6_i32_238 = arith.constant 6 : i32
    %736 = arith.truncf %693 : vector<8x128xf32> to vector<8x128xbf16>
    %c0_239 = arith.constant 0 : index
    %c0_240 = arith.constant 0 : index
    %c0_241 = arith.constant 0 : index
    %737 = vector.load %arg6[%c0_239, %c0_240, %c0_241] : memref<2x128x512xbf16, #tpu.memory_space<vmem>>, vector<1x128x512xbf16>
    %738 = vector.shape_cast %737 : vector<1x128x512xbf16> to vector<128x512xbf16>
    %cst_242 = arith.constant dense<0.000000e+00> : vector<8x512xf32>
    %739 = tpu.matmul %736, %738, %cst_242 {dimension_numbers = #tpu.dot_dimension_numbers<[1], [0], [0], [1], [0, 0, 1, 1], [], []>} : vector<8x128xbf16>, vector<128x512xbf16>, vector<8x512xf32> -> vector<8x512xf32>
    %c0_243 = arith.constant 0 : index
    %c0_244 = arith.constant 0 : index
    %c0_245 = arith.constant 0 : index
    %740 = vector.load %arg8[%c0_243, %c0_244, %c0_245] : memref<2x1x512xf32, #tpu.memory_space<vmem>>, vector<1x1x512xf32>
    %741 = vector.shape_cast %740 : vector<1x1x512xf32> to vector<1x512xf32>
    %742 = vector.broadcast %741 : vector<1x512xf32> to vector<8x512xf32>
    %743 = arith.addf %739, %742 : vector<8x512xf32>
    %744 = vector.extract_strided_slice %743 {offsets = [0, 0], sizes = [8, 128], strides = [1, 1]} : vector<8x512xf32> to vector<8x128xf32>
    %745 = arith.negf %744 : vector<8x128xf32>
    %746 = math.exp %745 : vector<8x128xf32>
    %cst_246 = arith.constant 1.000000e+00 : f32
    %747 = vector.broadcast %cst_246 : f32 to vector<8x128xf32>
    %748 = arith.addf %747, %746 : vector<8x128xf32>
    %749 = arith.divf %747, %748 : vector<8x128xf32>
    %750 = vector.extract_strided_slice %743 {offsets = [0, 128], sizes = [8, 128], strides = [1, 1]} : vector<8x512xf32> to vector<8x128xf32>
    %751 = arith.negf %750 : vector<8x128xf32>
    %752 = math.exp %751 : vector<8x128xf32>
    %cst_247 = arith.constant 1.000000e+00 : f32
    %753 = vector.broadcast %cst_247 : f32 to vector<8x128xf32>
    %754 = arith.addf %753, %752 : vector<8x128xf32>
    %755 = arith.divf %753, %754 : vector<8x128xf32>
    %756 = vector.extract_strided_slice %743 {offsets = [0, 256], sizes = [8, 128], strides = [1, 1]} : vector<8x512xf32> to vector<8x128xf32>
    %757 = math.tanh %756 : vector<8x128xf32>
    %758 = vector.extract_strided_slice %743 {offsets = [0, 384], sizes = [8, 128], strides = [1, 1]} : vector<8x512xf32> to vector<8x128xf32>
    %759 = arith.negf %758 : vector<8x128xf32>
    %760 = math.exp %759 : vector<8x128xf32>
    %cst_248 = arith.constant 1.000000e+00 : f32
    %761 = vector.broadcast %cst_248 : f32 to vector<8x128xf32>
    %762 = arith.addf %761, %760 : vector<8x128xf32>
    %763 = arith.divf %761, %762 : vector<8x128xf32>
    %764 = arith.mulf %755, %691 : vector<8x128xf32>
    %765 = arith.mulf %749, %757 : vector<8x128xf32>
    %766 = arith.addf %764, %765 : vector<8x128xf32>
    %767 = math.tanh %766 : vector<8x128xf32>
    %768 = arith.mulf %763, %767 : vector<8x128xf32>
    %c8_i32_249 = arith.constant 8 : i32
    %769 = arith.muli %c6_i32_238, %c8_i32_249 : i32
    %770 = tpu.assume_multiple %769, 8 : i32
    %771 = arith.index_cast %770 : i32 to index
    %c0_250 = arith.constant 0 : index
    %772 = vector.load %arg13[%771, %c0_250] : memref<64x128xf32, #tpu.memory_space<vmem>>, vector<8x128xf32>
    tpu.vector_store %arg13[%771, %c0_250], %768 {strides = array<i32>} : memref<64x128xf32, #tpu.memory_space<vmem>>, vector<8x128xf32>,
    %773 = arith.truncf %730 : vector<8x128xf32> to vector<8x128xbf16>
    %c1_251 = arith.constant 1 : index
    %c0_252 = arith.constant 0 : index
    %c0_253 = arith.constant 0 : index
    %774 = vector.load %arg6[%c1_251, %c0_252, %c0_253] : memref<2x128x512xbf16, #tpu.memory_space<vmem>>, vector<1x128x512xbf16>
    %775 = vector.shape_cast %774 : vector<1x128x512xbf16> to vector<128x512xbf16>
    %cst_254 = arith.constant dense<0.000000e+00> : vector<8x512xf32>
    %776 = tpu.matmul %773, %775, %cst_254 {dimension_numbers = #tpu.dot_dimension_numbers<[1], [0], [0], [1], [0, 0, 1, 1], [], []>} : vector<8x128xbf16>, vector<128x512xbf16>, vector<8x512xf32> -> vector<8x512xf32>
    %c1_255 = arith.constant 1 : index
    %c0_256 = arith.constant 0 : index
    %c0_257 = arith.constant 0 : index
    %777 = vector.load %arg8[%c1_255, %c0_256, %c0_257] : memref<2x1x512xf32, #tpu.memory_space<vmem>>, vector<1x1x512xf32>
    %778 = vector.shape_cast %777 : vector<1x1x512xf32> to vector<1x512xf32>
    %779 = vector.broadcast %778 : vector<1x512xf32> to vector<8x512xf32>
    %780 = arith.addf %776, %779 : vector<8x512xf32>
    %781 = vector.extract_strided_slice %780 {offsets = [0, 0], sizes = [8, 128], strides = [1, 1]} : vector<8x512xf32> to vector<8x128xf32>
    %782 = arith.negf %781 : vector<8x128xf32>
    %783 = math.exp %782 : vector<8x128xf32>
    %cst_258 = arith.constant 1.000000e+00 : f32
    %784 = vector.broadcast %cst_258 : f32 to vector<8x128xf32>
    %785 = arith.addf %784, %783 : vector<8x128xf32>
    %786 = arith.divf %784, %785 : vector<8x128xf32>
    %787 = vector.extract_strided_slice %780 {offsets = [0, 128], sizes = [8, 128], strides = [1, 1]} : vector<8x512xf32> to vector<8x128xf32>
    %788 = arith.negf %787 : vector<8x128xf32>
    %789 = math.exp %788 : vector<8x128xf32>
    %cst_259 = arith.constant 1.000000e+00 : f32
    %790 = vector.broadcast %cst_259 : f32 to vector<8x128xf32>
    %791 = arith.addf %790, %789 : vector<8x128xf32>
    %792 = arith.divf %790, %791 : vector<8x128xf32>
    %793 = vector.extract_strided_slice %780 {offsets = [0, 256], sizes = [8, 128], strides = [1, 1]} : vector<8x512xf32> to vector<8x128xf32>
    %794 = math.tanh %793 : vector<8x128xf32>
    %795 = vector.extract_strided_slice %780 {offsets = [0, 384], sizes = [8, 128], strides = [1, 1]} : vector<8x512xf32> to vector<8x128xf32>
    %796 = arith.negf %795 : vector<8x128xf32>
    %797 = math.exp %796 : vector<8x128xf32>
    %cst_260 = arith.constant 1.000000e+00 : f32
    %798 = vector.broadcast %cst_260 : f32 to vector<8x128xf32>
    %799 = arith.addf %798, %797 : vector<8x128xf32>
    %800 = arith.divf %798, %799 : vector<8x128xf32>
    %801 = arith.mulf %792, %728 : vector<8x128xf32>
    %802 = arith.mulf %786, %794 : vector<8x128xf32>
    %803 = arith.addf %801, %802 : vector<8x128xf32>
    %804 = math.tanh %803 : vector<8x128xf32>
    %805 = arith.mulf %800, %804 : vector<8x128xf32>
    %c7_i32_261 = arith.constant 7 : i32
    %806 = arith.subi %c7_i32_261, %c6_i32_238 : i32
    %c8_i32_262 = arith.constant 8 : i32
    %807 = arith.muli %806, %c8_i32_262 : i32
    %808 = tpu.assume_multiple %807, 8 : i32
    %809 = arith.index_cast %808 : i32 to index
    %c0_263 = arith.constant 0 : index
    %810 = vector.load %arg14[%809, %c0_263] : memref<64x128xf32, #tpu.memory_space<vmem>>, vector<8x128xf32>
    tpu.vector_store %arg14[%809, %c0_263], %805 {strides = array<i32>} : memref<64x128xf32, #tpu.memory_space<vmem>>, vector<8x128xf32>,
    %c7_i32_264 = arith.constant 7 : i32
    %811 = arith.truncf %768 : vector<8x128xf32> to vector<8x128xbf16>
    %c0_265 = arith.constant 0 : index
    %c0_266 = arith.constant 0 : index
    %c0_267 = arith.constant 0 : index
    %812 = vector.load %arg6[%c0_265, %c0_266, %c0_267] : memref<2x128x512xbf16, #tpu.memory_space<vmem>>, vector<1x128x512xbf16>
    %813 = vector.shape_cast %812 : vector<1x128x512xbf16> to vector<128x512xbf16>
    %cst_268 = arith.constant dense<0.000000e+00> : vector<8x512xf32>
    %814 = tpu.matmul %811, %813, %cst_268 {dimension_numbers = #tpu.dot_dimension_numbers<[1], [0], [0], [1], [0, 0, 1, 1], [], []>} : vector<8x128xbf16>, vector<128x512xbf16>, vector<8x512xf32> -> vector<8x512xf32>
    %c0_269 = arith.constant 0 : index
    %c0_270 = arith.constant 0 : index
    %c0_271 = arith.constant 0 : index
    %815 = vector.load %arg8[%c0_269, %c0_270, %c0_271] : memref<2x1x512xf32, #tpu.memory_space<vmem>>, vector<1x1x512xf32>
    %816 = vector.shape_cast %815 : vector<1x1x512xf32> to vector<1x512xf32>
    %817 = vector.broadcast %816 : vector<1x512xf32> to vector<8x512xf32>
    %818 = arith.addf %814, %817 : vector<8x512xf32>
    %819 = vector.extract_strided_slice %818 {offsets = [0, 0], sizes = [8, 128], strides = [1, 1]} : vector<8x512xf32> to vector<8x128xf32>
    %820 = arith.negf %819 : vector<8x128xf32>
    %821 = math.exp %820 : vector<8x128xf32>
    %cst_272 = arith.constant 1.000000e+00 : f32
    %822 = vector.broadcast %cst_272 : f32 to vector<8x128xf32>
    %823 = arith.addf %822, %821 : vector<8x128xf32>
    %824 = arith.divf %822, %823 : vector<8x128xf32>
    %825 = vector.extract_strided_slice %818 {offsets = [0, 128], sizes = [8, 128], strides = [1, 1]} : vector<8x512xf32> to vector<8x128xf32>
    %826 = arith.negf %825 : vector<8x128xf32>
    %827 = math.exp %826 : vector<8x128xf32>
    %cst_273 = arith.constant 1.000000e+00 : f32
    %828 = vector.broadcast %cst_273 : f32 to vector<8x128xf32>
    %829 = arith.addf %828, %827 : vector<8x128xf32>
    %830 = arith.divf %828, %829 : vector<8x128xf32>
    %831 = vector.extract_strided_slice %818 {offsets = [0, 256], sizes = [8, 128], strides = [1, 1]} : vector<8x512xf32> to vector<8x128xf32>
    %832 = math.tanh %831 : vector<8x128xf32>
    %833 = vector.extract_strided_slice %818 {offsets = [0, 384], sizes = [8, 128], strides = [1, 1]} : vector<8x512xf32> to vector<8x128xf32>
    %834 = arith.negf %833 : vector<8x128xf32>
    %835 = math.exp %834 : vector<8x128xf32>
    %cst_274 = arith.constant 1.000000e+00 : f32
    %836 = vector.broadcast %cst_274 : f32 to vector<8x128xf32>
    %837 = arith.addf %836, %835 : vector<8x128xf32>
    %838 = arith.divf %836, %837 : vector<8x128xf32>
    %839 = arith.mulf %830, %766 : vector<8x128xf32>
    %840 = arith.mulf %824, %832 : vector<8x128xf32>
    %841 = arith.addf %839, %840 : vector<8x128xf32>
    %842 = math.tanh %841 : vector<8x128xf32>
    %843 = arith.mulf %838, %842 : vector<8x128xf32>
    %c8_i32_275 = arith.constant 8 : i32
    %844 = arith.muli %c7_i32_264, %c8_i32_275 : i32
    %845 = tpu.assume_multiple %844, 8 : i32
    %846 = arith.index_cast %845 : i32 to index
    %c0_276 = arith.constant 0 : index
    %847 = vector.load %arg13[%846, %c0_276] : memref<64x128xf32, #tpu.memory_space<vmem>>, vector<8x128xf32>
    tpu.vector_store %arg13[%846, %c0_276], %843 {strides = array<i32>} : memref<64x128xf32, #tpu.memory_space<vmem>>, vector<8x128xf32>,
    %848 = arith.truncf %805 : vector<8x128xf32> to vector<8x128xbf16>
    %c1_277 = arith.constant 1 : index
    %c0_278 = arith.constant 0 : index
    %c0_279 = arith.constant 0 : index
    %849 = vector.load %arg6[%c1_277, %c0_278, %c0_279] : memref<2x128x512xbf16, #tpu.memory_space<vmem>>, vector<1x128x512xbf16>
    %850 = vector.shape_cast %849 : vector<1x128x512xbf16> to vector<128x512xbf16>
    %cst_280 = arith.constant dense<0.000000e+00> : vector<8x512xf32>
    %851 = tpu.matmul %848, %850, %cst_280 {dimension_numbers = #tpu.dot_dimension_numbers<[1], [0], [0], [1], [0, 0, 1, 1], [], []>} : vector<8x128xbf16>, vector<128x512xbf16>, vector<8x512xf32> -> vector<8x512xf32>
    %c1_281 = arith.constant 1 : index
    %c0_282 = arith.constant 0 : index
    %c0_283 = arith.constant 0 : index
    %852 = vector.load %arg8[%c1_281, %c0_282, %c0_283] : memref<2x1x512xf32, #tpu.memory_space<vmem>>, vector<1x1x512xf32>
    %853 = vector.shape_cast %852 : vector<1x1x512xf32> to vector<1x512xf32>
    %854 = vector.broadcast %853 : vector<1x512xf32> to vector<8x512xf32>
    %855 = arith.addf %851, %854 : vector<8x512xf32>
    %856 = vector.extract_strided_slice %855 {offsets = [0, 0], sizes = [8, 128], strides = [1, 1]} : vector<8x512xf32> to vector<8x128xf32>
    %857 = arith.negf %856 : vector<8x128xf32>
    %858 = math.exp %857 : vector<8x128xf32>
    %cst_284 = arith.constant 1.000000e+00 : f32
    %859 = vector.broadcast %cst_284 : f32 to vector<8x128xf32>
    %860 = arith.addf %859, %858 : vector<8x128xf32>
    %861 = arith.divf %859, %860 : vector<8x128xf32>
    %862 = vector.extract_strided_slice %855 {offsets = [0, 128], sizes = [8, 128], strides = [1, 1]} : vector<8x512xf32> to vector<8x128xf32>
    %863 = arith.negf %862 : vector<8x128xf32>
    %864 = math.exp %863 : vector<8x128xf32>
    %cst_285 = arith.constant 1.000000e+00 : f32
    %865 = vector.broadcast %cst_285 : f32 to vector<8x128xf32>
    %866 = arith.addf %865, %864 : vector<8x128xf32>
    %867 = arith.divf %865, %866 : vector<8x128xf32>
    %868 = vector.extract_strided_slice %855 {offsets = [0, 256], sizes = [8, 128], strides = [1, 1]} : vector<8x512xf32> to vector<8x128xf32>
    %869 = math.tanh %868 : vector<8x128xf32>
    %870 = vector.extract_strided_slice %855 {offsets = [0, 384], sizes = [8, 128], strides = [1, 1]} : vector<8x512xf32> to vector<8x128xf32>
    %871 = arith.negf %870 : vector<8x128xf32>
    %872 = math.exp %871 : vector<8x128xf32>
    %cst_286 = arith.constant 1.000000e+00 : f32
    %873 = vector.broadcast %cst_286 : f32 to vector<8x128xf32>
    %874 = arith.addf %873, %872 : vector<8x128xf32>
    %875 = arith.divf %873, %874 : vector<8x128xf32>
    %876 = arith.mulf %867, %803 : vector<8x128xf32>
    %877 = arith.mulf %861, %869 : vector<8x128xf32>
    %878 = arith.addf %876, %877 : vector<8x128xf32>
    %879 = math.tanh %878 : vector<8x128xf32>
    %880 = arith.mulf %875, %879 : vector<8x128xf32>
    %c7_i32_287 = arith.constant 7 : i32
    %881 = arith.subi %c7_i32_287, %c7_i32_264 : i32
    %c8_i32_288 = arith.constant 8 : i32
    %882 = arith.muli %881, %c8_i32_288 : i32
    %883 = tpu.assume_multiple %882, 8 : i32
    %884 = arith.index_cast %883 : i32 to index
    %c0_289 = arith.constant 0 : index
    %885 = vector.load %arg14[%884, %c0_289] : memref<64x128xf32, #tpu.memory_space<vmem>>, vector<8x128xf32>
    tpu.vector_store %arg14[%884, %c0_289], %880 {strides = array<i32>} : memref<64x128xf32, #tpu.memory_space<vmem>>, vector<8x128xf32>,
    %c7_i32_290 = arith.constant 7 : i32
    %886 = tpu.iota {dimensions = array<i32: 0>} : vector<64x128xi32>
    %c7_i32_291 = arith.constant 7 : i32
    %887 = vector.broadcast %c7_i32_291 : i32 to vector<64x128xi32>
    %888 = arith.andi %886, %887 : vector<64x128xi32>
    %889 = tpu.iota {dimensions = array<i32: 1>} : vector<64x128xi32>
    %c2_i32_292 = arith.constant 2 : i32
    %890 = vector.broadcast %c2_i32_292 : i32 to vector<64x128xi32>
    %891 = arith.cmpi slt, %888, %890 : vector<64x128xi32>
    %c16_i32 = arith.constant 16 : i32
    %892 = vector.broadcast %c16_i32 : i32 to vector<64x128xi32>
    %893 = arith.cmpi slt, %889, %892 : vector<64x128xi32>
    %894 = arith.andi %891, %893 : vector<64x128xi1>
    %c0_293 = arith.constant 0 : index
    %c0_294 = arith.constant 0 : index
    %895 = vector.load %arg13[%c0_293, %c0_294] : memref<64x128xf32, #tpu.memory_space<vmem>>, vector<64x128xf32>
    %896 = arith.truncf %895 : vector<64x128xf32> to vector<64x128xbf16>
    %c0_295 = arith.constant 0 : index
    %c0_296 = arith.constant 0 : index
    %c0_297 = arith.constant 0 : index
    %897 = vector.load %arg9[%c0_295, %c0_296, %c0_297] : memref<2x128x128xbf16, #tpu.memory_space<vmem>>, vector<1x128x128xbf16>
    %898 = vector.shape_cast %897 : vector<1x128x128xbf16> to vector<128x128xbf16>
    %cst_298 = arith.constant dense<0.000000e+00> : vector<64x128xf32>
    %899 = tpu.matmul %896, %898, %cst_298 {dimension_numbers = #tpu.dot_dimension_numbers<[1], [0], [0], [1], [0, 0, 1, 1], [], []>} : vector<64x128xbf16>, vector<128x128xbf16>, vector<64x128xf32> -> vector<64x128xf32>
    %c0_299 = arith.constant 0 : index
    %c0_300 = arith.constant 0 : index
    %c0_301 = arith.constant 0 : index
    %900 = vector.load %arg10[%c0_299, %c0_300, %c0_301] : memref<2x1x128xf32, #tpu.memory_space<vmem>>, vector<1x1x128xf32>
    %901 = vector.shape_cast %900 : vector<1x1x128xf32> to vector<1x128xf32>
    %902 = vector.broadcast %901 : vector<1x128xf32> to vector<64x128xf32>
    %903 = arith.addf %899, %902 : vector<64x128xf32>
    %c0_302 = arith.constant 0 : index
    %c0_303 = arith.constant 0 : index
    %904 = vector.load %arg1[%c0_302, %c0_303] : memref<64x128xf32, #tpu.memory_space<vmem>>, vector<64x128xf32>
    %905 = arith.subf %903, %904 : vector<64x128xf32>
    %cst_304 = arith.constant 0.000000e+00 : f32
    %906 = vector.broadcast %cst_304 : f32 to vector<64x128xf32>
    %907 = arith.select %894, %905, %906 : vector<64x128xi1>, vector<64x128xf32>
    %c0_305 = arith.constant 0 : index
    %c0_306 = arith.constant 0 : index
    %908 = vector.load %arg14[%c0_305, %c0_306] : memref<64x128xf32, #tpu.memory_space<vmem>>, vector<64x128xf32>
    %909 = arith.truncf %908 : vector<64x128xf32> to vector<64x128xbf16>
    %c1_307 = arith.constant 1 : index
    %c0_308 = arith.constant 0 : index
    %c0_309 = arith.constant 0 : index
    %910 = vector.load %arg9[%c1_307, %c0_308, %c0_309] : memref<2x128x128xbf16, #tpu.memory_space<vmem>>, vector<1x128x128xbf16>
    %911 = vector.shape_cast %910 : vector<1x128x128xbf16> to vector<128x128xbf16>
    %cst_310 = arith.constant dense<0.000000e+00> : vector<64x128xf32>
    %912 = tpu.matmul %909, %911, %cst_310 {dimension_numbers = #tpu.dot_dimension_numbers<[1], [0], [0], [1], [0, 0, 1, 1], [], []>} : vector<64x128xbf16>, vector<128x128xbf16>, vector<64x128xf32> -> vector<64x128xf32>
    %c1_311 = arith.constant 1 : index
    %c0_312 = arith.constant 0 : index
    %c0_313 = arith.constant 0 : index
    %913 = vector.load %arg10[%c1_311, %c0_312, %c0_313] : memref<2x1x128xf32, #tpu.memory_space<vmem>>, vector<1x1x128xf32>
    %914 = vector.shape_cast %913 : vector<1x1x128xf32> to vector<1x128xf32>
    %915 = vector.broadcast %914 : vector<1x128xf32> to vector<64x128xf32>
    %916 = arith.addf %912, %915 : vector<64x128xf32>
    %c0_314 = arith.constant 0 : index
    %c0_315 = arith.constant 0 : index
    %917 = vector.load %arg0[%c0_314, %c0_315] : memref<64x128xf32, #tpu.memory_space<vmem>>, vector<64x128xf32>
    %918 = arith.subf %916, %917 : vector<64x128xf32>
    %cst_316 = arith.constant 0.000000e+00 : f32
    %919 = vector.broadcast %cst_316 : f32 to vector<64x128xf32>
    %920 = arith.select %894, %918, %919 : vector<64x128xi1>, vector<64x128xf32>
    %921 = arith.mulf %920, %920 : vector<64x128xf32>
    %922 = vector.shape_cast %921 : vector<64x128xf32> to vector<1x64x128xf32>
    %cst_317 = arith.constant dense<0.000000e+00> : vector<1xf32>
    %923 = vector.multi_reduction <add>, %922, %cst_317 [1, 2] : vector<1x64x128xf32> to vector<1xf32>
    %924 = vector.shape_cast %923 : vector<1xf32> to vector<1x1x1xf32>
    %925 = vector.extract %924[0, 0, 0] : f32 from vector<1x1x1xf32>
    %cst_318 = arith.constant 3.906250e-03 : f32
    %926 = arith.mulf %925, %cst_318 : f32
    %c0_319 = arith.constant 0 : index
    %c0_320 = arith.constant 0 : index
    %927 = memref.load %arg11[%c0_319, %c0_320] : memref<1x2xf32, #tpu.memory_space<smem>>
    memref.store %926, %arg11[%c0_319, %c0_320] : memref<1x2xf32, #tpu.memory_space<smem>>
    %928 = arith.mulf %907, %907 : vector<64x128xf32>
    %929 = vector.shape_cast %928 : vector<64x128xf32> to vector<1x64x128xf32>
    %cst_321 = arith.constant dense<0.000000e+00> : vector<1xf32>
    %930 = vector.multi_reduction <add>, %929, %cst_321 [1, 2] : vector<1x64x128xf32> to vector<1xf32>
    %931 = vector.shape_cast %930 : vector<1xf32> to vector<1x1x1xf32>
    %932 = vector.extract %931[0, 0, 0] : f32 from vector<1x1x1xf32>
    %cst_322 = arith.constant 3.906250e-03 : f32
    %933 = arith.mulf %932, %cst_322 : f32
    %c0_323 = arith.constant 0 : index
    %c1_324 = arith.constant 1 : index
    %934 = memref.load %arg11[%c0_323, %c1_324] : memref<1x2xf32, #tpu.memory_space<smem>>
    memref.store %933, %arg11[%c0_323, %c1_324] : memref<1x2xf32, #tpu.memory_space<smem>>
    return
  }
}

</mosaic_0001>

<bundles_post_ra>
// kernel: seq2seq_forward.1
= control target key start
LH: loop header
LB: loop body
LE: loop exit
PB: predicated region body
PF: predicated region fallthrough
CT: control target
= control target key end

     0   :  { %v12455_v2 = vmov 0   ;;  %s12442_s0 = inlined_call_operand.vmem [shape: f32[64,128], index: 0, kind: input, shape index: {}]   ;;  %s12443_s1 = inlined_call_operand.vmem [shape: f32[64,128], index: 1, kind: input, shape index: {}]   ;;  %s12444_s2 = inlined_call_operand.vmem [shape: bf16[128,512], index: 2, kind: input, shape index: {}]   ;;  %s12445_s3 = inlined_call_operand.vmem [shape: bf16[128,512], index: 3, kind: input, shape index: {}]   ;;  %s12446_s4 = inlined_call_operand.vmem [shape: f32[1,512], index: 4, kind: input, shape index: {}]   ;;  %s12447_s5 = inlined_call_operand.vmem [shape: bf16[2,128,512], index: 5, kind: input, shape index: {}]   ;;  %s12448_s6 = inlined_call_operand.vmem [shape: bf16[2,128,512], index: 6, kind: input, shape index: {}]   ;;  %s12449_s7 = inlined_call_operand.vmem [shape: f32[2,1,512], index: 7, kind: input, shape index: {}]   ;;  %s12450_s8 = inlined_call_operand.vmem [shape: f32[2,1,512], index: 8, kind: input, shape index: {}]   ;;  %s12451_s9 = inlined_call_operand.vmem [shape: bf16[2,128,128], index: 9, kind: input, shape index: {}]   ;;  %s12452_s10 = inlined_call_operand.vmem [shape: f32[2,1,128], index: 10, kind: input, shape index: {}]   ;;  %s12453_s11 = inlined_call_operand.vmem [shape: f32[1,2], index: 11, kind: output, shape index: {}]  }
   0x1   :  { %v8262_v0 = vld [vmem:[%s12444_s2 + $0x4] ss:$16 sps:$4 sm:$0xff]   ;;  %v8264_v1 = vld [vmem:[%s12444_s2 + $0xc] ss:$16 sps:$4 sm:$0xff]   ;;  %276 = vmatprep.mubr.bf16.mxu0 %v12455_v2  ;;  %349 = vmatprep.mubr.bf16.mxu1 %v12455_v2  ;;  %v8266_v3 = vld [vmem:[%s12444_s2] ss:$16 sps:$4 sm:$0xff]  }
   0x2   :  { %244 = vmatprep.subr.bf16.mxu0 %v8262_v0  ;;  %v8267_v4 = vld [vmem:[%s12444_s2 + $0x8] ss:$16 sps:$4 sm:$0xff]   ;;  %317 = vmatprep.subr.bf16.mxu1 %v8264_v1  ;;  %v8268_v5 = vld [vmem:[%s12444_s2 + $0x24] ss:$16 sps:$4 sm:$0xff]   ;;  %v8270_v6 = vld [vmem:[%s12444_s2 + $0x2c] ss:$16 sps:$4 sm:$0xff]  }
   0x3   :  { %245 = vmatpush1.bf16.msra.mxu0 %v8266_v3  ;;  %318 = vmatpush1.bf16.msra.mxu1 %v8267_v4  ;;  %v8272_v7 = vld [vmem:[%s12444_s2 + $0x20] ss:$16 sps:$4 sm:$0xff]   ;;  %v8273_v8 = vld [vmem:[%s12444_s2 + $0x28] ss:$16 sps:$4 sm:$0xff]   ;;  %v8274_v9 = vld [vmem:[%s12444_s2 + $0x44] ss:$16 sps:$4 sm:$0xff]  }
   0x4   :  { %246 = vmatprep.subr.bf16.mxu0 %v8268_v5  ;;  %319 = vmatprep.subr.bf16.mxu1 %v8270_v6  ;;  %v8276_v10 = vld [vmem:[%s12444_s2 + $0x4c] ss:$16 sps:$4 sm:$0xff]   ;;  %v8278_v11 = vld [vmem:[%s12444_s2 + $0x40] ss:$16 sps:$4 sm:$0xff]   ;;  %v8279_v12 = vld [vmem:[%s12444_s2 + $0x48] ss:$16 sps:$4 sm:$0xff]  }
   0x5   :  { %v8280_v13 = vld [vmem:[%s12444_s2 + $0x64] ss:$16 sps:$4 sm:$0xff]   ;;  %v8282_v14 = vld [vmem:[%s12444_s2 + $0x6c] ss:$16 sps:$4 sm:$0xff]   ;;  %v8284_v15 = vld [vmem:[%s12444_s2 + $0x60] ss:$16 sps:$4 sm:$0xff]  }
   0x6   :  { %v8285_v16 = vld [vmem:[%s12444_s2 + $0x68] ss:$16 sps:$4 sm:$0xff]   ;;  %v8286_v17 = vld [vmem:[%s12444_s2 + $0x84] ss:$16 sps:$4 sm:$0xff]   ;;  %v8288_v18 = vld [vmem:[%s12444_s2 + $0x8c] ss:$16 sps:$4 sm:$0xff]  }
   0x7   :  { %247 = vmatpush1.bf16.msra.mxu0 %v8272_v7  ;;  %320 = vmatpush1.bf16.msra.mxu1 %v8273_v8  ;;  %v8290_v19 = vld [vmem:[%s12444_s2 + $0x80] ss:$16 sps:$4 sm:$0xff]   ;;  %v8291_v20 = vld [vmem:[%s12444_s2 + $0x88] ss:$16 sps:$4 sm:$0xff]   ;;  %v8292_v21 = vld [vmem:[%s12444_s2 + $0xa4] ss:$16 sps:$4 sm:$0xff]  }
   0x8   :  { %248 = vmatprep.subr.bf16.mxu0 %v8274_v9  ;;  %321 = vmatprep.subr.bf16.mxu1 %v8276_v10  ;;  %v8294_v22 = vld [vmem:[%s12444_s2 + $0xac] ss:$16 sps:$4 sm:$0xff]   ;;  %v8296_v23 = vld [vmem:[%s12444_s2 + $0xa0] ss:$16 sps:$4 sm:$0xff]   ;;  %v8297_v24 = vld [vmem:[%s12444_s2 + $0xa8] ss:$16 sps:$4 sm:$0xff]  }
   0x9   :  { %v8298_v25 = vld [vmem:[%s12444_s2 + $0xc4] ss:$16 sps:$4 sm:$0xff]   ;;  %v8300_v26 = vld [vmem:[%s12444_s2 + $0xcc] ss:$16 sps:$4 sm:$0xff]   ;;  %v8302_v27 = vld [vmem:[%s12444_s2 + $0xc0] ss:$16 sps:$4 sm:$0xff]  }
   0xa   :  { %v8303_v28 = vld [vmem:[%s12444_s2 + $0xc8] ss:$16 sps:$4 sm:$0xff]   ;;  %v8304_v29 = vld [vmem:[%s12444_s2 + $0xe4] ss:$16 sps:$4 sm:$0xff]   ;;  %v8306_v30 = vld [vmem:[%s12444_s2 + $0xec] ss:$16 sps:$4 sm:$0xff]  }
   0xb   :  { %249 = vmatpush1.bf16.msra.mxu0 %v8278_v11  ;;  %322 = vmatpush1.bf16.msra.mxu1 %v8279_v12  ;;  %v8308_v31 = vld [vmem:[%s12444_s2 + $0xe0] ss:$16 sps:$4 sm:$0xff]   ;;  %v8309_v32 = vld [vmem:[%s12444_s2 + $0xe8] ss:$16 sps:$4 sm:$0xff]   ;;  %v9453_v35 = vld [vmem:[%s12445_s3 + $0x4] ss:$16 sps:$4 sm:$0xff]  }
   0xc   :  { %250 = vmatprep.subr.bf16.mxu0 %v8280_v13  ;;  %323 = vmatprep.subr.bf16.mxu1 %v8282_v14  ;;  %v40_v33 = vld [vmem:[%s12442_s0] sm:$0xff]  ;;  %v41_v34 = vld [vmem:[%s12442_s0 + $0x8] sm:$0xff]  ;;  %v42_v44 = vld [vmem:[%s12442_s0 + $0x10] sm:$0xff] }
   0xd   :  { %v9458_v36 = vld [vmem:[%s12445_s3 + $0xc] ss:$16 sps:$4 sm:$0xff]   ;;  %v48_v37 = vpack.c.bf16 %v41_v34, %v40_v33  ;;  %v9463_v38 = vld [vmem:[%s12445_s3] ss:$16 sps:$4 sm:$0xff]   ;;  %v9468_v39 = vld [vmem:[%s12445_s3 + $0x8] ss:$16 sps:$4 sm:$0xff]  }
   0xe   :  { %v9475_v40 = vld [vmem:[%s12445_s3 + $0x24] ss:$16 sps:$4 sm:$0xff]   ;;  %v9480_v41 = vld [vmem:[%s12445_s3 + $0x2c] ss:$16 sps:$4 sm:$0xff]   ;;  %v9485_v42 = vld [vmem:[%s12445_s3 + $0x20] ss:$16 sps:$4 sm:$0xff]  }
   0xf   :  { %251 = vmatpush1.bf16.msra.mxu0 %v8284_v15  ;;  %324 = vmatpush1.bf16.msra.mxu1 %v8285_v16  ;;  %v9490_v43 = vld [vmem:[%s12445_s3 + $0x28] ss:$16 sps:$4 sm:$0xff]   ;;  %v9503_v46 = vld [vmem:[%s12445_s3 + $0x44] ss:$16 sps:$4 sm:$0xff]   ;;  %v9510_v47 = vld [vmem:[%s12445_s3 + $0x4c] ss:$16 sps:$4 sm:$0xff]  }
  0x10   :  { %252 = vmatprep.subr.bf16.mxu0 %v8286_v17  ;;  %325 = vmatprep.subr.bf16.mxu1 %v8288_v18  ;;  %v43_v45 = vld [vmem:[%s12442_s0 + $0x18] sm:$0xff]  ;;  %v9517_v49 = vld [vmem:[%s12445_s3 + $0x40] ss:$16 sps:$4 sm:$0xff]   ;;  %v9529_v51 = vld [vmem:[%s12445_s3 + $0x64] ss:$16 sps:$4 sm:$0xff]  }
  0x11   :  { %v49_v48 = vpack.c.bf16 %v43_v45, %v42_v44  ;;  %v9522_v50 = vld [vmem:[%s12445_s3 + $0x48] ss:$16 sps:$4 sm:$0xff]   ;;  %v9536_v52 = vld [vmem:[%s12445_s3 + $0x6c] ss:$16 sps:$4 sm:$0xff]   ;;  %v9541_v53 = vld [vmem:[%s12445_s3 + $0x60] ss:$16 sps:$4 sm:$0xff]  }
  0x12   :  { %v9546_v54 = vld [vmem:[%s12445_s3 + $0x68] ss:$16 sps:$4 sm:$0xff]   ;;  %v44_v55 = vld [vmem:[%s12442_s0 + $0x20] sm:$0xff]  ;;  %v9566_v58 = vld [vmem:[%s12445_s3 + $0x8c] ss:$16 sps:$4 sm:$0xff]  }
  0x13   :  { %253 = vmatpush1.bf16.msra.mxu0 %v8290_v19  ;;  %326 = vmatpush1.bf16.msra.mxu1 %v8291_v20  ;;  %v45_v56 = vld [vmem:[%s12442_s0 + $0x28] sm:$0xff]  ;;  %v9559_v57 = vld [vmem:[%s12445_s3 + $0x84] ss:$16 sps:$4 sm:$0xff]   ;;  %v9573_v59 = vld [vmem:[%s12445_s3 + $0x80] ss:$16 sps:$4 sm:$0xff]  }
  0x14   :  { %254 = vmatprep.subr.bf16.mxu0 %v8292_v21  ;;  %327 = vmatprep.subr.bf16.mxu1 %v8294_v22  ;;  %v9578_v60 = vld [vmem:[%s12445_s3 + $0x88] ss:$16 sps:$4 sm:$0xff]   ;;  %v50_v61 = vpack.c.bf16 %v45_v56, %v44_v55  ;;  %v9583_v62 = vld [vmem:[%s12445_s3 + $0xa4] ss:$16 sps:$4 sm:$0xff]   ;;  %v9588_v63 = vld [vmem:[%s12445_s3 + $0xac] ss:$16 sps:$4 sm:$0xff]  }
  0x15   :  { %v8344_v0 = vld [vmem:[%s12445_s3 + $0xa0] ss:$16 sps:$4 sm:$0xff]   ;;  %v8345_v1 = vld [vmem:[%s12445_s3 + $0xa8] ss:$16 sps:$4 sm:$0xff]   ;;  %v8346_v5 = vld [vmem:[%s12445_s3 + $0xc4] ss:$16 sps:$4 sm:$0xff]  }
  0x16   :  { %v46_v3 = vld [vmem:[%s12442_s0 + $0x30] sm:$0xff]  ;;  %v47_v4 = vld [vmem:[%s12442_s0 + $0x38] sm:$0xff] }
  0x17   :  { %255 = vmatpush1.bf16.msra.mxu0 %v8296_v23  ;;  %328 = vmatpush1.bf16.msra.mxu1 %v8297_v24  ;;  %v8348_v6 = vld [vmem:[%s12445_s3 + $0xcc] ss:$16 sps:$4 sm:$0xff]   ;;  %v9621_v7 = vld [vmem:[%s12445_s3 + $0xc0] ss:$16 sps:$4 sm:$0xff]   ;;  %v9626_v8 = vld [vmem:[%s12445_s3 + $0xc8] ss:$16 sps:$4 sm:$0xff]   ;;  %v51_v9 = vpack.c.bf16 %v47_v4, %v46_v3 }
  0x18   :  { %256 = vmatprep.subr.bf16.mxu0 %v8298_v25  ;;  %329 = vmatprep.subr.bf16.mxu1 %v8300_v26  ;;  %v9631_v10 = vld [vmem:[%s12445_s3 + $0xe4] ss:$16 sps:$4 sm:$0xff]   ;;  %v9636_v11 = vld [vmem:[%s12445_s3 + $0xec] ss:$16 sps:$4 sm:$0xff]   ;;  %v9641_v12 = vld [vmem:[%s12445_s3 + $0xe0] ss:$16 sps:$4 sm:$0xff]  }
  0x19   :  { %v9646_v13 = vld [vmem:[%s12445_s3 + $0xe8] ss:$16 sps:$4 sm:$0xff]  }
  0x1b   :  { %257 = vmatpush1.bf16.msra.mxu0 %v8302_v27  ;;  %330 = vmatpush1.bf16.msra.mxu1 %v8303_v28 }
  0x1c   :  { %258 = vmatprep.subr.bf16.mxu0 %v8304_v29  ;;  %331 = vmatprep.subr.bf16.mxu1 %v8306_v30 }
  0x1f   :  { %259 = vmatpush1.bf16.msra.mxu0 %v8308_v31  ;;  %332 = vmatpush1.bf16.msra.mxu1 %v8309_v32 }
  0x20   :  { %621 = vmatprep.subr.bf16.mxu0 %v9453_v35  ;;  %662 = vmatprep.subr.bf16.mxu1 %v9458_v36 }
  0x22   :  { %277 = vmatmul.mubr.bf16.vlgmr.msra.gmra.mrb[0].mxu0 %v48_v37  ;;  %350 = vmatmul.mubr.bf16.vlgmr.msra.gmra.mrb[0].mxu1 %v48_v37 }
  0x23   :  { %622 = vmatpush1.bf16.msra.mxu0 %v9463_v38  ;;  %663 = vmatpush1.bf16.msra.mxu1 %v9468_v39 }
  0x24   :  { %623 = vmatprep.subr.bf16.mxu0 %v9475_v40  ;;  %664 = vmatprep.subr.bf16.mxu1 %v9480_v41 }
  0x25   :  { %286 = vmatprep.mubr.bf16.mxu0 %v12455_v2  ;;  %359 = vmatprep.mubr.bf16.mxu1 %v12455_v2 }
  0x27   :  { %624 = vmatpush1.bf16.msra.mxu0 %v9485_v42  ;;  %665 = vmatpush1.bf16.msra.mxu1 %v9490_v43 }
  0x28   :  { %625 = vmatprep.subr.bf16.mxu0 %v9503_v46  ;;  %666 = vmatprep.subr.bf16.mxu1 %v9510_v47 }
  0x2a   :  { %287 = vmatmul.mubr.bf16.gmra.mrb[4].mxu0 %v49_v48  ;;  %360 = vmatmul.mubr.bf16.gmra.mrb[4].mxu1 %v49_v48 }
  0x2b   :  { %626 = vmatpush1.bf16.msra.mxu0 %v9517_v49  ;;  %667 = vmatpush1.bf16.msra.mxu1 %v9522_v50 }
  0x2c   :  { %627 = vmatprep.subr.bf16.mxu0 %v9529_v51  ;;  %668 = vmatprep.subr.bf16.mxu1 %v9536_v52 }
  0x2d   :  { %296 = vmatprep.mubr.bf16.mxu0 %v12455_v2  ;;  %369 = vmatprep.mubr.bf16.mxu1 %v12455_v2 }
  0x2f   :  { %628 = vmatpush1.bf16.msra.mxu0 %v9541_v53  ;;  %669 = vmatpush1.bf16.msra.mxu1 %v9546_v54 }
  0x30   :  { %629 = vmatprep.subr.bf16.mxu0 %v9559_v57  ;;  %670 = vmatprep.subr.bf16.mxu1 %v9566_v58 }
  0x32   :  { %297 = vmatmul.mubr.bf16.gmra.mrb[8].mxu0 %v50_v61  ;;  %370 = vmatmul.mubr.bf16.gmra.mrb[8].mxu1 %v50_v61 }
  0x33   :  { %630 = vmatpush1.bf16.msra.mxu0 %v9573_v59  ;;  %671 = vmatpush1.bf16.msra.mxu1 %v9578_v60 }
  0x34   :  { %631 = vmatprep.subr.bf16.mxu0 %v9583_v62  ;;  %672 = vmatprep.subr.bf16.mxu1 %v9588_v63 }
  0x35   :  { %306 = vmatprep.mubr.bf16.mxu0 %v12455_v2  ;;  %379 = vmatprep.mubr.bf16.mxu1 %v12455_v2 }
  0x37   :  { %632 = vmatpush1.bf16.msra.mxu0 %v8344_v0  ;;  %673 = vmatpush1.bf16.msra.mxu1 %v8345_v1 }
  0x38   :  { %633 = vmatprep.subr.bf16.mxu0 %v8346_v5  ;;  %674 = vmatprep.subr.bf16.mxu1 %v8348_v6 }
  0x3a   :  { %307 = vmatmul.mubr.bf16.gmra.mrb[12].mxu0 %v51_v9  ;;  %380 = vmatmul.mubr.bf16.gmra.mrb[12].mxu1 %v51_v9 }
  0x3b   :  { %634 = vmatpush1.bf16.msra.mxu0 %v9621_v7  ;;  %675 = vmatpush1.bf16.msra.mxu1 %v9626_v8 }
  0x3c   :  { %635 = vmatprep.subr.bf16.mxu0 %v9631_v10  ;;  %676 = vmatprep.subr.bf16.mxu1 %v9636_v11 }
  0x3d   :  { %653 = vmatprep.mubr.bf16.mxu0 %v12455_v2  ;;  %694 = vmatprep.mubr.bf16.mxu1 %v12455_v2 }
  0x3f   :  { %636 = vmatpush1.bf16.msra.mxu0 %v9641_v12  ;;  %677 = vmatpush1.bf16.msra.mxu1 %v9646_v13 }
  0x40   :  { %765 = vmatprep.subr.bf16.mxu0 %v9453_v35  ;;  %806 = vmatprep.subr.bf16.mxu1 %v9458_v36 }
  0x42   :  { %654 = vmatmul.mubr.bf16.vlgmr.msra.gmra.mrb[16].mxu0 %v12455_v2  ;;  %695 = vmatmul.mubr.bf16.vlgmr.msra.gmra.mrb[16].mxu1 %v12455_v2 }
  0x43   :  { %766 = vmatpush1.bf16.msra.mxu0 %v9463_v38  ;;  %807 = vmatpush1.bf16.msra.mxu1 %v9468_v39 }
  0x44   :  { %767 = vmatprep.subr.bf16.mxu0 %v9475_v40  ;;  %808 = vmatprep.subr.bf16.mxu1 %v9480_v41 }
  0x45   :  { %797 = vmatprep.mubr.bf16.mxu0 %v12455_v2  ;;  %838 = vmatprep.mubr.bf16.mxu1 %v12455_v2 }
  0x47   :  { %768 = vmatpush1.bf16.msra.mxu0 %v9485_v42  ;;  %809 = vmatpush1.bf16.msra.mxu1 %v9490_v43 }
  0x48   :  { %769 = vmatprep.subr.bf16.mxu0 %v9503_v46  ;;  %810 = vmatprep.subr.bf16.mxu1 %v9510_v47 }
  0x4b   :  { %770 = vmatpush1.bf16.msra.mxu0 %v9517_v49  ;;  %811 = vmatpush1.bf16.msra.mxu1 %v9522_v50 }
  0x4c   :  { %771 = vmatprep.subr.bf16.mxu0 %v9529_v51  ;;  %812 = vmatprep.subr.bf16.mxu1 %v9536_v52 }
  0x4f   :  { %772 = vmatpush1.bf16.msra.mxu0 %v9541_v53  ;;  %813 = vmatpush1.bf16.msra.mxu1 %v9546_v54 }
  0x50   :  { %773 = vmatprep.subr.bf16.mxu0 %v9559_v57  ;;  %814 = vmatprep.subr.bf16.mxu1 %v9566_v58 }
  0x53   :  { %774 = vmatpush1.bf16.msra.mxu0 %v9573_v59  ;;  %815 = vmatpush1.bf16.msra.mxu1 %v9578_v60 }
  0x54   :  { %775 = vmatprep.subr.bf16.mxu0 %v9583_v62  ;;  %816 = vmatprep.subr.bf16.mxu1 %v9588_v63 }
  0x57   :  { %776 = vmatpush1.bf16.msra.mxu0 %v8344_v0  ;;  %817 = vmatpush1.bf16.msra.mxu1 %v8345_v1 }
  0x58   :  { %777 = vmatprep.subr.bf16.mxu0 %v8346_v5  ;;  %818 = vmatprep.subr.bf16.mxu1 %v8348_v6 }
  0x5b   :  { %778 = vmatpush1.bf16.msra.mxu0 %v9621_v7  ;;  %819 = vmatpush1.bf16.msra.mxu1 %v9626_v8 }
  0x5c   :  { %779 = vmatprep.subr.bf16.mxu0 %v9631_v10  ;;  %820 = vmatprep.subr.bf16.mxu1 %v9636_v11 }
  0x5f   :  { %780 = vmatpush1.bf16.msra.mxu0 %v9641_v12  ;;  %821 = vmatpush1.bf16.msra.mxu1 %v9646_v13 }
  0x60   :  { %887 = vmatprep.subr.bf16.mxu0 %v9453_v35  ;;  %928 = vmatprep.subr.bf16.mxu1 %v9458_v36 }
  0x61   :  { %16 = vsyncpa [#allocation6], 0  ;;  %v12454_v38 = vlaneseq  ;;  %v707_v49 = vld [vmem:[%s12446_s4] sm:$0xf]  ;;  %s7221_s28 = sshll.u32 %s12453_s11, 4  ;;  %s7222_s28 = int_to_ptr.vmem [resolvable:$true] %s7221_s28 }
  0x62   :  { %s9270_s12 = scalar_lea.vmem %s7222_s28, 16  ;;  %p9275_p1 = scmp.lt.s32.totalorder %s7222_s28, %s7222_s28 }
  0x63   :  { %v9731_v39 = vshrl.u32 %v12454_v38, 7  ;;  %v9896_v38 = vld [vmem:[%s12445_s3 + $0xa4] ss:$16 sps:$4 sm:$0xff]   ;;  %p9271_p0 = scmp.ne.s32.totalorder %s7222_s28, %s9270_s12  ;;  %p9276_p2 = scmp.lt.s32.totalorder %s9270_s12, %s9270_s12 }
  0x65   :  { %12515 = vst [vmem:[#allocation14_spill] sm:$0xff] %v9731_v39  ;;  %v9750_v48 = vsub.s32 0, %v9731_v39  ;;  %v9756_v50 = vsub.s32 1, %v9731_v39  ;;  %v9765_v61 = vsub.s32 3, %v9731_v39  ;;  %p9277_p3 = por %p9276_p2, %p9275_p1 }
  0x67   :  { %12524 = vst [vmem:[#allocation23_spill] sm:$0xff] %v9750_v48  ;;  %12525 = vst [vmem:[#allocation24_spill] sm:$0xff] %v9756_v50  ;;  %v9759_v51 = vrot.slane %v707_v49, %v9750_v48  ;;  %v9762_v54 = vrot.slane %v707_v49, %v9756_v50  ;;  %v9770_v9 = vrot.slane %v707_v49, %v9765_v61  ;;  %v9926_v50 = vld [vmem:[%s12445_s3 + $0xcc] ss:$16 sps:$4 sm:$0xff]   ;;  %v9938_v48 = vld [vmem:[%s12445_s3 + $0x4] ss:$16 sps:$4 sm:$0xff]   ;;  %p9278_p4 = pnand %p9277_p3, %p9271_p0 }
  0x68   :  { %12526 = vst [vmem:[#allocation25_spill] sm:$0xff] %v9765_v61  ;;  %v9920_v61 = vld [vmem:[%s12445_s3 + $0xc4] ss:$16 sps:$4 sm:$0xff]  }
  0xf5   :  { %v278_v14 = vpop.f32.mrb[0].mxu0  ;;  %v351_v15 = vpop.f32.mrb[0].mxu1 }
  0xf6   :  { %v280_v16 = vpop.f32.mrb[1].mxu0  ;;  %v353_v17 = vpop.f32.mrb[1].mxu1 }
  0xf7   :  { %v9690_v18 = vpop.f32.mrb[2].mxu0  ;;  %v9692_v19 = vpop.f32.mrb[2].mxu1 }
  0xf8   :  { %v9694_v20 = vpop.f32.mrb[3].mxu0  ;;  %v9696_v21 = vpop.f32.mrb[3].mxu1 }
  0xfd   :  { %v9698_v22 = vpop.f32.mrb[4].mxu0  ;;  %v9700_v23 = vpop.f32.mrb[4].mxu1 }
  0xfe   :  { %v9702_v24 = vpop.f32.mrb[5].mxu0  ;;  %v9704_v25 = vpop.f32.mrb[5].mxu1 }
  0xff   :  { %v9706_v26 = vpop.f32.mrb[6].mxu0  ;;  %v9708_v27 = vpop.f32.mrb[6].mxu1 }
 0x100   :  { %v9710_v28 = vpop.f32.mrb[7].mxu0  ;;  %v9712_v29 = vpop.f32.mrb[7].mxu1 }
 0x105   :  { %v9714_v30 = vpop.f32.mrb[8].mxu0  ;;  %v9716_v31 = vpop.f32.mrb[8].mxu1 }
 0x106   :  { %v9718_v32 = vpop.f32.mrb[9].mxu0  ;;  %v9720_v33 = vpop.f32.mrb[9].mxu1 }
 0x107   :  { %12509 = vst [vmem:[#allocation8_spill] sm:$0xff] %v9718_v32  ;;  %12510 = vst [vmem:[#allocation9_spill] sm:$0xff] %v9720_v33  ;;  %v9722_v34 = vpop.f32.mrb[10].mxu0  ;;  %v9724_v35 = vpop.f32.mrb[10].mxu1 }
 0x108   :  { %12511 = vst [vmem:[#allocation10_spill] sm:$0xff] %v9722_v34  ;;  %12512 = vst [vmem:[#allocation11_spill] sm:$0xff] %v9724_v35  ;;  %v9726_v36 = vpop.f32.mrb[11].mxu0  ;;  %v9728_v37 = vpop.f32.mrb[11].mxu1 }
 0x109   :  { %12513 = vst [vmem:[#allocation12_spill] sm:$0xff] %v9726_v36  ;;  %12514 = vst [vmem:[#allocation13_spill] sm:$0xff] %v9728_v37 }
 0x10d   :  { %v9733_v40 = vpop.f32.mrb[12].mxu0  ;;  %v9735_v41 = vpop.f32.mrb[12].mxu1 }
 0x10e   :  { %12516 = vst [vmem:[#allocation15_spill] sm:$0xff] %v9733_v40  ;;  %12517 = vst [vmem:[#allocation16_spill] sm:$0xff] %v9735_v41  ;;  %v9737_v42 = vpop.f32.mrb[13].mxu0  ;;  %v9739_v43 = vpop.f32.mrb[13].mxu1 }
 0x10f   :  { %12518 = vst [vmem:[#allocation17_spill] sm:$0xff] %v9737_v42  ;;  %12519 = vst [vmem:[#allocation18_spill] sm:$0xff] %v9739_v43  ;;  %v9741_v44 = vpop.f32.mrb[14].mxu0  ;;  %v9743_v45 = vpop.f32.mrb[14].mxu1 }
 0x110   :  { %12520 = vst [vmem:[#allocation19_spill] sm:$0xff] %v9741_v44  ;;  %12521 = vst [vmem:[#allocation20_spill] sm:$0xff] %v9743_v45  ;;  %v9745_v46 = vpop.f32.mrb[15].mxu0  ;;  %v9747_v47 = vpop.f32.mrb[15].mxu1 }
 0x111   :  { %12522 = vst [vmem:[#allocation21_spill] sm:$0xff] %v9745_v46  ;;  %12523 = vst [vmem:[#allocation22_spill] sm:$0xff] %v9747_v47 }
 0x115   :  { %v655_v52 = vpop.f32.mrb[16].mxu0  ;;  %v696_v53 = vpop.f32.mrb[16].mxu1 }
 0x116   :  { %v703_v55 = vadd.f32 %v655_v52, %v278_v14  ;;  %v705_v56 = vadd.f32 %v696_v53, %v351_v15  ;;  %v657_v57 = vpop.f32.mrb[17].mxu0  ;;  %v698_v58 = vpop.f32.mrb[17].mxu1  ;;  %v9773_v14 = vsub.s32 2, %v9731_v39  ;;  %v9908_v39 = vld [vmem:[%s12445_s3 + $0xa0] ss:$16 sps:$4 sm:$0xff]  }
 0x117   :  { %v704_v59 = vadd.f32 %v657_v57, %v280_v16  ;;  %v706_v60 = vadd.f32 %v698_v58, %v353_v17  ;;  %v659_v62 = vpop.f32.mrb[18].mxu0  ;;  %v700_v63 = vpop.f32.mrb[18].mxu1 }
 0x118   :  { %v729_v0 = vadd.f32 %v9759_v51, %v703_v55  ;;  %v660_v1 = vpop.f32.mrb[19].mxu0  ;;  %v701_v3 = vpop.f32.mrb[19].mxu1  ;;  %12527 = vst [vmem:[#allocation26_spill] sm:$0xff] %v9773_v14  ;;  %v9777_v16 = vrot.slane %v707_v49, %v9773_v14  ;;  %v9914_v14 = vld [vmem:[%s12445_s3 + $0xa8] ss:$16 sps:$4 sm:$0xff]  }
 0x119   :  { %v730_v4 = vadd.f32 %v9762_v54, %v704_v59  ;;  %v732_v15 = vadd.f32 %v9770_v9, %v706_v60 }
 0x11a   :  { %v7301_v5 = vmul.f32 -1.442695, %v729_v0  ;;  %v731_v52 = vadd.f32 %v9777_v16, %v705_v56 }
 0x11b   :  { %v7302_v6 = vmul.f32 -1.442695, %v730_v4  ;;  %v7303_v17 = vmul.f32 -1.442695, %v732_v15  ;;  %v9786_v15 = vld [vmem:[%s12445_s3] ss:$16 sps:$4 sm:$0xff]  }
 0x11c   :  { %8854 = vpow2.f32 %v7301_v5 }
 0x11d   :  { %8856 = vpow2.f32 %v7302_v6 }
 0x11e   :  { %8858 = vpow2.f32 %v7303_v17  ;;  %v9792_v17 = vld [vmem:[%s12445_s3 + $0x8] ss:$16 sps:$4 sm:$0xff]  }
 0x11f   :  { %8860 = vtanh.f32 %v731_v52  ;;  %v9798_v52 = vld [vmem:[%s12445_s3 + $0x24] ss:$16 sps:$4 sm:$0xff]  }
 0x126   :  { %v8855_v53 = vpop.eup %8854 }
 0x127   :  { %v8857_v55 = vpop.eup %8856  ;;  %v736_v57 = vadd.f32 1.0, %v8855_v53  ;;  %v9804_v53 = vld [vmem:[%s12445_s3 + $0x2c] ss:$16 sps:$4 sm:$0xff]  }
 0x128   :  { %v742_v58 = vadd.f32 1.0, %v8857_v55  ;;  %v8859_v59 = vpop.eup %8858  ;;  %v9812_v55 = vld [vmem:[%s12445_s3 + $0x20] ss:$16 sps:$4 sm:$0xff]  }
 0x129   :  { %8862 = vrcp.f32 %v736_v57  ;;  %v8861_v62 = vpop.eup %8860  ;;  %v749_v60 = vadd.f32 1.0, %v8859_v59  ;;  %v9818_v57 = vld [vmem:[%s12445_s3 + $0x28] ss:$16 sps:$4 sm:$0xff]   ;;  %v9830_v59 = vld [vmem:[%s12445_s3 + $0x4c] ss:$16 sps:$4 sm:$0xff]  }
 0x12a   :  { %8864 = vrcp.f32 %v742_v58  ;;  %v9824_v58 = vld [vmem:[%s12445_s3 + $0x44] ss:$16 sps:$4 sm:$0xff]  }
 0x12b   :  { %8866 = vrcp.f32 %v749_v60  ;;  %v9860_v60 = vld [vmem:[%s12445_s3 + $0x60] ss:$16 sps:$4 sm:$0xff]  }
 0x133   :  { %v8863_v63 = vpop.eup %8862 }
 0x134   :  { %v8865_v0 = vpop.eup %8864  ;;  %v753_v1 = vmul.f32 %v8863_v63, %v8861_v62  ;;  %v9836_v62 = vld [vmem:[%s12445_s3 + $0x40] ss:$16 sps:$4 sm:$0xff]   ;;  %v9842_v63 = vld [vmem:[%s12445_s3 + $0x48] ss:$16 sps:$4 sm:$0xff]  }
 0x135   :  { %v752_v3 = vmul.f32 0.0, %v8865_v0  ;;  %v8867_v56 = vpop.eup %8866  ;;  %v9848_v0 = vld [vmem:[%s12445_s3 + $0x64] ss:$16 sps:$4 sm:$0xff]  }
 0x137   :  { %v9780_v49 = vadd.f32 %v753_v1, %v752_v3  ;;  %v9854_v1 = vld [vmem:[%s12445_s3 + $0x6c] ss:$16 sps:$4 sm:$0xff]   ;;  %v9866_v3 = vld [vmem:[%s12445_s3 + $0x68] ss:$16 sps:$4 sm:$0xff]  }
 0x139   :  { %8868 = vtanh.f32 %v9780_v49 }
 0x143   :  { %v8869_v4 = vpop.eup %8868 }
 0x144   :  { %v756_v5 = vmul.f32 %v8869_v4, %v8867_v56  ;;  %v9872_v56 = vld [vmem:[%s12445_s3 + $0x84] ss:$16 sps:$4 sm:$0xff]   ;;  %v9878_v4 = vld [vmem:[%s12445_s3 + $0x8c] ss:$16 sps:$4 sm:$0xff]  }
 0x146   :  { %v764_v6 = vpack.c.bf16 %v756_v5, %v756_v5  ;;  %v9884_v5 = vld [vmem:[%s12445_s3 + $0x80] ss:$16 sps:$4 sm:$0xff]  }
 0x148   :  { %798 = vmatmul.mubr.bf16.vlgmr.msra.gmra.mrb[20].mxu0 %v764_v6  ;;  %839 = vmatmul.mubr.bf16.vlgmr.msra.gmra.mrb[20].mxu1 %v764_v6  ;;  %v9890_v6 = vld [vmem:[%s12445_s3 + $0x88] ss:$16 sps:$4 sm:$0xff]  }
 0x149   :  { %888 = vmatpush1.bf16.msra.mxu0 %v9786_v15  ;;  %929 = vmatpush1.bf16.msra.mxu1 %v9792_v17 }
 0x14a   :  { %889 = vmatprep.subr.bf16.mxu0 %v9798_v52  ;;  %930 = vmatprep.subr.bf16.mxu1 %v9804_v53 }
 0x14b   :  { %919 = vmatprep.mubr.bf16.mxu0 %v12455_v2  ;;  %960 = vmatprep.mubr.bf16.mxu1 %v12455_v2  ;;  %v9902_v2 = vld [vmem:[%s12445_s3 + $0xac] ss:$16 sps:$4 sm:$0xff]  }
 0x14d   :  { %890 = vmatpush1.bf16.msra.mxu0 %v9812_v55  ;;  %931 = vmatpush1.bf16.msra.mxu1 %v9818_v57 }
 0x14e   :  { %891 = vmatprep.subr.bf16.mxu0 %v9824_v58  ;;  %932 = vmatprep.subr.bf16.mxu1 %v9830_v59 }
 0x151   :  { %892 = vmatpush1.bf16.msra.mxu0 %v9836_v62  ;;  %933 = vmatpush1.bf16.msra.mxu1 %v9842_v63 }
 0x152   :  { %893 = vmatprep.subr.bf16.mxu0 %v9848_v0  ;;  %934 = vmatprep.subr.bf16.mxu1 %v9854_v1 }
 0x155   :  { %894 = vmatpush1.bf16.msra.mxu0 %v9860_v60  ;;  %935 = vmatpush1.bf16.msra.mxu1 %v9866_v3 }
 0x156   :  { %895 = vmatprep.subr.bf16.mxu0 %v9872_v56  ;;  %936 = vmatprep.subr.bf16.mxu1 %v9878_v4 }
 0x159   :  { %896 = vmatpush1.bf16.msra.mxu0 %v9884_v5  ;;  %937 = vmatpush1.bf16.msra.mxu1 %v9890_v6 }
 0x15a   :  { %897 = vmatprep.subr.bf16.mxu0 %v9896_v38  ;;  %938 = vmatprep.subr.bf16.mxu1 %v9902_v2 }
 0x15d   :  { %898 = vmatpush1.bf16.msra.mxu0 %v9908_v39  ;;  %939 = vmatpush1.bf16.msra.mxu1 %v9914_v14 }
 0x15e   :  { %899 = vmatprep.subr.bf16.mxu0 %v9920_v61  ;;  %940 = vmatprep.subr.bf16.mxu1 %v9926_v50 }
 0x161   :  { %900 = vmatpush1.bf16.msra.mxu0 %v9621_v7  ;;  %941 = vmatpush1.bf16.msra.mxu1 %v9626_v8  ;;  %v9944_v7 = vld [vmem:[%s12445_s3 + $0xc] ss:$16 sps:$4 sm:$0xff]  }
 0x162   :  { %901 = vmatprep.subr.bf16.mxu0 %v9631_v10  ;;  %942 = vmatprep.subr.bf16.mxu1 %v9636_v11 }
 0x165   :  { %902 = vmatpush1.bf16.msra.mxu0 %v9641_v12  ;;  %943 = vmatpush1.bf16.msra.mxu1 %v9646_v13 }
 0x166   :  { %1009 = vmatprep.subr.bf16.mxu0 %v9938_v48  ;;  %1050 = vmatprep.subr.bf16.mxu1 %v9944_v7 }
 0x21b   :  { %v799_v8 = vpop.f32.mrb[20].mxu0  ;;  %v840_v10 = vpop.f32.mrb[20].mxu1 }
 0x21c   :  { %v847_v11 = vadd.f32 %v799_v8, %v9690_v18  ;;  %v849_v12 = vadd.f32 %v840_v10, %v9692_v19  ;;  %v801_v13 = vpop.f32.mrb[21].mxu0  ;;  %v842_v47 = vpop.f32.mrb[21].mxu1 }
 0x21d   :  { %v848_v46 = vadd.f32 %v801_v13, %v9694_v20  ;;  %v850_v45 = vadd.f32 %v842_v47, %v9696_v21  ;;  %v803_v44 = vpop.f32.mrb[22].mxu0  ;;  %v844_v43 = vpop.f32.mrb[22].mxu1  ;;  %v9988_v13 = vld [vmem:[%s12445_s3 + $0xc0] ss:$16 sps:$4 sm:$0xff]  }
 0x21e   :  { %v851_v42 = vadd.f32 %v847_v11, %v9759_v51  ;;  %v804_v41 = vpop.f32.mrb[23].mxu0  ;;  %v845_v40 = vpop.f32.mrb[23].mxu1  ;;  %v853_v8 = vadd.f32 %v849_v12, %v9777_v16 }
 0x21f   :  { %v852_v37 = vadd.f32 %v848_v46, %v9762_v54  ;;  %v854_v18 = vadd.f32 %v850_v45, %v9770_v9 }
 0x220   :  { %v7304_v36 = vmul.f32 -1.442695, %v851_v42 }
 0x221   :  { %v7305_v35 = vmul.f32 -1.442695, %v852_v37  ;;  %v7306_v19 = vmul.f32 -1.442695, %v854_v18  ;;  %v9994_v18 = vld [vmem:[%s12445_s3 + $0xc8] ss:$16 sps:$4 sm:$0xff]  }
 0x222   :  { %8870 = vpow2.f32 %v7304_v36 }
 0x223   :  { %8872 = vpow2.f32 %v7305_v35 }
 0x224   :  { %8874 = vpow2.f32 %v7306_v19  ;;  %v10000_v19 = vld [vmem:[%s12445_s3 + $0xe4] ss:$16 sps:$4 sm:$0xff]  }
 0x225   :  { %8876 = vtanh.f32 %v853_v8  ;;  %v10006_v8 = vld [vmem:[%s12445_s3 + $0xec] ss:$16 sps:$4 sm:$0xff]  }
 0x22c   :  { %v8871_v20 = vpop.eup %8870 }
 0x22d   :  { %v8873_v10 = vpop.eup %8872  ;;  %v858_v21 = vadd.f32 1.0, %v8871_v20  ;;  %v10012_v20 = vld [vmem:[%s12445_s3 + $0xe0] ss:$16 sps:$4 sm:$0xff]  }
 0x22e   :  { %v864_v43 = vadd.f32 1.0, %v8873_v10  ;;  %v8875_v40 = vpop.eup %8874  ;;  %v10018_v10 = vld [vmem:[%s12445_s3 + $0xe8] ss:$16 sps:$4 sm:$0xff]  }
 0x22f   :  { %8878 = vrcp.f32 %v858_v21  ;;  %v8877_v41 = vpop.eup %8876  ;;  %v871_v36 = vadd.f32 1.0, %v8875_v40 }
 0x230   :  { %8880 = vrcp.f32 %v864_v43 }
 0x231   :  { %8882 = vrcp.f32 %v871_v36 }
 0x239   :  { %v8879_v44 = vpop.eup %8878 }
 0x23a   :  { %v8881_v42 = vpop.eup %8880  ;;  %v875_v37 = vmul.f32 %v8879_v44, %v8877_v41 }
 0x23b   :  { %v874_v35 = vmul.f32 %v8881_v42, %v9780_v49  ;;  %v8883_v46 = vpop.eup %8882  ;;  %v12528_v49 = vmov 0  }
 0x23d   :  { %v9956_v45 = vadd.f32 %v875_v37, %v874_v35 }
 0x23f   :  { %8884 = vtanh.f32 %v9956_v45 }
 0x249   :  { %v8885_v47 = vpop.eup %8884 }
 0x24a   :  { %v878_v11 = vmul.f32 %v8885_v47, %v8883_v46 }
 0x24c   :  { %v886_v12 = vpack.c.bf16 %v878_v11, %v878_v11 }
 0x24e   :  { %920 = vmatmul.mubr.bf16.vlgmr.msra.gmra.mrb[24].mxu0 %v886_v12  ;;  %961 = vmatmul.mubr.bf16.vlgmr.msra.gmra.mrb[24].mxu1 %v886_v12 }
 0x24f   :  { %1010 = vmatpush1.bf16.msra.mxu0 %v9786_v15  ;;  %1051 = vmatpush1.bf16.msra.mxu1 %v9792_v17 }
 0x250   :  { %1011 = vmatprep.subr.bf16.mxu0 %v9798_v52  ;;  %1052 = vmatprep.subr.bf16.mxu1 %v9804_v53 }
 0x251   :  { %1041 = vmatprep.mubr.bf16.mxu0 %v12528_v49  ;;  %1082 = vmatprep.mubr.bf16.mxu1 %v12528_v49 }
 0x253   :  { %1012 = vmatpush1.bf16.msra.mxu0 %v9812_v55  ;;  %1053 = vmatpush1.bf16.msra.mxu1 %v9818_v57 }
 0x254   :  { %1013 = vmatprep.subr.bf16.mxu0 %v9824_v58  ;;  %1054 = vmatprep.subr.bf16.mxu1 %v9830_v59 }
 0x257   :  { %1014 = vmatpush1.bf16.msra.mxu0 %v9836_v62  ;;  %1055 = vmatpush1.bf16.msra.mxu1 %v9842_v63 }
 0x258   :  { %1015 = vmatprep.subr.bf16.mxu0 %v9848_v0  ;;  %1056 = vmatprep.subr.bf16.mxu1 %v9854_v1 }
 0x25b   :  { %1016 = vmatpush1.bf16.msra.mxu0 %v9860_v60  ;;  %1057 = vmatpush1.bf16.msra.mxu1 %v9866_v3 }
 0x25c   :  { %1017 = vmatprep.subr.bf16.mxu0 %v9872_v56  ;;  %1058 = vmatprep.subr.bf16.mxu1 %v9878_v4 }
 0x25f   :  { %1018 = vmatpush1.bf16.msra.mxu0 %v9884_v5  ;;  %1059 = vmatpush1.bf16.msra.mxu1 %v9890_v6 }
 0x260   :  { %1019 = vmatprep.subr.bf16.mxu0 %v9896_v38  ;;  %1060 = vmatprep.subr.bf16.mxu1 %v9902_v2 }
 0x263   :  { %1020 = vmatpush1.bf16.msra.mxu0 %v9908_v39  ;;  %1061 = vmatpush1.bf16.msra.mxu1 %v9914_v14 }
 0x264   :  { %1021 = vmatprep.subr.bf16.mxu0 %v9920_v61  ;;  %1062 = vmatprep.subr.bf16.mxu1 %v9926_v50 }
 0x267   :  { %1022 = vmatpush1.bf16.msra.mxu0 %v9988_v13  ;;  %1063 = vmatpush1.bf16.msra.mxu1 %v9994_v18 }
 0x268   :  { %1023 = vmatprep.subr.bf16.mxu0 %v10000_v19  ;;  %1064 = vmatprep.subr.bf16.mxu1 %v10006_v8 }
 0x26b   :  { %1024 = vmatpush1.bf16.msra.mxu0 %v10012_v20  ;;  %1065 = vmatpush1.bf16.msra.mxu1 %v10018_v10 }
 0x26c   :  { %1131 = vmatprep.subr.bf16.mxu0 %v9938_v48  ;;  %1172 = vmatprep.subr.bf16.mxu1 %v9944_v7 }
 0x321   :  { %v921_v21 = vpop.f32.mrb[24].mxu0  ;;  %v962_v43 = vpop.f32.mrb[24].mxu1 }
 0x322   :  { %v969_v40 = vadd.f32 %v921_v21, %v9698_v22  ;;  %v971_v41 = vadd.f32 %v962_v43, %v9700_v23  ;;  %v923_v44 = vpop.f32.mrb[25].mxu0  ;;  %v964_v42 = vpop.f32.mrb[25].mxu1 }
 0x323   :  { %v970_v37 = vadd.f32 %v923_v44, %v9702_v24  ;;  %v972_v36 = vadd.f32 %v964_v42, %v9704_v25  ;;  %v925_v35 = vpop.f32.mrb[26].mxu0  ;;  %v966_v46 = vpop.f32.mrb[26].mxu1 }
 0x324   :  { %v973_v47 = vadd.f32 %v969_v40, %v9759_v51  ;;  %v926_v11 = vpop.f32.mrb[27].mxu0  ;;  %v967_v12 = vpop.f32.mrb[27].mxu1  ;;  %v975_v21 = vadd.f32 %v971_v41, %v9777_v16 }
 0x325   :  { %v974_v34 = vadd.f32 %v970_v37, %v9762_v54  ;;  %v976_v22 = vadd.f32 %v972_v36, %v9770_v9 }
 0x326   :  { %v7307_v33 = vmul.f32 -1.442695, %v973_v47 }
 0x327   :  { %v7308_v32 = vmul.f32 -1.442695, %v974_v34  ;;  %v7309_v23 = vmul.f32 -1.442695, %v976_v22 }
 0x328   :  { %8886 = vpow2.f32 %v7307_v33 }
 0x329   :  { %8888 = vpow2.f32 %v7308_v32 }
 0x32a   :  { %8890 = vpow2.f32 %v7309_v23 }
 0x32b   :  { %8892 = vtanh.f32 %v975_v21 }
 0x332   :  { %v8887_v24 = vpop.eup %8886 }
 0x333   :  { %v8889_v43 = vpop.eup %8888  ;;  %v980_v25 = vadd.f32 1.0, %v8887_v24 }
 0x334   :  { %v986_v44 = vadd.f32 1.0, %v8889_v43  ;;  %v8891_v40 = vpop.eup %8890 }
 0x335   :  { %8894 = vrcp.f32 %v980_v25  ;;  %v8893_v42 = vpop.eup %8892  ;;  %v993_v33 = vadd.f32 1.0, %v8891_v40 }
 0x336   :  { %8896 = vrcp.f32 %v986_v44 }
 0x337   :  { %8898 = vrcp.f32 %v993_v33 }
 0x33f   :  { %v8895_v37 = vpop.eup %8894 }
 0x340   :  { %v8897_v35 = vpop.eup %8896  ;;  %v997_v34 = vmul.f32 %v8895_v37, %v8893_v42 }
 0x341   :  { %v996_v32 = vmul.f32 %v8897_v35, %v9956_v45  ;;  %v8899_v41 = vpop.eup %8898 }
 0x343   :  { %v10032_v36 = vadd.f32 %v997_v34, %v996_v32 }
 0x345   :  { %8900 = vtanh.f32 %v10032_v36 }
 0x34f   :  { %v8901_v46 = vpop.eup %8900 }
 0x350   :  { %v1000_v47 = vmul.f32 %v8901_v46, %v8899_v41 }
 0x352   :  { %v1008_v11 = vpack.c.bf16 %v1000_v47, %v1000_v47 }
 0x354   :  { %1042 = vmatmul.mubr.bf16.vlgmr.msra.gmra.mrb[28].mxu0 %v1008_v11  ;;  %1083 = vmatmul.mubr.bf16.vlgmr.msra.gmra.mrb[28].mxu1 %v1008_v11 }
 0x355   :  { %1132 = vmatpush1.bf16.msra.mxu0 %v9786_v15  ;;  %1173 = vmatpush1.bf16.msra.mxu1 %v9792_v17 }
 0x356   :  { %1133 = vmatprep.subr.bf16.mxu0 %v9798_v52  ;;  %1174 = vmatprep.subr.bf16.mxu1 %v9804_v53 }
 0x357   :  { %1163 = vmatprep.mubr.bf16.mxu0 %v12528_v49  ;;  %1204 = vmatprep.mubr.bf16.mxu1 %v12528_v49 }
 0x359   :  { %1134 = vmatpush1.bf16.msra.mxu0 %v9812_v55  ;;  %1175 = vmatpush1.bf16.msra.mxu1 %v9818_v57 }
 0x35a   :  { %1135 = vmatprep.subr.bf16.mxu0 %v9824_v58  ;;  %1176 = vmatprep.subr.bf16.mxu1 %v9830_v59 }
 0x35d   :  { %1136 = vmatpush1.bf16.msra.mxu0 %v9836_v62  ;;  %1177 = vmatpush1.bf16.msra.mxu1 %v9842_v63 }
 0x35e   :  { %1137 = vmatprep.subr.bf16.mxu0 %v9848_v0  ;;  %1178 = vmatprep.subr.bf16.mxu1 %v9854_v1 }
 0x361   :  { %1138 = vmatpush1.bf16.msra.mxu0 %v9860_v60  ;;  %1179 = vmatpush1.bf16.msra.mxu1 %v9866_v3 }
 0x362   :  { %1139 = vmatprep.subr.bf16.mxu0 %v9872_v56  ;;  %1180 = vmatprep.subr.bf16.mxu1 %v9878_v4 }
 0x365   :  { %1140 = vmatpush1.bf16.msra.mxu0 %v9884_v5  ;;  %1181 = vmatpush1.bf16.msra.mxu1 %v9890_v6 }
 0x366   :  { %1141 = vmatprep.subr.bf16.mxu0 %v9896_v38  ;;  %1182 = vmatprep.subr.bf16.mxu1 %v9902_v2 }
 0x369   :  { %1142 = vmatpush1.bf16.msra.mxu0 %v9908_v39  ;;  %1183 = vmatpush1.bf16.msra.mxu1 %v9914_v14 }
 0x36a   :  { %1143 = vmatprep.subr.bf16.mxu0 %v9920_v61  ;;  %1184 = vmatprep.subr.bf16.mxu1 %v9926_v50 }
 0x36d   :  { %1144 = vmatpush1.bf16.msra.mxu0 %v9988_v13  ;;  %1185 = vmatpush1.bf16.msra.mxu1 %v9994_v18 }
 0x36e   :  { %1145 = vmatprep.subr.bf16.mxu0 %v10000_v19  ;;  %1186 = vmatprep.subr.bf16.mxu1 %v10006_v8 }
 0x371   :  { %1146 = vmatpush1.bf16.msra.mxu0 %v10012_v20  ;;  %1187 = vmatpush1.bf16.msra.mxu1 %v10018_v10 }
 0x372   :  { %1253 = vmatprep.subr.bf16.mxu0 %v9938_v48  ;;  %1294 = vmatprep.subr.bf16.mxu1 %v9944_v7 }
 0x427   :  { %v1043_v45 = vpop.f32.mrb[28].mxu0  ;;  %v1084_v12 = vpop.f32.mrb[28].mxu1 }
 0x428   :  { %v1091_v22 = vadd.f32 %v1043_v45, %v9706_v26  ;;  %v1093_v23 = vadd.f32 %v1084_v12, %v9708_v27  ;;  %v1045_v21 = vpop.f32.mrb[29].mxu0  ;;  %v1086_v24 = vpop.f32.mrb[29].mxu1 }
 0x429   :  { %v1092_v43 = vadd.f32 %v1045_v21, %v9710_v28  ;;  %v1094_v25 = vadd.f32 %v1086_v24, %v9712_v29  ;;  %v1047_v44 = vpop.f32.mrb[30].mxu0  ;;  %v1088_v40 = vpop.f32.mrb[30].mxu1 }
 0x42a   :  { %v1095_v42 = vadd.f32 %v1091_v22, %v9759_v51  ;;  %v1048_v37 = vpop.f32.mrb[31].mxu0  ;;  %v1089_v35 = vpop.f32.mrb[31].mxu1  ;;  %v1097_v41 = vadd.f32 %v1093_v23, %v9777_v16 }
 0x42b   :  { %v1096_v34 = vadd.f32 %v1092_v43, %v9762_v54  ;;  %v1098_v26 = vadd.f32 %v1094_v25, %v9770_v9 }
 0x42c   :  { %v7310_v33 = vmul.f32 -1.442695, %v1095_v42 }
 0x42d   :  { %v7311_v32 = vmul.f32 -1.442695, %v1096_v34  ;;  %v7312_v27 = vmul.f32 -1.442695, %v1098_v26  ;;  %v12529_v26 = vld [vmem:[#allocation8_spill] sm:$0xff] }
 0x42e   :  { %8902 = vpow2.f32 %v7310_v33 }
 0x42f   :  { %8904 = vpow2.f32 %v7311_v32 }
 0x430   :  { %8906 = vpow2.f32 %v7312_v27 }
 0x431   :  { %8908 = vtanh.f32 %v1097_v41  ;;  %v12530_v41 = vld [vmem:[#allocation9_spill] sm:$0xff] }
 0x438   :  { %v8903_v28 = vpop.eup %8902 }
 0x439   :  { %v8905_v46 = vpop.eup %8904  ;;  %v1102_v29 = vadd.f32 1.0, %v8903_v28 }
 0x43a   :  { %v1108_v47 = vadd.f32 1.0, %v8905_v46  ;;  %v8907_v11 = vpop.eup %8906 }
 0x43b   :  { %8910 = vrcp.f32 %v1102_v29  ;;  %v8909_v45 = vpop.eup %8908  ;;  %v1115_v24 = vadd.f32 1.0, %v8907_v11 }
 0x43c   :  { %8912 = vrcp.f32 %v1108_v47 }
 0x43d   :  { %8914 = vrcp.f32 %v1115_v24 }
 0x445   :  { %v8911_v12 = vpop.eup %8910 }
 0x446   :  { %v8913_v22 = vpop.eup %8912  ;;  %v1119_v21 = vmul.f32 %v8911_v12, %v8909_v45 }
 0x447   :  { %v1118_v43 = vmul.f32 %v8913_v22, %v10032_v36  ;;  %v8915_v23 = vpop.eup %8914 }
 0x449   :  { %v10078_v25 = vadd.f32 %v1119_v21, %v1118_v43 }
 0x44b   :  { %8916 = vtanh.f32 %v10078_v25 }
 0x455   :  { %v8917_v44 = vpop.eup %8916 }
 0x456   :  { %v1122_v40 = vmul.f32 %v8917_v44, %v8915_v23 }
 0x458   :  { %v1130_v42 = vpack.c.bf16 %v1122_v40, %v1122_v40 }
 0x45a   :  { %1164 = vmatmul.mubr.bf16.vlgmr.msra.gmra.mrb[32].mxu0 %v1130_v42  ;;  %1205 = vmatmul.mubr.bf16.vlgmr.msra.gmra.mrb[32].mxu1 %v1130_v42 }
 0x45b   :  { %1254 = vmatpush1.bf16.msra.mxu0 %v9786_v15  ;;  %1295 = vmatpush1.bf16.msra.mxu1 %v9792_v17 }
 0x45c   :  { %1255 = vmatprep.subr.bf16.mxu0 %v9798_v52  ;;  %1296 = vmatprep.subr.bf16.mxu1 %v9804_v53 }
 0x45d   :  { %1285 = vmatprep.mubr.bf16.mxu0 %v12528_v49  ;;  %1326 = vmatprep.mubr.bf16.mxu1 %v12528_v49 }
 0x45f   :  { %1256 = vmatpush1.bf16.msra.mxu0 %v9812_v55  ;;  %1297 = vmatpush1.bf16.msra.mxu1 %v9818_v57 }
 0x460   :  { %1257 = vmatprep.subr.bf16.mxu0 %v9824_v58  ;;  %1298 = vmatprep.subr.bf16.mxu1 %v9830_v59 }
 0x463   :  { %1258 = vmatpush1.bf16.msra.mxu0 %v9836_v62  ;;  %1299 = vmatpush1.bf16.msra.mxu1 %v9842_v63 }
 0x464   :  { %1259 = vmatprep.subr.bf16.mxu0 %v9848_v0  ;;  %1300 = vmatprep.subr.bf16.mxu1 %v9854_v1 }
 0x467   :  { %1260 = vmatpush1.bf16.msra.mxu0 %v9860_v60  ;;  %1301 = vmatpush1.bf16.msra.mxu1 %v9866_v3 }
 0x468   :  { %1261 = vmatprep.subr.bf16.mxu0 %v9872_v56  ;;  %1302 = vmatprep.subr.bf16.mxu1 %v9878_v4 }
 0x46b   :  { %1262 = vmatpush1.bf16.msra.mxu0 %v9884_v5  ;;  %1303 = vmatpush1.bf16.msra.mxu1 %v9890_v6 }
 0x46c   :  { %1263 = vmatprep.subr.bf16.mxu0 %v9896_v38  ;;  %1304 = vmatprep.subr.bf16.mxu1 %v9902_v2 }
 0x46f   :  { %1264 = vmatpush1.bf16.msra.mxu0 %v9908_v39  ;;  %1305 = vmatpush1.bf16.msra.mxu1 %v9914_v14 }
 0x470   :  { %1265 = vmatprep.subr.bf16.mxu0 %v9920_v61  ;;  %1306 = vmatprep.subr.bf16.mxu1 %v9926_v50 }
 0x473   :  { %1266 = vmatpush1.bf16.msra.mxu0 %v9988_v13  ;;  %1307 = vmatpush1.bf16.msra.mxu1 %v9994_v18 }
 0x474   :  { %1267 = vmatprep.subr.bf16.mxu0 %v10000_v19  ;;  %1308 = vmatprep.subr.bf16.mxu1 %v10006_v8 }
 0x477   :  { %1268 = vmatpush1.bf16.msra.mxu0 %v10012_v20  ;;  %1309 = vmatpush1.bf16.msra.mxu1 %v10018_v10 }
 0x478   :  { %1375 = vmatprep.subr.bf16.mxu0 %v9938_v48  ;;  %1416 = vmatprep.subr.bf16.mxu1 %v9944_v7 }
 0x52d   :  { %v1165_v36 = vpop.f32.mrb[32].mxu0  ;;  %v1206_v37 = vpop.f32.mrb[32].mxu1 }
 0x52e   :  { %v1213_v35 = vadd.f32 %v1165_v36, %v9714_v30  ;;  %v1215_v34 = vadd.f32 %v1206_v37, %v9716_v31  ;;  %v1167_v33 = vpop.f32.mrb[33].mxu0  ;;  %v1208_v32 = vpop.f32.mrb[33].mxu1 }
 0x52f   :  { %v1214_v27 = vadd.f32 %v1167_v33, %v12529_v26  ;;  %v1216_v28 = vadd.f32 %v1208_v32, %v12530_v41  ;;  %v1169_v46 = vpop.f32.mrb[34].mxu0  ;;  %v1210_v29 = vpop.f32.mrb[34].mxu1 }
 0x530   :  { %v1217_v47 = vadd.f32 %v1213_v35, %v9759_v51  ;;  %v1170_v11 = vpop.f32.mrb[35].mxu0  ;;  %v1211_v45 = vpop.f32.mrb[35].mxu1  ;;  %v1219_v24 = vadd.f32 %v1215_v34, %v9777_v16 }
 0x531   :  { %v1218_v12 = vadd.f32 %v1214_v27, %v9762_v54  ;;  %v1220_v30 = vadd.f32 %v1216_v28, %v9770_v9  ;;  %v12532_v45 = vld [vmem:[#allocation11_spill] sm:$0xff] }
 0x532   :  { %v7313_v22 = vmul.f32 -1.442695, %v1217_v47  ;;  %v12531_v47 = vld [vmem:[#allocation10_spill] sm:$0xff] }
 0x533   :  { %v7314_v21 = vmul.f32 -1.442695, %v1218_v12  ;;  %v7315_v31 = vmul.f32 -1.442695, %v1220_v30  ;;  %v12533_v30 = vld [vmem:[#allocation12_spill] sm:$0xff] }
 0x534   :  { %8918 = vpow2.f32 %v7313_v22 }
 0x535   :  { %8920 = vpow2.f32 %v7314_v21 }
 0x536   :  { %8922 = vpow2.f32 %v7315_v31 }
 0x537   :  { %8924 = vtanh.f32 %v1219_v24  ;;  %v12534_v24 = vld [vmem:[#allocation13_spill] sm:$0xff] }
 0x53e   :  { %v8919_v43 = vpop.eup %8918 }
 0x53f   :  { %v8921_v23 = vpop.eup %8920  ;;  %v1224_v44 = vadd.f32 1.0, %v8919_v43 }
 0x540   :  { %v1230_v40 = vadd.f32 1.0, %v8921_v23  ;;  %v8923_v42 = vpop.eup %8922 }
 0x541   :  { %8926 = vrcp.f32 %v1224_v44  ;;  %v8925_v36 = vpop.eup %8924  ;;  %v1237_v32 = vadd.f32 1.0, %v8923_v42 }
 0x542   :  { %8928 = vrcp.f32 %v1230_v40 }
 0x543   :  { %8930 = vrcp.f32 %v1237_v32 }
 0x54b   :  { %v8927_v37 = vpop.eup %8926 }
 0x54c   :  { %v8929_v35 = vpop.eup %8928  ;;  %v1241_v33 = vmul.f32 %v8927_v37, %v8925_v36 }
 0x54d   :  { %v1240_v26 = vmul.f32 %v8929_v35, %v10078_v25  ;;  %v8931_v34 = vpop.eup %8930 }
 0x54f   :  { %v10124_v27 = vadd.f32 %v1241_v33, %v1240_v26 }
 0x551   :  { %8932 = vtanh.f32 %v10124_v27 }
 0x55b   :  { %v8933_v41 = vpop.eup %8932 }
 0x55c   :  { %v1244_v28 = vmul.f32 %v8933_v41, %v8931_v34 }
 0x55e   :  { %v1252_v46 = vpack.c.bf16 %v1244_v28, %v1244_v28 }
 0x560   :  { %1286 = vmatmul.mubr.bf16.vlgmr.msra.gmra.mrb[36].mxu0 %v1252_v46  ;;  %1327 = vmatmul.mubr.bf16.vlgmr.msra.gmra.mrb[36].mxu1 %v1252_v46 }
 0x561   :  { %1376 = vmatpush1.bf16.msra.mxu0 %v9786_v15  ;;  %1417 = vmatpush1.bf16.msra.mxu1 %v9792_v17 }
 0x562   :  { %1377 = vmatprep.subr.bf16.mxu0 %v9798_v52  ;;  %1418 = vmatprep.subr.bf16.mxu1 %v9804_v53 }
 0x563   :  { %1407 = vmatprep.mubr.bf16.mxu0 %v12528_v49  ;;  %1448 = vmatprep.mubr.bf16.mxu1 %v12528_v49 }
 0x565   :  { %1378 = vmatpush1.bf16.msra.mxu0 %v9812_v55  ;;  %1419 = vmatpush1.bf16.msra.mxu1 %v9818_v57 }
 0x566   :  { %1379 = vmatprep.subr.bf16.mxu0 %v9824_v58  ;;  %1420 = vmatprep.subr.bf16.mxu1 %v9830_v59 }
 0x569   :  { %1380 = vmatpush1.bf16.msra.mxu0 %v9836_v62  ;;  %1421 = vmatpush1.bf16.msra.mxu1 %v9842_v63 }
 0x56a   :  { %1381 = vmatprep.subr.bf16.mxu0 %v9848_v0  ;;  %1422 = vmatprep.subr.bf16.mxu1 %v9854_v1 }
 0x56d   :  { %1382 = vmatpush1.bf16.msra.mxu0 %v9860_v60  ;;  %1423 = vmatpush1.bf16.msra.mxu1 %v9866_v3 }
 0x56e   :  { %1383 = vmatprep.subr.bf16.mxu0 %v9872_v56  ;;  %1424 = vmatprep.subr.bf16.mxu1 %v9878_v4 }
 0x571   :  { %1384 = vmatpush1.bf16.msra.mxu0 %v9884_v5  ;;  %1425 = vmatpush1.bf16.msra.mxu1 %v9890_v6 }
 0x572   :  { %1385 = vmatprep.subr.bf16.mxu0 %v9896_v38  ;;  %1426 = vmatprep.subr.bf16.mxu1 %v9902_v2 }
 0x575   :  { %1386 = vmatpush1.bf16.msra.mxu0 %v9908_v39  ;;  %1427 = vmatpush1.bf16.msra.mxu1 %v9914_v14 }
 0x576   :  { %1387 = vmatprep.subr.bf16.mxu0 %v9920_v61  ;;  %1428 = vmatprep.subr.bf16.mxu1 %v9926_v50 }
 0x579   :  { %1388 = vmatpush1.bf16.msra.mxu0 %v9988_v13  ;;  %1429 = vmatpush1.bf16.msra.mxu1 %v9994_v18 }
 0x57a   :  { %1389 = vmatprep.subr.bf16.mxu0 %v10000_v19  ;;  %1430 = vmatprep.subr.bf16.mxu1 %v10006_v8 }
 0x57d   :  { %1390 = vmatpush1.bf16.msra.mxu0 %v10012_v20  ;;  %1431 = vmatpush1.bf16.msra.mxu1 %v10018_v10 }
 0x57e   :  { %1497 = vmatprep.subr.bf16.mxu0 %v9938_v48  ;;  %1538 = vmatprep.subr.bf16.mxu1 %v9944_v7 }
 0x633   :  { %v1287_v25 = vpop.f32.mrb[36].mxu0  ;;  %v1328_v29 = vpop.f32.mrb[36].mxu1 }
 0x634   :  { %v1335_v11 = vadd.f32 %v1287_v25, %v12531_v47  ;;  %v1337_v12 = vadd.f32 %v1328_v29, %v12532_v45  ;;  %v1289_v22 = vpop.f32.mrb[37].mxu0  ;;  %v1330_v21 = vpop.f32.mrb[37].mxu1 }
 0x635   :  { %v1336_v31 = vadd.f32 %v1289_v22, %v12533_v30  ;;  %v1338_v43 = vadd.f32 %v1330_v21, %v12534_v24  ;;  %v1291_v23 = vpop.f32.mrb[38].mxu0  ;;  %v1332_v44 = vpop.f32.mrb[38].mxu1 }
 0x636   :  { %v1339_v40 = vadd.f32 %v1335_v11, %v9759_v51  ;;  %v1292_v42 = vpop.f32.mrb[39].mxu0  ;;  %v1333_v48 = vpop.f32.mrb[39].mxu1  ;;  %v1341_v32 = vadd.f32 %v1337_v12, %v9777_v16 }
 0x637   :  { %v1340_v7 = vadd.f32 %v1336_v31, %v9762_v54  ;;  %v1342_v35 = vadd.f32 %v1338_v43, %v9770_v9 }
 0x638   :  { %v7316_v36 = vmul.f32 -1.442695, %v1339_v40 }
 0x639   :  { %v7317_v37 = vmul.f32 -1.442695, %v1340_v7  ;;  %v7318_v33 = vmul.f32 -1.442695, %v1342_v35  ;;  %v8363_v35 = vld [vmem:[%s12447_s5 + $0xc] ss:$16 sps:$4 sm:$0xff]  }
 0x63a   :  { %8934 = vpow2.f32 %v7316_v36 }
 0x63b   :  { %8936 = vpow2.f32 %v7317_v37  ;;  %v8360_v37 = vld [vmem:[%s12447_s5 + $0x4] ss:$16 sps:$4 sm:$0xff]  }
 0x63c   :  { %8938 = vpow2.f32 %v7318_v33  ;;  %v8358_v33 = vld [vmem:[%s12447_s5] ss:$16 sps:$4 sm:$0xff]  }
 0x63d   :  { %8940 = vtanh.f32 %v1341_v32  ;;  %v8361_v32 = vld [vmem:[%s12447_s5 + $0x8] ss:$16 sps:$4 sm:$0xff]  }
 0x644   :  { %v8935_v26 = vpop.eup %8934 }
 0x645   :  { %v8937_v34 = vpop.eup %8936  ;;  %v1346_v41 = vadd.f32 1.0, %v8935_v26  ;;  %v8366_v26 = vld [vmem:[%s12447_s5 + $0x24] ss:$16 sps:$4 sm:$0xff]  }
 0x646   :  { %v1352_v28 = vadd.f32 1.0, %v8937_v34  ;;  %v8939_v46 = vpop.eup %8938  ;;  %v8369_v34 = vld [vmem:[%s12447_s5 + $0x2c] ss:$16 sps:$4 sm:$0xff]  }
 0x647   :  { %8942 = vrcp.f32 %v1346_v41  ;;  %v8941_v25 = vpop.eup %8940  ;;  %v1359_v45 = vadd.f32 1.0, %v8939_v46  ;;  %v8364_v41 = vld [vmem:[%s12447_s5 + $0x20] ss:$16 sps:$4 sm:$0xff]   ;;  %v8372_v46 = vld [vmem:[%s12447_s5 + $0x44] ss:$16 sps:$4 sm:$0xff]  }
 0x648   :  { %8944 = vrcp.f32 %v1352_v28  ;;  %v8367_v28 = vld [vmem:[%s12447_s5 + $0x28] ss:$16 sps:$4 sm:$0xff]  }
 0x649   :  { %8946 = vrcp.f32 %v1359_v45  ;;  %v8381_v45 = vld [vmem:[%s12447_s5 + $0x6c] ss:$16 sps:$4 sm:$0xff]  }
 0x651   :  { %v8943_v29 = vpop.eup %8942 }
 0x652   :  { %v8945_v47 = vpop.eup %8944  ;;  %v1363_v11 = vmul.f32 %v8943_v29, %v8941_v25  ;;  %v8375_v25 = vld [vmem:[%s12447_s5 + $0x4c] ss:$16 sps:$4 sm:$0xff]   ;;  %v8370_v29 = vld [vmem:[%s12447_s5 + $0x40] ss:$16 sps:$4 sm:$0xff]  }
 0x653   :  { %v1362_v22 = vmul.f32 %v8945_v47, %v10124_v27  ;;  %v8947_v12 = vpop.eup %8946  ;;  %v8373_v47 = vld [vmem:[%s12447_s5 + $0x48] ss:$16 sps:$4 sm:$0xff]  }
 0x655   :  { %v10170_v21 = vadd.f32 %v1363_v11, %v1362_v22  ;;  %v8378_v11 = vld [vmem:[%s12447_s5 + $0x64] ss:$16 sps:$4 sm:$0xff]   ;;  %v8376_v22 = vld [vmem:[%s12447_s5 + $0x60] ss:$16 sps:$4 sm:$0xff]  }
 0x657   :  { %8948 = vtanh.f32 %v10170_v21 }
 0x661   :  { %v8949_v30 = vpop.eup %8948 }
 0x662   :  { %v1366_v31 = vmul.f32 %v8949_v30, %v8947_v12  ;;  %v8384_v12 = vld [vmem:[%s12447_s5 + $0x84] ss:$16 sps:$4 sm:$0xff]   ;;  %v8387_v30 = vld [vmem:[%s12447_s5 + $0x8c] ss:$16 sps:$4 sm:$0xff]  }
 0x664   :  { %v1374_v24 = vpack.c.bf16 %v1366_v31, %v1366_v31  ;;  %v8382_v31 = vld [vmem:[%s12447_s5 + $0x80] ss:$16 sps:$4 sm:$0xff]  }
 0x666   :  { %1408 = vmatmul.mubr.bf16.vlgmr.msra.gmra.mrb[40].mxu0 %v1374_v24  ;;  %1449 = vmatmul.mubr.bf16.vlgmr.msra.gmra.mrb[40].mxu1 %v1374_v24  ;;  %v8385_v24 = vld [vmem:[%s12447_s5 + $0x88] ss:$16 sps:$4 sm:$0xff]  }
 0x667   :  { %1498 = vmatpush1.bf16.msra.mxu0 %v9786_v15  ;;  %1539 = vmatpush1.bf16.msra.mxu1 %v9792_v17  ;;  %v12536_v15 = vld [vmem:[#allocation16_spill] sm:$0xff] }
 0x668   :  { %1499 = vmatprep.subr.bf16.mxu0 %v9798_v52  ;;  %1540 = vmatprep.subr.bf16.mxu1 %v9804_v53  ;;  %v12537_v52 = vld [vmem:[#allocation17_spill] sm:$0xff] }
 0x669   :  { %1529 = vmatprep.mubr.bf16.mxu0 %v12528_v49  ;;  %1570 = vmatprep.mubr.bf16.mxu1 %v12528_v49 }
 0x66b   :  { %1500 = vmatpush1.bf16.msra.mxu0 %v9812_v55  ;;  %1541 = vmatpush1.bf16.msra.mxu1 %v9818_v57  ;;  %v12538_v55 = vld [vmem:[#allocation18_spill] sm:$0xff] }
 0x66c   :  { %1501 = vmatprep.subr.bf16.mxu0 %v9824_v58  ;;  %1542 = vmatprep.subr.bf16.mxu1 %v9830_v59 }
 0x66f   :  { %1502 = vmatpush1.bf16.msra.mxu0 %v9836_v62  ;;  %1543 = vmatpush1.bf16.msra.mxu1 %v9842_v63 }
 0x670   :  { %1503 = vmatprep.subr.bf16.mxu0 %v9848_v0  ;;  %1544 = vmatprep.subr.bf16.mxu1 %v9854_v1 }
 0x673   :  { %1504 = vmatpush1.bf16.msra.mxu0 %v9860_v60  ;;  %1545 = vmatpush1.bf16.msra.mxu1 %v9866_v3 }
 0x674   :  { %1505 = vmatprep.subr.bf16.mxu0 %v9872_v56  ;;  %1546 = vmatprep.subr.bf16.mxu1 %v9878_v4 }
 0x677   :  { %1506 = vmatpush1.bf16.msra.mxu0 %v9884_v5  ;;  %1547 = vmatpush1.bf16.msra.mxu1 %v9890_v6 }
 0x678   :  { %1507 = vmatprep.subr.bf16.mxu0 %v9896_v38  ;;  %1548 = vmatprep.subr.bf16.mxu1 %v9902_v2 }
 0x67b   :  { %1508 = vmatpush1.bf16.msra.mxu0 %v9908_v39  ;;  %1549 = vmatpush1.bf16.msra.mxu1 %v9914_v14  ;;  %v12535_v39 = vld [vmem:[#allocation15_spill] sm:$0xff] }
 0x67c   :  { %1509 = vmatprep.subr.bf16.mxu0 %v9920_v61  ;;  %1550 = vmatprep.subr.bf16.mxu1 %v9926_v50 }
 0x67f   :  { %1510 = vmatpush1.bf16.msra.mxu0 %v9988_v13  ;;  %1551 = vmatpush1.bf16.msra.mxu1 %v9994_v18 }
 0x680   :  { %1511 = vmatprep.subr.bf16.mxu0 %v10000_v19  ;;  %1552 = vmatprep.subr.bf16.mxu1 %v10006_v8 }
 0x683   :  { %1512 = vmatpush1.bf16.msra.mxu0 %v10012_v20  ;;  %1553 = vmatpush1.bf16.msra.mxu1 %v10018_v10 }
 0x684   :  { %1826 = vmatprep.subr.bf16.mxu0 %v8360_v37  ;;  %1867 = vmatprep.subr.bf16.mxu1 %v8363_v35 }
 0x739   :  { %v1409_v2 = vpop.f32.mrb[40].mxu0  ;;  %v1450_v38 = vpop.f32.mrb[40].mxu1 }
 0x73a   :  { %v1457_v14 = vadd.f32 %v1409_v2, %v12535_v39  ;;  %v1459_v61 = vadd.f32 %v1450_v38, %v12536_v15  ;;  %v1411_v17 = vpop.f32.mrb[41].mxu0  ;;  %v1452_v50 = vpop.f32.mrb[41].mxu1  ;;  %v8390_v2 = vld [vmem:[%s12447_s5 + $0xa4] ss:$16 sps:$4 sm:$0xff]   ;;  %v8393_v38 = vld [vmem:[%s12447_s5 + $0xac] ss:$16 sps:$4 sm:$0xff]  }
 0x73b   :  { %v1458_v53 = vadd.f32 %v1411_v17, %v12537_v52  ;;  %v1460_v57 = vadd.f32 %v1452_v50, %v12538_v55  ;;  %v1413_v58 = vpop.f32.mrb[42].mxu0  ;;  %v1454_v59 = vpop.f32.mrb[42].mxu1  ;;  %v8388_v39 = vld [vmem:[%s12447_s5 + $0xa0] ss:$16 sps:$4 sm:$0xff]   ;;  %v8396_v15 = vld [vmem:[%s12447_s5 + $0xc4] ss:$16 sps:$4 sm:$0xff]  }
 0x73c   :  { %v1461_v62 = vadd.f32 %v1457_v14, %v9759_v51  ;;  %v1414_v63 = vpop.f32.mrb[43].mxu0  ;;  %v1455_v0 = vpop.f32.mrb[43].mxu1  ;;  %v1463_v5 = vadd.f32 %v1459_v61, %v9777_v16  ;;  %v8391_v14 = vld [vmem:[%s12447_s5 + $0xa8] ss:$16 sps:$4 sm:$0xff]   ;;  %v8399_v61 = vld [vmem:[%s12447_s5 + $0xcc] ss:$16 sps:$4 sm:$0xff]  }
 0x73d   :  { %v1462_v1 = vadd.f32 %v1458_v53, %v9762_v54  ;;  %v1464_v56 = vadd.f32 %v1460_v57, %v9770_v9  ;;  %v8394_v17 = vld [vmem:[%s12447_s5 + $0xc0] ss:$16 sps:$4 sm:$0xff]   ;;  %v8397_v50 = vld [vmem:[%s12447_s5 + $0xc8] ss:$16 sps:$4 sm:$0xff]   ;;  %v8402_v52 = vld [vmem:[%s12447_s5 + $0xe4] ss:$16 sps:$4 sm:$0xff]  }
 0x73e   :  { %v7319_v60 = vmul.f32 -1.442695, %v1461_v62  ;;  %v8405_v53 = vld [vmem:[%s12447_s5 + $0xec] ss:$16 sps:$4 sm:$0xff]   ;;  %v8400_v55 = vld [vmem:[%s12447_s5 + $0xe0] ss:$16 sps:$4 sm:$0xff]  }
 0x73f   :  { %v7320_v3 = vmul.f32 -1.442695, %v1462_v1  ;;  %v7321_v4 = vmul.f32 -1.442695, %v1464_v56  ;;  %v8403_v57 = vld [vmem:[%s12447_s5 + $0xe8] ss:$16 sps:$4 sm:$0xff]  }
 0x740   :  { %8950 = vpow2.f32 %v7319_v60  ;;  %v8408_v58 = vld [vmem:[%s12447_s5 + $0x104] ss:$16 sps:$4 sm:$0xff]   ;;  %v8411_v59 = vld [vmem:[%s12447_s5 + $0x10c] ss:$16 sps:$4 sm:$0xff]  }
 0x741   :  { %8952 = vpow2.f32 %v7320_v3  ;;  %v12539_v0 = vld [vmem:[#allocation19_spill] sm:$0xff]  ;;  %v12540_v60 = vld [vmem:[#allocation20_spill] sm:$0xff] }
 0x742   :  { %8954 = vpow2.f32 %v7321_v4 }
 0x743   :  { %8956 = vtanh.f32 %v1463_v5  ;;  %v12541_v5 = vld [vmem:[#allocation21_spill] sm:$0xff] }
 0x74a   :  { %v8951_v6 = vpop.eup %8950 }
 0x74b   :  { %v8953_v13 = vpop.eup %8952  ;;  %v1468_v18 = vadd.f32 1.0, %v8951_v6 }
 0x74c   :  { %v1474_v19 = vadd.f32 1.0, %v8953_v13  ;;  %v8955_v8 = vpop.eup %8954  ;;  %v12542_v13 = vld [vmem:[#allocation22_spill] sm:$0xff] }
 0x74d   :  { %8958 = vrcp.f32 %v1468_v18  ;;  %v8957_v20 = vpop.eup %8956  ;;  %v1481_v23 = vadd.f32 1.0, %v8955_v8 }
 0x74e   :  { %8960 = vrcp.f32 %v1474_v19 }
 0x74f   :  { %8962 = vrcp.f32 %v1481_v23 }
 0x757   :  { %v8959_v10 = vpop.eup %8958 }
 0x758   :  { %v8961_v27 = vpop.eup %8960  ;;  %v1485_v43 = vmul.f32 %v8959_v10, %v8957_v20 }
 0x759   :  { %v1484_v44 = vmul.f32 %v8961_v27, %v10170_v21  ;;  %v8963_v42 = vpop.eup %8962  ;;  %v8379_v21 = vld [vmem:[%s12447_s5 + $0x68] ss:$16 sps:$4 sm:$0xff]  }
 0x75b   :  { %v10214_v40 = vadd.f32 %v1485_v43, %v1484_v44 }
 0x75d   :  { %8964 = vtanh.f32 %v10214_v40 }
 0x767   :  { %v8965_v48 = vpop.eup %8964 }
 0x768   :  { %v1488_v7 = vmul.f32 %v8965_v48, %v8963_v42 }
 0x76a   :  { %v1496_v36 = vpack.c.bf16 %v1488_v7, %v1488_v7 }
 0x76c   :  { %1530 = vmatmul.mubr.bf16.vlgmr.msra.gmra.mrb[44].mxu0 %v1496_v36  ;;  %1571 = vmatmul.mubr.bf16.vlgmr.msra.gmra.mrb[44].mxu1 %v1496_v36 }
 0x76d   :  { %1858 = vmatprep.mubr.bf16.mxu0 %v12528_v49  ;;  %1899 = vmatprep.mubr.bf16.mxu1 %v12528_v49 }
 0x76e   :  { %1827 = vmatpush1.bf16.msra.mxu0 %v8358_v33  ;;  %1868 = vmatpush1.bf16.msra.mxu1 %v8361_v32 }
 0x76f   :  { %1828 = vmatprep.subr.bf16.mxu0 %v8366_v26  ;;  %1869 = vmatprep.subr.bf16.mxu1 %v8369_v34 }
 0x772   :  { %1829 = vmatpush1.bf16.msra.mxu0 %v8364_v41  ;;  %1870 = vmatpush1.bf16.msra.mxu1 %v8367_v28 }
 0x773   :  { %1830 = vmatprep.subr.bf16.mxu0 %v8372_v46  ;;  %1871 = vmatprep.subr.bf16.mxu1 %v8375_v25 }
 0x776   :  { %1831 = vmatpush1.bf16.msra.mxu0 %v8370_v29  ;;  %1872 = vmatpush1.bf16.msra.mxu1 %v8373_v47  ;;  %v8406_v29 = vld [vmem:[%s12447_s5 + $0x100] ss:$16 sps:$4 sm:$0xff]   ;;  %v8409_v47 = vld [vmem:[%s12447_s5 + $0x108] ss:$16 sps:$4 sm:$0xff]  }
 0x777   :  { %1832 = vmatprep.subr.bf16.mxu0 %v8378_v11  ;;  %1873 = vmatprep.subr.bf16.mxu1 %v8381_v45  ;;  %v8417_v45 = vld [vmem:[%s12447_s5 + $0x12c] ss:$16 sps:$4 sm:$0xff]  }
 0x77a   :  { %1833 = vmatpush1.bf16.msra.mxu0 %v8376_v22  ;;  %1874 = vmatpush1.bf16.msra.mxu1 %v8379_v21  ;;  %v8412_v22 = vld [vmem:[%s12447_s5 + $0x120] ss:$16 sps:$4 sm:$0xff]   ;;  %v8415_v21 = vld [vmem:[%s12447_s5 + $0x128] ss:$16 sps:$4 sm:$0xff]  }
 0x77b   :  { %1834 = vmatprep.subr.bf16.mxu0 %v8384_v12  ;;  %1875 = vmatprep.subr.bf16.mxu1 %v8387_v30  ;;  %v8420_v12 = vld [vmem:[%s12447_s5 + $0x144] ss:$16 sps:$4 sm:$0xff]   ;;  %v8423_v30 = vld [vmem:[%s12447_s5 + $0x14c] ss:$16 sps:$4 sm:$0xff]  }
 0x77e   :  { %1835 = vmatpush1.bf16.msra.mxu0 %v8382_v31  ;;  %1876 = vmatpush1.bf16.msra.mxu1 %v8385_v24  ;;  %v8418_v31 = vld [vmem:[%s12447_s5 + $0x140] ss:$16 sps:$4 sm:$0xff]   ;;  %v8421_v24 = vld [vmem:[%s12447_s5 + $0x148] ss:$16 sps:$4 sm:$0xff]  }
 0x77f   :  { %1836 = vmatprep.subr.bf16.mxu0 %v8390_v2  ;;  %1877 = vmatprep.subr.bf16.mxu1 %v8393_v38  ;;  %v8426_v2 = vld [vmem:[%s12447_s5 + $0x164] ss:$16 sps:$4 sm:$0xff]   ;;  %v8429_v38 = vld [vmem:[%s12447_s5 + $0x16c] ss:$16 sps:$4 sm:$0xff]  }
 0x782   :  { %1837 = vmatpush1.bf16.msra.mxu0 %v8388_v39  ;;  %1878 = vmatpush1.bf16.msra.mxu1 %v8391_v14  ;;  %v8424_v39 = vld [vmem:[%s12447_s5 + $0x160] ss:$16 sps:$4 sm:$0xff]   ;;  %v8427_v14 = vld [vmem:[%s12447_s5 + $0x168] ss:$16 sps:$4 sm:$0xff]  }
 0x783   :  { %1838 = vmatprep.subr.bf16.mxu0 %v8396_v15  ;;  %1879 = vmatprep.subr.bf16.mxu1 %v8399_v61  ;;  %v8432_v15 = vld [vmem:[%s12447_s5 + $0x184] ss:$16 sps:$4 sm:$0xff]   ;;  %v8435_v61 = vld [vmem:[%s12447_s5 + $0x18c] ss:$16 sps:$4 sm:$0xff]  }
 0x786   :  { %1839 = vmatpush1.bf16.msra.mxu0 %v8394_v17  ;;  %1880 = vmatpush1.bf16.msra.mxu1 %v8397_v50  ;;  %v8430_v17 = vld [vmem:[%s12447_s5 + $0x180] ss:$16 sps:$4 sm:$0xff]   ;;  %v8433_v50 = vld [vmem:[%s12447_s5 + $0x188] ss:$16 sps:$4 sm:$0xff]  }
 0x787   :  { %1840 = vmatprep.subr.bf16.mxu0 %v8402_v52  ;;  %1881 = vmatprep.subr.bf16.mxu1 %v8405_v53  ;;  %v8438_v52 = vld [vmem:[%s12447_s5 + $0x1a4] ss:$16 sps:$4 sm:$0xff]   ;;  %v8441_v53 = vld [vmem:[%s12447_s5 + $0x1ac] ss:$16 sps:$4 sm:$0xff]  }
 0x78a   :  { %1841 = vmatpush1.bf16.msra.mxu0 %v8400_v55  ;;  %1882 = vmatpush1.bf16.msra.mxu1 %v8403_v57  ;;  %v8436_v55 = vld [vmem:[%s12447_s5 + $0x1a0] ss:$16 sps:$4 sm:$0xff]   ;;  %v8439_v57 = vld [vmem:[%s12447_s5 + $0x1a8] ss:$16 sps:$4 sm:$0xff]  }
 0x78b   :  { %2149 = vmatprep.subr.bf16.mxu0 %v8408_v58  ;;  %2190 = vmatprep.subr.bf16.mxu1 %v8411_v59  ;;  %v8444_v58 = vld [vmem:[%s12447_s5 + $0x1c4] ss:$16 sps:$4 sm:$0xff]   ;;  %v8447_v59 = vld [vmem:[%s12447_s5 + $0x1cc] ss:$16 sps:$4 sm:$0xff]  }
 0x83f   :  { %v1531_v62 = vpop.f32.mrb[44].mxu0  ;;  %v1572_v63 = vpop.f32.mrb[44].mxu1 }
 0x840   :  { %v1579_v1 = vadd.f32 %v1531_v62, %v12539_v0  ;;  %v1581_v3 = vadd.f32 %v1572_v63, %v12540_v60  ;;  %v1533_v56 = vpop.f32.mrb[45].mxu0  ;;  %v1574_v4 = vpop.f32.mrb[45].mxu1  ;;  %v8442_v62 = vld [vmem:[%s12447_s5 + $0x1c0] ss:$16 sps:$4 sm:$0xff]   ;;  %v8445_v63 = vld [vmem:[%s12447_s5 + $0x1c8] ss:$16 sps:$4 sm:$0xff]  }
 0x841   :  { %v1580_v6 = vadd.f32 %v1533_v56, %v12541_v5  ;;  %v1582_v18 = vadd.f32 %v1574_v4, %v12542_v13  ;;  %v1535_v19 = vpop.f32.mrb[46].mxu0  ;;  %v1576_v8 = vpop.f32.mrb[46].mxu1  ;;  %v8450_v0 = vld [vmem:[%s12447_s5 + $0x1e4] ss:$16 sps:$4 sm:$0xff]   ;;  %v8448_v60 = vld [vmem:[%s12447_s5 + $0x1e0] ss:$16 sps:$4 sm:$0xff]  }
 0x842   :  { %v1583_v20 = vadd.f32 %v1579_v1, %v9759_v51  ;;  %v1536_v10 = vpop.f32.mrb[47].mxu0  ;;  %v1577_v27 = vpop.f32.mrb[47].mxu1  ;;  %v1585_v7 = vadd.f32 %v1581_v3, %v9777_v16  ;;  %v8453_v1 = vld [vmem:[%s12447_s5 + $0x1ec] ss:$16 sps:$4 sm:$0xff]   ;;  %v8451_v3 = vld [vmem:[%s12447_s5 + $0x1e8] ss:$16 sps:$4 sm:$0xff]  }
 0x843   :  { %v1584_v43 = vadd.f32 %v1580_v6, %v9762_v54  ;;  %v1586_v42 = vadd.f32 %v1582_v18, %v9770_v9  ;;  %v10436_v56 = vld [vmem:[%s12448_s6 + $0x4] ss:$16 sps:$4 sm:$0xff]   ;;  %v10441_v4 = vld [vmem:[%s12448_s6 + $0xc] ss:$16 sps:$4 sm:$0xff]   ;;  %v10446_v5 = vld [vmem:[%s12448_s6] ss:$16 sps:$4 sm:$0xff]  }
 0x844   :  { %v7322_v23 = vmul.f32 -1.442695, %v1583_v20  ;;  %v10451_v6 = vld [vmem:[%s12448_s6 + $0x8] ss:$16 sps:$4 sm:$0xff]   ;;  %v10460_v13 = vld [vmem:[%s12448_s6 + $0x24] ss:$16 sps:$4 sm:$0xff]  }
 0x845   :  { %v7323_v44 = vmul.f32 -1.442695, %v1584_v43  ;;  %v7324_v48 = vmul.f32 -1.442695, %v1586_v42  ;;  %v10465_v18 = vld [vmem:[%s12448_s6 + $0x2c] ss:$16 sps:$4 sm:$0xff]  }
 0x846   :  { %8966 = vpow2.f32 %v7322_v23  ;;  %v10470_v19 = vld [vmem:[%s12448_s6 + $0x20] ss:$16 sps:$4 sm:$0xff]   ;;  %v10475_v8 = vld [vmem:[%s12448_s6 + $0x28] ss:$16 sps:$4 sm:$0xff]   ;;  %v10484_v20 = vld [vmem:[%s12448_s6 + $0x44] ss:$16 sps:$4 sm:$0xff]  }
 0x847   :  { %8968 = vpow2.f32 %v7323_v44  ;;  %v10489_v10 = vld [vmem:[%s12448_s6 + $0x4c] ss:$16 sps:$4 sm:$0xff]   ;;  %v10494_v27 = vld [vmem:[%s12448_s6 + $0x40] ss:$16 sps:$4 sm:$0xff]   ;;  %v10499_v43 = vld [vmem:[%s12448_s6 + $0x48] ss:$16 sps:$4 sm:$0xff]  }
 0x848   :  { %8970 = vpow2.f32 %v7324_v48  ;;  %v10508_v23 = vld [vmem:[%s12448_s6 + $0x64] ss:$16 sps:$4 sm:$0xff]   ;;  %v10513_v44 = vld [vmem:[%s12448_s6 + $0x6c] ss:$16 sps:$4 sm:$0xff]   ;;  %v10518_v42 = vld [vmem:[%s12448_s6 + $0x60] ss:$16 sps:$4 sm:$0xff]  }
 0x849   :  { %8972 = vtanh.f32 %v1585_v7  ;;  %v10523_v48 = vld [vmem:[%s12448_s6 + $0x68] ss:$16 sps:$4 sm:$0xff]   ;;  %v10532_v7 = vld [vmem:[%s12448_s6 + $0x84] ss:$16 sps:$4 sm:$0xff]  }
 0x850   :  { %v8967_v36 = vpop.eup %8966 }
 0x851   :  { %v8969_v37 = vpop.eup %8968  ;;  %v1590_v35 = vadd.f32 1.0, %v8967_v36  ;;  %v10537_v36 = vld [vmem:[%s12448_s6 + $0x8c] ss:$16 sps:$4 sm:$0xff]  }
 0x852   :  { %v1596_v33 = vadd.f32 1.0, %v8969_v37  ;;  %v8971_v51 = vpop.eup %8970  ;;  %v10542_v37 = vld [vmem:[%s12448_s6 + $0x80] ss:$16 sps:$4 sm:$0xff]  }
 0x853   :  { %8974 = vrcp.f32 %v1590_v35  ;;  %v8973_v32 = vpop.eup %8972  ;;  %v1603_v41 = vadd.f32 1.0, %v8971_v51  ;;  %v10547_v35 = vld [vmem:[%s12448_s6 + $0x88] ss:$16 sps:$4 sm:$0xff]   ;;  %v10561_v51 = vld [vmem:[%s12448_s6 + $0xac] ss:$16 sps:$4 sm:$0xff]  }
 0x854   :  { %8976 = vrcp.f32 %v1596_v33  ;;  %v10556_v33 = vld [vmem:[%s12448_s6 + $0xa4] ss:$16 sps:$4 sm:$0xff]  }
 0x855   :  { %8978 = vrcp.f32 %v1603_v41  ;;  %v10590_v41 = vld [vmem:[%s12448_s6 + $0xc0] ss:$16 sps:$4 sm:$0xff]  }
 0x85d   :  { %v8975_v54 = vpop.eup %8974 }
 0x85e   :  { %v8977_v26 = vpop.eup %8976  ;;  %v1607_v34 = vmul.f32 %v8975_v54, %v8973_v32  ;;  %v10566_v32 = vld [vmem:[%s12448_s6 + $0xa0] ss:$16 sps:$4 sm:$0xff]   ;;  %v10571_v54 = vld [vmem:[%s12448_s6 + $0xa8] ss:$16 sps:$4 sm:$0xff]  }
 0x85f   :  { %v1606_v28 = vmul.f32 %v8977_v26, %v10214_v40  ;;  %v8979_v16 = vpop.eup %8978  ;;  %v8414_v40 = vld [vmem:[%s12447_s5 + $0x124] ss:$16 sps:$4 sm:$0xff]  }
 0x860   :  { %v10580_v26 = vld [vmem:[%s12448_s6 + $0xc4] ss:$16 sps:$4 sm:$0xff]  }
 0x861   :  { %v10330_v9 = vadd.f32 %v1607_v34, %v1606_v28  ;;  %v10585_v34 = vld [vmem:[%s12448_s6 + $0xcc] ss:$16 sps:$4 sm:$0xff]   ;;  %v10595_v28 = vld [vmem:[%s12448_s6 + $0xc8] ss:$16 sps:$4 sm:$0xff]  }
 0x863   :  { %8980 = vtanh.f32 %v10330_v9 }
 0x86d   :  { %v8981_v46 = vpop.eup %8980 }
 0x86e   :  { %v1610_v25 = vmul.f32 %v8981_v46, %v8979_v16  ;;  %v10604_v16 = vld [vmem:[%s12448_s6 + $0xe4] ss:$16 sps:$4 sm:$0xff]   ;;  %v10609_v46 = vld [vmem:[%s12448_s6 + $0xec] ss:$16 sps:$4 sm:$0xff]  }
 0x870   :  { %v10339_v11 = vpack.c.bf16 %v1610_v25, %v1610_v25  ;;  %v10614_v25 = vld [vmem:[%s12448_s6 + $0xe0] ss:$16 sps:$4 sm:$0xff]  }
 0x872   :  { %1859 = vmatmul.mubr.bf16.vlgmr.msra.gmra.mrb[48].mxu0 %v10339_v11  ;;  %1900 = vmatmul.mubr.bf16.vlgmr.msra.gmra.mrb[48].mxu1 %v10339_v11 }
 0x873   :  { %2150 = vmatpush1.bf16.msra.mxu0 %v8406_v29  ;;  %2191 = vmatpush1.bf16.msra.mxu1 %v8409_v47  ;;  %v10619_v29 = vld [vmem:[%s12448_s6 + $0xe8] ss:$16 sps:$4 sm:$0xff]   ;;  %v10628_v47 = vld [vmem:[%s12448_s6 + $0x104] ss:$16 sps:$4 sm:$0xff]  }
 0x874   :  { %2151 = vmatprep.subr.bf16.mxu0 %v8414_v40  ;;  %2192 = vmatprep.subr.bf16.mxu1 %v8417_v45  ;;  %v1644_v40 = vld [vmem:[%s12449_s7] sm:$0xf]  ;;  %v12543_v45 = vld [vmem:[#allocation23_spill] sm:$0xff] }
 0x875   :  { %2181 = vmatprep.mubr.bf16.mxu0 %v12528_v49  ;;  %2222 = vmatprep.mubr.bf16.mxu1 %v12528_v49 }
 0x877   :  { %2152 = vmatpush1.bf16.msra.mxu0 %v8412_v22  ;;  %2193 = vmatpush1.bf16.msra.mxu1 %v8415_v21  ;;  %v1649_v22 = vrot.slane %v1644_v40, %v12543_v45  ;;  %v12544_v21 = vld [vmem:[#allocation24_spill] sm:$0xff] }
 0x878   :  { %2153 = vmatprep.subr.bf16.mxu0 %v8420_v12  ;;  %2194 = vmatprep.subr.bf16.mxu1 %v8423_v30  ;;  %v1653_v12 = vrot.slane %v1644_v40, %v12544_v21 }
 0x87b   :  { %2154 = vmatpush1.bf16.msra.mxu0 %v8418_v31  ;;  %2195 = vmatpush1.bf16.msra.mxu1 %v8421_v24 }
 0x87c   :  { %2155 = vmatprep.subr.bf16.mxu0 %v8426_v2  ;;  %2196 = vmatprep.subr.bf16.mxu1 %v8429_v38 }
 0x87f   :  { %2156 = vmatpush1.bf16.msra.mxu0 %v8424_v39  ;;  %2197 = vmatpush1.bf16.msra.mxu1 %v8427_v14 }
 0x880   :  { %2157 = vmatprep.subr.bf16.mxu0 %v8432_v15  ;;  %2198 = vmatprep.subr.bf16.mxu1 %v8435_v61 }
 0x883   :  { %2158 = vmatpush1.bf16.msra.mxu0 %v8430_v17  ;;  %2199 = vmatpush1.bf16.msra.mxu1 %v8433_v50 }
 0x884   :  { %2159 = vmatprep.subr.bf16.mxu0 %v8438_v52  ;;  %2200 = vmatprep.subr.bf16.mxu1 %v8441_v53  ;;  %v12545_v53 = vld [vmem:[#allocation25_spill] sm:$0xff] }
 0x887   :  { %2160 = vmatpush1.bf16.msra.mxu0 %v8436_v55  ;;  %2201 = vmatpush1.bf16.msra.mxu1 %v8439_v57  ;;  %v1661_v55 = vrot.slane %v1644_v40, %v12545_v53 }
 0x888   :  { %2161 = vmatprep.subr.bf16.mxu0 %v8444_v58  ;;  %2202 = vmatprep.subr.bf16.mxu1 %v8447_v59  ;;  %v12546_v58 = vld [vmem:[#allocation26_spill] sm:$0xff] }
 0x889   :  { %v1657_v59 = vrot.slane %v1644_v40, %v12546_v58 }
 0x88b   :  { %2162 = vmatpush1.bf16.msra.mxu0 %v8442_v62  ;;  %2203 = vmatpush1.bf16.msra.mxu1 %v8445_v63 }
 0x88c   :  { %2163 = vmatprep.subr.bf16.mxu0 %v8450_v0  ;;  %2204 = vmatprep.subr.bf16.mxu1 %v8453_v1 }
 0x88f   :  { %2164 = vmatpush1.bf16.msra.mxu0 %v8448_v60  ;;  %2205 = vmatpush1.bf16.msra.mxu1 %v8451_v3 }
 0x890   :  { %2471 = vmatprep.subr.bf16.mxu0 %v10436_v56  ;;  %2512 = vmatprep.subr.bf16.mxu1 %v10441_v4 }
 0x892   :  { %2182 = vmatmul.mubr.bf16.vlgmr.msra.gmra.mrb[52].mxu0 %v10339_v11  ;;  %2223 = vmatmul.mubr.bf16.vlgmr.msra.gmra.mrb[52].mxu1 %v10339_v11  ;;  %v10633_v11 = vld [vmem:[%s12448_s6 + $0x10c] ss:$16 sps:$4 sm:$0xff]  }
 0x893   :  { %2503 = vmatprep.mubr.bf16.mxu0 %v12528_v49  ;;  %2544 = vmatprep.mubr.bf16.mxu1 %v12528_v49 }
 0x894   :  { %2472 = vmatpush1.bf16.msra.mxu0 %v10446_v5  ;;  %2513 = vmatpush1.bf16.msra.mxu1 %v10451_v6 }
 0x895   :  { %2473 = vmatprep.subr.bf16.mxu0 %v10460_v13  ;;  %2514 = vmatprep.subr.bf16.mxu1 %v10465_v18 }
 0x898   :  { %2474 = vmatpush1.bf16.msra.mxu0 %v10470_v19  ;;  %2515 = vmatpush1.bf16.msra.mxu1 %v10475_v8 }
 0x899   :  { %2475 = vmatprep.subr.bf16.mxu0 %v10484_v20  ;;  %2516 = vmatprep.subr.bf16.mxu1 %v10489_v10 }
 0x89c   :  { %2476 = vmatpush1.bf16.msra.mxu0 %v10494_v27  ;;  %2517 = vmatpush1.bf16.msra.mxu1 %v10499_v43 }
 0x89d   :  { %2477 = vmatprep.subr.bf16.mxu0 %v10508_v23  ;;  %2518 = vmatprep.subr.bf16.mxu1 %v10513_v44 }
 0x8a0   :  { %2478 = vmatpush1.bf16.msra.mxu0 %v10518_v42  ;;  %2519 = vmatpush1.bf16.msra.mxu1 %v10523_v48 }
 0x8a1   :  { %2479 = vmatprep.subr.bf16.mxu0 %v10532_v7  ;;  %2520 = vmatprep.subr.bf16.mxu1 %v10537_v36 }
 0x8a4   :  { %2480 = vmatpush1.bf16.msra.mxu0 %v10542_v37  ;;  %2521 = vmatpush1.bf16.msra.mxu1 %v10547_v35 }
 0x8a5   :  { %2481 = vmatprep.subr.bf16.mxu0 %v10556_v33  ;;  %2522 = vmatprep.subr.bf16.mxu1 %v10561_v51 }
 0x8a8   :  { %2482 = vmatpush1.bf16.msra.mxu0 %v10566_v32  ;;  %2523 = vmatpush1.bf16.msra.mxu1 %v10571_v54 }
 0x8a9   :  { %2483 = vmatprep.subr.bf16.mxu0 %v10580_v26  ;;  %2524 = vmatprep.subr.bf16.mxu1 %v10585_v34 }
 0x8ac   :  { %2484 = vmatpush1.bf16.msra.mxu0 %v10590_v41  ;;  %2525 = vmatpush1.bf16.msra.mxu1 %v10595_v28 }
 0x8ad   :  { %2485 = vmatprep.subr.bf16.mxu0 %v10604_v16  ;;  %2526 = vmatprep.subr.bf16.mxu1 %v10609_v46 }
 0x8b0   :  { %2486 = vmatpush1.bf16.msra.mxu0 %v10614_v25  ;;  %2527 = vmatpush1.bf16.msra.mxu1 %v10619_v29 }
 0x8b1   :  { %2796 = vmatprep.subr.bf16.mxu0 %v10628_v47  ;;  %2837 = vmatprep.subr.bf16.mxu1 %v10633_v11 }
 0x945   :  { %v1860_v30 = vpop.f32.mrb[48].mxu0  ;;  %v1901_v31 = vpop.f32.mrb[48].mxu1 }
 0x946   :  { %v1861_v24 = vadd.f32 %v1860_v30, %v1649_v22  ;;  %v1862_v2 = vpop.f32.mrb[49].mxu0  ;;  %v1903_v38 = vpop.f32.mrb[49].mxu1  ;;  %v1902_v63 = vadd.f32 %v1901_v31, %v1657_v59 }
 0x947   :  { %v1863_v39 = vadd.f32 %v1862_v2, %v1653_v12  ;;  %v1864_v14 = vpop.f32.mrb[50].mxu0  ;;  %v1905_v15 = vpop.f32.mrb[50].mxu1  ;;  %v1904_v57 = vadd.f32 %v1903_v38, %v1661_v55  ;;  %v7392_v12 = vld [vmem:[%s12449_s7 + $0x4] sm:$0xf] }
 0x948   :  { %v7357_v61 = vmul.f32 -1.442695, %v1861_v24  ;;  %v1865_v17 = vpop.f32.mrb[51].mxu0  ;;  %v1906_v50 = vpop.f32.mrb[51].mxu1  ;;  %v1972_v31 = vrot.slane %v7392_v12, %v12543_v45  ;;  %v1976_v14 = vrot.slane %v7392_v12, %v12544_v21 }
 0x949   :  { %v7358_v52 = vmul.f32 -1.442695, %v1863_v39  ;;  %v7359_v62 = vmul.f32 -1.442695, %v1904_v57 }
 0x94a   :  { %8982 = vpow2.f32 %v7357_v61 }
 0x94b   :  { %8984 = vpow2.f32 %v7358_v52 }
 0x94c   :  { %8986 = vpow2.f32 %v7359_v62 }
 0x94d   :  { %8988 = vtanh.f32 %v1902_v63 }
 0x954   :  { %v8983_v0 = vpop.eup %8982 }
 0x955   :  { %v8985_v1 = vpop.eup %8984  ;;  %v1911_v60 = vadd.f32 1.0, %v8983_v0 }
 0x956   :  { %v1917_v3 = vadd.f32 1.0, %v8985_v1  ;;  %v8987_v22 = vpop.eup %8986 }
 0x957   :  { %8990 = vrcp.f32 %v1911_v60  ;;  %v8989_v30 = vpop.eup %8988  ;;  %v1924_v40 = vadd.f32 1.0, %v8987_v22 }
 0x958   :  { %8992 = vrcp.f32 %v1917_v3  ;;  %v1984_v3 = vrot.slane %v7392_v12, %v12545_v53 }
 0x959   :  { %8994 = vrcp.f32 %v1924_v40 }
 0x961   :  { %v8991_v24 = vpop.eup %8990 }
 0x962   :  { %v8993_v2 = vpop.eup %8992  ;;  %v1928_v38 = vmul.f32 %v8991_v24, %v8989_v30  ;;  %v1980_v30 = vrot.slane %v7392_v12, %v12546_v58 }
 0x963   :  { %v1927_v39 = vmul.f32 %v8993_v2, %v10330_v9  ;;  %v8995_v24 = vpop.eup %8994 }
 0x965   :  { %v10650_v15 = vadd.f32 %v1928_v38, %v1927_v39  ;;  %v2183_v61 = vpop.f32.mrb[52].mxu0  ;;  %v2224_v17 = vpop.f32.mrb[52].mxu1  ;;  %v10660_v39 = vld [vmem:[%s12448_s6 + $0x100] ss:$16 sps:$4 sm:$0xff]  }
 0x966   :  { %v2184_v50 = vadd.f32 %v2183_v61, %v1972_v31  ;;  %v2185_v52 = vpop.f32.mrb[53].mxu0  ;;  %v2226_v55 = vpop.f32.mrb[53].mxu1  ;;  %v2225_v40 = vadd.f32 %v2224_v17, %v1980_v30  ;;  %v10672_v17 = vld [vmem:[%s12448_s6 + $0x124] ss:$16 sps:$4 sm:$0xff]  }
 0x967   :  { %8996 = vtanh.f32 %v10650_v15  ;;  %v2186_v57 = vadd.f32 %v2185_v52, %v1976_v14  ;;  %v2187_v59 = vpop.f32.mrb[54].mxu0  ;;  %v2228_v62 = vpop.f32.mrb[54].mxu1  ;;  %v2227_v22 = vadd.f32 %v2226_v55, %v1984_v3  ;;  %v10665_v14 = vld [vmem:[%s12448_s6 + $0x108] ss:$16 sps:$4 sm:$0xff]   ;;  %v10722_v3 = vld [vmem:[%s12448_s6 + $0x164] ss:$16 sps:$4 sm:$0xff]  }
 0x968   :  { %v7425_v63 = vmul.f32 -1.442695, %v2184_v50  ;;  %v2188_v0 = vpop.f32.mrb[55].mxu0  ;;  %v2229_v1 = vpop.f32.mrb[55].mxu1  ;;  %v10677_v50 = vld [vmem:[%s12448_s6 + $0x12c] ss:$16 sps:$4 sm:$0xff]  }
 0x969   :  { %v7426_v60 = vmul.f32 -1.442695, %v2186_v57  ;;  %v7427_v38 = vmul.f32 -1.442695, %v2227_v22  ;;  %v10684_v59 = vld [vmem:[%s12448_s6 + $0x120] ss:$16 sps:$4 sm:$0xff]  }
 0x96a   :  { %8998 = vpow2.f32 %v7425_v63  ;;  %v10689_v62 = vld [vmem:[%s12448_s6 + $0x128] ss:$16 sps:$4 sm:$0xff]   ;;  %v10696_v63 = vld [vmem:[%s12448_s6 + $0x144] ss:$16 sps:$4 sm:$0xff]   ;;  %v10701_v0 = vld [vmem:[%s12448_s6 + $0x14c] ss:$16 sps:$4 sm:$0xff]  }
 0x96b   :  { %9000 = vpow2.f32 %v7426_v60  ;;  %v10710_v1 = vld [vmem:[%s12448_s6 + $0x140] ss:$16 sps:$4 sm:$0xff]   ;;  %v10715_v60 = vld [vmem:[%s12448_s6 + $0x148] ss:$16 sps:$4 sm:$0xff]   ;;  %12548 = vst [vmem:[#allocation9_spill] sm:$0xff] %v10722_v3 }
 0x96c   :  { %9002 = vpow2.f32 %v7427_v38  ;;  %v10727_v22 = vld [vmem:[%s12448_s6 + $0x16c] ss:$16 sps:$4 sm:$0xff]  }
 0x96d   :  { %9004 = vtanh.f32 %v2225_v40  ;;  %12549 = vst [vmem:[#allocation10_spill] sm:$0xff] %v10727_v22  ;;  %v10746_v40 = vld [vmem:[%s12448_s6 + $0x184] ss:$16 sps:$4 sm:$0xff]  }
 0x971   :  { %v8997_v2 = vpop.eup %8996 }
 0x972   :  { %v10655_v31 = vmul.f32 %v8997_v2, %v8995_v24  ;;  %v10734_v24 = vld [vmem:[%s12448_s6 + $0x160] ss:$16 sps:$4 sm:$0xff]   ;;  %v10739_v2 = vld [vmem:[%s12448_s6 + $0x168] ss:$16 sps:$4 sm:$0xff]  }
 0x974   :  { %12547 = vst [vmem:[#allocation8_spill] sm:$0xff] %v10655_v31  ;;  %v8999_v61 = vpop.eup %8998  ;;  %v2256_v12 = vpack.c.bf16 %v10655_v31, %v10655_v31 }
 0x975   :  { %v9001_v52 = vpop.eup %9000  ;;  %v2234_v55 = vadd.f32 1.0, %v8999_v61  ;;  %v10751_v61 = vld [vmem:[%s12448_s6 + $0x18c] ss:$16 sps:$4 sm:$0xff]  }
 0x976   :  { %v2240_v57 = vadd.f32 1.0, %v9001_v52  ;;  %2504 = vmatmul.mubr.bf16.vlgmr.msra.gmra.mrb[56].mxu0 %v2256_v12  ;;  %2545 = vmatmul.mubr.bf16.vlgmr.msra.gmra.mrb[56].mxu1 %v2256_v12  ;;  %v9003_v30 = vpop.eup %9002 }
 0x977   :  { %9006 = vrcp.f32 %v2234_v55  ;;  %2797 = vmatpush1.bf16.msra.mxu0 %v10660_v39  ;;  %2838 = vmatpush1.bf16.msra.mxu1 %v10665_v14  ;;  %v9005_v38 = vpop.eup %9004 }
 0x978   :  { %9008 = vrcp.f32 %v2240_v57  ;;  %2798 = vmatprep.subr.bf16.mxu0 %v10672_v17  ;;  %2839 = vmatprep.subr.bf16.mxu1 %v10677_v50  ;;  %v2247_v57 = vadd.f32 1.0, %v9003_v30  ;;  %v10776_v30 = vld [vmem:[%s12448_s6 + $0x1ac] ss:$16 sps:$4 sm:$0xff]  }
 0x979   :  { %2828 = vmatprep.mubr.bf16.mxu0 %v12528_v49  ;;  %2869 = vmatprep.mubr.bf16.mxu1 %v12528_v49  ;;  %12553 = vst [vmem:[#allocation15_spill] sm:$0xff] %v10776_v30 }
 0x97a   :  { %9010 = vrcp.f32 %v2247_v57  ;;  %v10810_v57 = vld [vmem:[%s12448_s6 + $0x1c0] ss:$16 sps:$4 sm:$0xff]  }
 0x97b   :  { %2799 = vmatpush1.bf16.msra.mxu0 %v10684_v59  ;;  %2840 = vmatpush1.bf16.msra.mxu1 %v10689_v62 }
 0x97c   :  { %2800 = vmatprep.subr.bf16.mxu0 %v10696_v63  ;;  %2841 = vmatprep.subr.bf16.mxu1 %v10701_v0 }
 0x97f   :  { %2801 = vmatpush1.bf16.msra.mxu0 %v10710_v1  ;;  %2842 = vmatpush1.bf16.msra.mxu1 %v10715_v60 }
 0x980   :  { %2802 = vmatprep.subr.bf16.mxu0 %v10722_v3  ;;  %2843 = vmatprep.subr.bf16.mxu1 %v10727_v22  ;;  %v10759_v22 = vld [vmem:[%s12448_s6 + $0x180] ss:$16 sps:$4 sm:$0xff]   ;;  %v10764_v3 = vld [vmem:[%s12448_s6 + $0x188] ss:$16 sps:$4 sm:$0xff]  }
 0x981   :  { %v9007_v12 = vpop.eup %9006  ;;  %12550 = vst [vmem:[#allocation11_spill] sm:$0xff] %v10759_v22  ;;  %12551 = vst [vmem:[#allocation12_spill] sm:$0xff] %v10764_v3 }
 0x982   :  { %v9009_v52 = vpop.eup %9008  ;;  %v2251_v55 = vmul.f32 %v9007_v12, %v9005_v38  ;;  %v10786_v12 = vld [vmem:[%s12448_s6 + $0x1a0] ss:$16 sps:$4 sm:$0xff]  }
 0x983   :  { %v2250_v31 = vmul.f32 %v9009_v52, %v10330_v9  ;;  %2803 = vmatpush1.bf16.msra.mxu0 %v10734_v24  ;;  %2844 = vmatpush1.bf16.msra.mxu1 %v10739_v2  ;;  %v10771_v9 = vld [vmem:[%s12448_s6 + $0x1a4] ss:$16 sps:$4 sm:$0xff]   ;;  %12554 = vst [vmem:[#allocation16_spill] sm:$0xff] %v10786_v12  ;;  %v10791_v52 = vld [vmem:[%s12448_s6 + $0x1a8] ss:$16 sps:$4 sm:$0xff]  }
 0x984   :  { %2804 = vmatprep.subr.bf16.mxu0 %v10746_v40  ;;  %2845 = vmatprep.subr.bf16.mxu1 %v10751_v61  ;;  %12552 = vst [vmem:[#allocation13_spill] sm:$0xff] %v10771_v9  ;;  %12555 = vst [vmem:[#allocation17_spill] sm:$0xff] %v10791_v52 }
 0x985   :  { %v10778_v38 = vadd.f32 %v2251_v55, %v2250_v31  ;;  %v10798_v31 = vld [vmem:[%s12448_s6 + $0x1c4] ss:$16 sps:$4 sm:$0xff]   ;;  %v10803_v55 = vld [vmem:[%s12448_s6 + $0x1cc] ss:$16 sps:$4 sm:$0xff]  }
 0x986   :  { %12556 = vst [vmem:[#allocation18_spill] sm:$0xff] %v10798_v31  ;;  %12557 = vst [vmem:[#allocation19_spill] sm:$0xff] %v10803_v55 }
 0x987   :  { %9012 = vtanh.f32 %v10778_v38  ;;  %2805 = vmatpush1.bf16.msra.mxu0 %v10759_v22  ;;  %2846 = vmatpush1.bf16.msra.mxu1 %v10764_v3 }
 0x988   :  { %2806 = vmatprep.subr.bf16.mxu0 %v10771_v9  ;;  %2847 = vmatprep.subr.bf16.mxu1 %v10776_v30  ;;  %v10815_v30 = vld [vmem:[%s12448_s6 + $0x1c8] ss:$16 sps:$4 sm:$0xff]   ;;  %v9011_v9 = vpop.eup %9010 }
 0x989   :  { %12558 = vst [vmem:[#allocation20_spill] sm:$0xff] %v10815_v30 }
 0x98b   :  { %2807 = vmatpush1.bf16.msra.mxu0 %v10786_v12  ;;  %2848 = vmatpush1.bf16.msra.mxu1 %v10791_v52  ;;  %v10822_v12 = vld [vmem:[%s12448_s6 + $0x1e4] ss:$16 sps:$4 sm:$0xff]   ;;  %v10827_v52 = vld [vmem:[%s12448_s6 + $0x1ec] ss:$16 sps:$4 sm:$0xff]  }
 0x98c   :  { %2808 = vmatprep.subr.bf16.mxu0 %v10798_v31  ;;  %2849 = vmatprep.subr.bf16.mxu1 %v10803_v55  ;;  %v10834_v31 = vld [vmem:[%s12448_s6 + $0x1e0] ss:$16 sps:$4 sm:$0xff]   ;;  %v10839_v55 = vld [vmem:[%s12448_s6 + $0x1e8] ss:$16 sps:$4 sm:$0xff]  }
 0x98f   :  { %2809 = vmatpush1.bf16.msra.mxu0 %v10810_v57  ;;  %2850 = vmatpush1.bf16.msra.mxu1 %v10815_v30 }
 0x990   :  { %2810 = vmatprep.subr.bf16.mxu0 %v10822_v12  ;;  %2851 = vmatprep.subr.bf16.mxu1 %v10827_v52 }
 0x991   :  { %v9013_v3 = vpop.eup %9012 }
 0x992   :  { %v10843_v22 = vmul.f32 %v9013_v3, %v9011_v9 }
 0x993   :  { %2811 = vmatpush1.bf16.msra.mxu0 %v10834_v31  ;;  %2852 = vmatpush1.bf16.msra.mxu1 %v10839_v55 }
 0x994   :  { %12559 = vst [vmem:[#allocation21_spill] sm:$0xff] %v10843_v22  ;;  %v2579_v30 = vpack.c.bf16 %v10843_v22, %v10843_v22  ;;  %3119 = vmatprep.subr.bf16.mxu0 %v10436_v56  ;;  %3160 = vmatprep.subr.bf16.mxu1 %v10441_v4  ;;  %v2289_v56 = vld [vmem:[%s12450_s8] sm:$0xf] }
 0x995   :  { %v2294_v4 = vrot.slane %v2289_v56, %v12543_v45 }
 0x996   :  { %2829 = vmatmul.mubr.bf16.vlgmr.msra.gmra.mrb[60].mxu0 %v2579_v30  ;;  %2870 = vmatmul.mubr.bf16.vlgmr.msra.gmra.mrb[60].mxu1 %v2579_v30 }
 0x997   :  { %3120 = vmatpush1.bf16.msra.mxu0 %v10446_v5  ;;  %3161 = vmatpush1.bf16.msra.mxu1 %v10451_v6  ;;  %v2298_v5 = vrot.slane %v2289_v56, %v12544_v21 }
 0x998   :  { %3121 = vmatprep.subr.bf16.mxu0 %v10460_v13  ;;  %3162 = vmatprep.subr.bf16.mxu1 %v10465_v18 }
 0x999   :  { %3151 = vmatprep.mubr.bf16.mxu0 %v12528_v49  ;;  %3192 = vmatprep.mubr.bf16.mxu1 %v12528_v49 }
 0x99b   :  { %3122 = vmatpush1.bf16.msra.mxu0 %v10470_v19  ;;  %3163 = vmatpush1.bf16.msra.mxu1 %v10475_v8 }
 0x99c   :  { %3123 = vmatprep.subr.bf16.mxu0 %v10484_v20  ;;  %3164 = vmatprep.subr.bf16.mxu1 %v10489_v10 }
 0x99f   :  { %3124 = vmatpush1.bf16.msra.mxu0 %v10494_v27  ;;  %3165 = vmatpush1.bf16.msra.mxu1 %v10499_v43 }
 0x9a0   :  { %3125 = vmatprep.subr.bf16.mxu0 %v10508_v23  ;;  %3166 = vmatprep.subr.bf16.mxu1 %v10513_v44 }
 0x9a3   :  { %3126 = vmatpush1.bf16.msra.mxu0 %v10518_v42  ;;  %3167 = vmatpush1.bf16.msra.mxu1 %v10523_v48  ;;  %v2306_v48 = vrot.slane %v2289_v56, %v12545_v53 }
 0x9a4   :  { %3127 = vmatprep.subr.bf16.mxu0 %v10532_v7  ;;  %3168 = vmatprep.subr.bf16.mxu1 %v10537_v36  ;;  %v2302_v36 = vrot.slane %v2289_v56, %v12546_v58 }
 0x9a7   :  { %3128 = vmatpush1.bf16.msra.mxu0 %v10542_v37  ;;  %3169 = vmatpush1.bf16.msra.mxu1 %v10547_v35 }
 0x9a8   :  { %3129 = vmatprep.subr.bf16.mxu0 %v10556_v33  ;;  %3170 = vmatprep.subr.bf16.mxu1 %v10561_v51 }
 0x9ab   :  { %3130 = vmatpush1.bf16.msra.mxu0 %v10566_v32  ;;  %3171 = vmatpush1.bf16.msra.mxu1 %v10571_v54 }
 0x9ac   :  { %3131 = vmatprep.subr.bf16.mxu0 %v10580_v26  ;;  %3172 = vmatprep.subr.bf16.mxu1 %v10585_v34  ;;  %v7495_v34 = vld [vmem:[%s12450_s8 + $0x4] sm:$0xf] }
 0x9af   :  { %3132 = vmatpush1.bf16.msra.mxu0 %v10590_v41  ;;  %3173 = vmatpush1.bf16.msra.mxu1 %v10595_v28 }
 0x9b0   :  { %3133 = vmatprep.subr.bf16.mxu0 %v10604_v16  ;;  %3174 = vmatprep.subr.bf16.mxu1 %v10609_v46 }
 0x9b3   :  { %3134 = vmatpush1.bf16.msra.mxu0 %v10614_v25  ;;  %3175 = vmatpush1.bf16.msra.mxu1 %v10619_v29  ;;  %v2619_v29 = vrot.slane %v7495_v34, %v12543_v45 }
 0x9b4   :  { %3442 = vmatprep.subr.bf16.mxu0 %v10628_v47  ;;  %3483 = vmatprep.subr.bf16.mxu1 %v10633_v11  ;;  %v2623_v11 = vrot.slane %v7495_v34, %v12544_v21 }
 0xa49   :  { %v2505_v6 = vpop.f32.mrb[56].mxu0  ;;  %v2546_v13 = vpop.f32.mrb[56].mxu1 }
 0xa4a   :  { %v2506_v18 = vadd.f32 %v2505_v6, %v2294_v4  ;;  %v2507_v19 = vpop.f32.mrb[57].mxu0  ;;  %v2548_v8 = vpop.f32.mrb[57].mxu1  ;;  %v2547_v35 = vadd.f32 %v2546_v13, %v2302_v36 }
 0xa4b   :  { %v2508_v20 = vadd.f32 %v2507_v19, %v2298_v5  ;;  %v2509_v10 = vpop.f32.mrb[58].mxu0  ;;  %v2550_v27 = vpop.f32.mrb[58].mxu1  ;;  %v2549_v7 = vadd.f32 %v2548_v8, %v2306_v48 }
 0xa4c   :  { %v7460_v43 = vmul.f32 -1.442695, %v2506_v18  ;;  %v2510_v23 = vpop.f32.mrb[59].mxu0  ;;  %v2551_v44 = vpop.f32.mrb[59].mxu1 }
 0xa4d   :  { %v7461_v42 = vmul.f32 -1.442695, %v2508_v20  ;;  %v7462_v37 = vmul.f32 -1.442695, %v2549_v7 }
 0xa4e   :  { %9014 = vpow2.f32 %v7460_v43  ;;  %v2627_v43 = vrot.slane %v7495_v34, %v12546_v58 }
 0xa4f   :  { %9016 = vpow2.f32 %v7461_v42 }
 0xa50   :  { %9018 = vpow2.f32 %v7462_v37 }
 0xa51   :  { %9020 = vtanh.f32 %v2547_v35 }
 0xa58   :  { %v9015_v33 = vpop.eup %9014 }
 0xa59   :  { %v9017_v51 = vpop.eup %9016  ;;  %v2556_v32 = vadd.f32 1.0, %v9015_v33 }
 0xa5a   :  { %v2562_v54 = vadd.f32 1.0, %v9017_v51  ;;  %v9019_v26 = vpop.eup %9018 }
 0xa5b   :  { %9022 = vrcp.f32 %v2556_v32  ;;  %v9021_v41 = vpop.eup %9020  ;;  %v2569_v25 = vadd.f32 1.0, %v9019_v26 }
 0xa5c   :  { %9024 = vrcp.f32 %v2562_v54 }
 0xa5d   :  { %9026 = vrcp.f32 %v2569_v25  ;;  %v10981_v25 = vld [vmem:[%s12448_s6 + $0x2c] ss:$16 sps:$4 sm:$0xff]  }
 0xa65   :  { %v9023_v28 = vpop.eup %9022 }
 0xa66   :  { %v9025_v16 = vpop.eup %9024  ;;  %v2573_v46 = vmul.f32 %v9023_v28, %v9021_v41 }
 0xa67   :  { %v2572_v47 = vmul.f32 %v9025_v16, %v10650_v15  ;;  %v2631_v15 = vrot.slane %v7495_v34, %v12545_v53  ;;  %v9027_v23 = vpop.eup %9026  ;;  %v12571_v34 = vld [vmem:[#allocation20_spill] sm:$0xff] }
 0xa69   :  { %v10898_v3 = vadd.f32 %v2573_v46, %v2572_v47  ;;  %v2830_v9 = vpop.f32.mrb[60].mxu0  ;;  %v2871_v30 = vpop.f32.mrb[60].mxu1  ;;  %v10991_v47 = vld [vmem:[%s12448_s6 + $0x28] ss:$16 sps:$4 sm:$0xff]  }
 0xa6a   :  { %v2831_v56 = vadd.f32 %v2830_v9, %v2619_v29  ;;  %v2832_v4 = vpop.f32.mrb[61].mxu0  ;;  %v2873_v5 = vpop.f32.mrb[61].mxu1  ;;  %v2872_v48 = vadd.f32 %v2871_v30, %v2627_v43  ;;  %v10986_v29 = vld [vmem:[%s12448_s6 + $0x20] ss:$16 sps:$4 sm:$0xff]   ;;  %v11005_v9 = vld [vmem:[%s12448_s6 + $0x4c] ss:$16 sps:$4 sm:$0xff]  }
 0xa6b   :  { %9028 = vtanh.f32 %v10898_v3  ;;  %v2833_v6 = vadd.f32 %v2832_v4, %v2623_v11  ;;  %v2834_v13 = vpop.f32.mrb[62].mxu0  ;;  %v2875_v18 = vpop.f32.mrb[62].mxu1  ;;  %v2874_v27 = vadd.f32 %v2873_v5, %v2631_v15  ;;  %v11000_v11 = vld [vmem:[%s12448_s6 + $0x44] ss:$16 sps:$4 sm:$0xff]   ;;  %v11010_v30 = vld [vmem:[%s12448_s6 + $0x40] ss:$16 sps:$4 sm:$0xff]  }
 0xa6c   :  { %v7528_v19 = vmul.f32 -1.442695, %v2831_v56  ;;  %v2835_v8 = vpop.f32.mrb[63].mxu0  ;;  %v2876_v20 = vpop.f32.mrb[63].mxu1  ;;  %v11015_v56 = vld [vmem:[%s12448_s6 + $0x48] ss:$16 sps:$4 sm:$0xff]  }
 0xa6d   :  { %v7529_v10 = vmul.f32 -1.442695, %v2833_v6  ;;  %v7530_v42 = vmul.f32 -1.442695, %v2874_v27  ;;  %v11024_v4 = vld [vmem:[%s12448_s6 + $0x64] ss:$16 sps:$4 sm:$0xff]  }
 0xa6e   :  { %9030 = vpow2.f32 %v7528_v19  ;;  %v11029_v5 = vld [vmem:[%s12448_s6 + $0x6c] ss:$16 sps:$4 sm:$0xff]   ;;  %v11034_v6 = vld [vmem:[%s12448_s6 + $0x60] ss:$16 sps:$4 sm:$0xff]   ;;  %v11039_v13 = vld [vmem:[%s12448_s6 + $0x68] ss:$16 sps:$4 sm:$0xff]  }
 0xa6f   :  { %9032 = vpow2.f32 %v7529_v10  ;;  %v11048_v18 = vld [vmem:[%s12448_s6 + $0x84] ss:$16 sps:$4 sm:$0xff]   ;;  %v11053_v19 = vld [vmem:[%s12448_s6 + $0x8c] ss:$16 sps:$4 sm:$0xff]   ;;  %v11058_v8 = vld [vmem:[%s12448_s6 + $0x80] ss:$16 sps:$4 sm:$0xff]  }
 0xa70   :  { %9034 = vpow2.f32 %v7530_v42  ;;  %v11063_v20 = vld [vmem:[%s12448_s6 + $0x88] ss:$16 sps:$4 sm:$0xff]   ;;  %v11072_v10 = vld [vmem:[%s12448_s6 + $0xa4] ss:$16 sps:$4 sm:$0xff]   ;;  %v11077_v15 = vld [vmem:[%s12448_s6 + $0xac] ss:$16 sps:$4 sm:$0xff]  }
 0xa71   :  { %9036 = vtanh.f32 %v2872_v48  ;;  %v11082_v27 = vld [vmem:[%s12448_s6 + $0xa0] ss:$16 sps:$4 sm:$0xff]   ;;  %v11087_v43 = vld [vmem:[%s12448_s6 + $0xa8] ss:$16 sps:$4 sm:$0xff]  }
 0xa72   :  { %v11106_v42 = vld [vmem:[%s12448_s6 + $0xc0] ss:$16 sps:$4 sm:$0xff]   ;;  %v11111_v48 = vld [vmem:[%s12448_s6 + $0xc8] ss:$16 sps:$4 sm:$0xff]  }
 0xa75   :  { %v9029_v44 = vpop.eup %9028 }
 0xa76   :  { %v10903_v7 = vmul.f32 %v9029_v44, %v9027_v23  ;;  %v11096_v23 = vld [vmem:[%s12448_s6 + $0xc4] ss:$16 sps:$4 sm:$0xff]   ;;  %v11101_v44 = vld [vmem:[%s12448_s6 + $0xcc] ss:$16 sps:$4 sm:$0xff]  }
 0xa78   :  { %12560 = vst [vmem:[#allocation22_spill] sm:$0xff] %v10903_v7  ;;  %v9031_v36 = vpop.eup %9030  ;;  %v2904_v37 = vpack.c.bf16 %v10903_v7, %v10903_v7 }
 0xa79   :  { %v9033_v35 = vpop.eup %9032  ;;  %v2881_v33 = vadd.f32 1.0, %v9031_v36  ;;  %v11120_v36 = vld [vmem:[%s12448_s6 + $0xe4] ss:$16 sps:$4 sm:$0xff]  }
 0xa7a   :  { %v2887_v51 = vadd.f32 1.0, %v9033_v35  ;;  %3152 = vmatmul.mubr.bf16.vlgmr.msra.gmra.mrb[64].mxu0 %v2904_v37  ;;  %3193 = vmatmul.mubr.bf16.vlgmr.msra.gmra.mrb[64].mxu1 %v2904_v37  ;;  %v11125_v37 = vld [vmem:[%s12448_s6 + $0xec] ss:$16 sps:$4 sm:$0xff]   ;;  %v11130_v35 = vld [vmem:[%s12448_s6 + $0xe0] ss:$16 sps:$4 sm:$0xff]  }
 0xa7b   :  { %9038 = vrcp.f32 %v2881_v33  ;;  %3443 = vmatpush1.bf16.msra.mxu0 %v10660_v39  ;;  %3484 = vmatpush1.bf16.msra.mxu1 %v10665_v14  ;;  %v9035_v39 = vpop.eup %9034  ;;  %v11135_v33 = vld [vmem:[%s12448_s6 + $0xe8] ss:$16 sps:$4 sm:$0xff]  }
 0xa7c   :  { %9040 = vrcp.f32 %v2887_v51  ;;  %3444 = vmatprep.subr.bf16.mxu0 %v10672_v17  ;;  %3485 = vmatprep.subr.bf16.mxu1 %v10677_v50  ;;  %v9037_v14 = vpop.eup %9036  ;;  %v12561_v17 = vld [vmem:[#allocation9_spill] sm:$0xff]  ;;  %v12562_v50 = vld [vmem:[#allocation10_spill] sm:$0xff] }
 0xa7d   :  { %3474 = vmatprep.mubr.bf16.mxu0 %v12528_v49  ;;  %3515 = vmatprep.mubr.bf16.mxu1 %v12528_v49  ;;  %v11144_v51 = vld [vmem:[%s12448_s6 + $0x104] ss:$16 sps:$4 sm:$0xff]  }
 0xa7f   :  { %3445 = vmatpush1.bf16.msra.mxu0 %v10684_v59  ;;  %3486 = vmatpush1.bf16.msra.mxu1 %v10689_v62  ;;  %v2894_v59 = vadd.f32 1.0, %v9035_v39  ;;  %v11149_v39 = vld [vmem:[%s12448_s6 + $0x10c] ss:$16 sps:$4 sm:$0xff]  }
 0xa80   :  { %3446 = vmatprep.subr.bf16.mxu0 %v10696_v63  ;;  %3487 = vmatprep.subr.bf16.mxu1 %v10701_v0  ;;  %v12563_v0 = vld [vmem:[#allocation11_spill] sm:$0xff] }
 0xa81   :  { %9042 = vrcp.f32 %v2894_v59 }
 0xa83   :  { %3447 = vmatpush1.bf16.msra.mxu0 %v10710_v1  ;;  %3488 = vmatpush1.bf16.msra.mxu1 %v10715_v60  ;;  %v12564_v1 = vld [vmem:[#allocation12_spill] sm:$0xff]  ;;  %v12565_v60 = vld [vmem:[#allocation13_spill] sm:$0xff] }
 0xa84   :  { %3448 = vmatprep.subr.bf16.mxu0 %v12561_v17  ;;  %3489 = vmatprep.subr.bf16.mxu1 %v12562_v50 }
 0xa85   :  { %v9039_v32 = vpop.eup %9038 }
 0xa86   :  { %v9041_v54 = vpop.eup %9040  ;;  %v2898_v26 = vmul.f32 %v9039_v32, %v9037_v14  ;;  %v2937_v14 = vld [vmem:[%s12450_s8] sm:$0xf] }
 0xa87   :  { %v2897_v62 = vmul.f32 %v9041_v54, %v10778_v38  ;;  %3449 = vmatpush1.bf16.msra.mxu0 %v10734_v24  ;;  %3490 = vmatpush1.bf16.msra.mxu1 %v10739_v2  ;;  %v12566_v38 = vld [vmem:[#allocation15_spill] sm:$0xff]  ;;  %v12567_v24 = vld [vmem:[#allocation16_spill] sm:$0xff]  ;;  %v12568_v2 = vld [vmem:[#allocation17_spill] sm:$0xff]  ;;  %v2942_v17 = vrot.slane %v2937_v14, %v12543_v45  ;;  %v2946_v50 = vrot.slane %v2937_v14, %v12544_v21 }
 0xa88   :  { %3450 = vmatprep.subr.bf16.mxu0 %v10746_v40  ;;  %3491 = vmatprep.subr.bf16.mxu1 %v10751_v61  ;;  %v12569_v40 = vld [vmem:[#allocation18_spill] sm:$0xff]  ;;  %v12570_v61 = vld [vmem:[#allocation19_spill] sm:$0xff] }
 0xa89   :  { %v10926_v63 = vadd.f32 %v2898_v26, %v2897_v62 }
 0xa8b   :  { %9044 = vtanh.f32 %v10926_v63  ;;  %3451 = vmatpush1.bf16.msra.mxu0 %v12563_v0  ;;  %3492 = vmatpush1.bf16.msra.mxu1 %v12564_v1  ;;  %v9043_v41 = vpop.eup %9042 }
 0xa8c   :  { %3452 = vmatprep.subr.bf16.mxu0 %v12565_v60  ;;  %3493 = vmatprep.subr.bf16.mxu1 %v12566_v38 }
 0xa8f   :  { %3453 = vmatpush1.bf16.msra.mxu0 %v12567_v24  ;;  %3494 = vmatpush1.bf16.msra.mxu1 %v12568_v2 }
 0xa90   :  { %3454 = vmatprep.subr.bf16.mxu0 %v12569_v40  ;;  %3495 = vmatprep.subr.bf16.mxu1 %v12570_v61  ;;  %v2954_v61 = vrot.slane %v2937_v14, %v12545_v53 }
 0xa93   :  { %3455 = vmatpush1.bf16.msra.mxu0 %v10810_v57  ;;  %3496 = vmatpush1.bf16.msra.mxu1 %v12571_v34  ;;  %v10976_v57 = vld [vmem:[%s12448_s6 + $0x24] ss:$16 sps:$4 sm:$0xff]  }
 0xa94   :  { %3456 = vmatprep.subr.bf16.mxu0 %v10822_v12  ;;  %3497 = vmatprep.subr.bf16.mxu1 %v10827_v52  ;;  %v10952_v12 = vld [vmem:[%s12448_s6 + $0x4] ss:$16 sps:$4 sm:$0xff]   ;;  %v10957_v52 = vld [vmem:[%s12448_s6 + $0xc] ss:$16 sps:$4 sm:$0xff]  }
 0xa95   :  { %v9045_v28 = vpop.eup %9044 }
 0xa96   :  { %v10941_v16 = vmul.f32 %v9045_v28, %v9043_v41  ;;  %v2950_v41 = vrot.slane %v2937_v14, %v12546_v58 }
 0xa97   :  { %3457 = vmatpush1.bf16.msra.mxu0 %v10834_v31  ;;  %3498 = vmatpush1.bf16.msra.mxu1 %v10839_v55  ;;  %v10962_v31 = vld [vmem:[%s12448_s6] ss:$16 sps:$4 sm:$0xff]   ;;  %v10967_v55 = vld [vmem:[%s12448_s6 + $0x8] ss:$16 sps:$4 sm:$0xff]  }
 0xa98   :  { %12572 = vst [vmem:[#allocation23_spill] sm:$0xff] %v10941_v16  ;;  %v3227_v46 = vpack.c.bf16 %v10941_v16, %v10941_v16  ;;  %3765 = vmatprep.subr.bf16.mxu0 %v10952_v12  ;;  %3806 = vmatprep.subr.bf16.mxu1 %v10957_v52 }
 0xa9a   :  { %3475 = vmatmul.mubr.bf16.vlgmr.msra.gmra.mrb[68].mxu0 %v3227_v46  ;;  %3516 = vmatmul.mubr.bf16.vlgmr.msra.gmra.mrb[68].mxu1 %v3227_v46 }
 0xa9b   :  { %3797 = vmatprep.mubr.bf16.mxu0 %v12528_v49  ;;  %3838 = vmatprep.mubr.bf16.mxu1 %v12528_v49 }
 0xa9c   :  { %3766 = vmatpush1.bf16.msra.mxu0 %v10962_v31  ;;  %3807 = vmatpush1.bf16.msra.mxu1 %v10967_v55 }
 0xa9d   :  { %3767 = vmatprep.subr.bf16.mxu0 %v10976_v57  ;;  %3808 = vmatprep.subr.bf16.mxu1 %v10981_v25 }
 0xaa0   :  { %3768 = vmatpush1.bf16.msra.mxu0 %v10986_v29  ;;  %3809 = vmatpush1.bf16.msra.mxu1 %v10991_v47 }
 0xaa1   :  { %3769 = vmatprep.subr.bf16.mxu0 %v11000_v11  ;;  %3810 = vmatprep.subr.bf16.mxu1 %v11005_v9 }
 0xaa4   :  { %3770 = vmatpush1.bf16.msra.mxu0 %v11010_v30  ;;  %3811 = vmatpush1.bf16.msra.mxu1 %v11015_v56 }
 0xaa5   :  { %3771 = vmatprep.subr.bf16.mxu0 %v11024_v4  ;;  %3812 = vmatprep.subr.bf16.mxu1 %v11029_v5 }
 0xaa8   :  { %3772 = vmatpush1.bf16.msra.mxu0 %v11034_v6  ;;  %3813 = vmatpush1.bf16.msra.mxu1 %v11039_v13 }
 0xaa9   :  { %3773 = vmatprep.subr.bf16.mxu0 %v11048_v18  ;;  %3814 = vmatprep.subr.bf16.mxu1 %v11053_v19 }
 0xaac   :  { %3774 = vmatpush1.bf16.msra.mxu0 %v11058_v8  ;;  %3815 = vmatpush1.bf16.msra.mxu1 %v11063_v20 }
 0xaad   :  { %3775 = vmatprep.subr.bf16.mxu0 %v11072_v10  ;;  %3816 = vmatprep.subr.bf16.mxu1 %v11077_v15 }
 0xab0   :  { %3776 = vmatpush1.bf16.msra.mxu0 %v11082_v27  ;;  %3817 = vmatpush1.bf16.msra.mxu1 %v11087_v43 }
 0xab1   :  { %3777 = vmatprep.subr.bf16.mxu0 %v11096_v23  ;;  %3818 = vmatprep.subr.bf16.mxu1 %v11101_v44 }
 0xab4   :  { %3778 = vmatpush1.bf16.msra.mxu0 %v11106_v42  ;;  %3819 = vmatpush1.bf16.msra.mxu1 %v11111_v48 }
 0xab5   :  { %3779 = vmatprep.subr.bf16.mxu0 %v11120_v36  ;;  %3820 = vmatprep.subr.bf16.mxu1 %v11125_v37 }
 0xab8   :  { %3780 = vmatpush1.bf16.msra.mxu0 %v11130_v35  ;;  %3821 = vmatpush1.bf16.msra.mxu1 %v11135_v33 }
 0xab9   :  { %4088 = vmatprep.subr.bf16.mxu0 %v11144_v51  ;;  %4129 = vmatprep.subr.bf16.mxu1 %v11149_v39 }
 0xb4d   :  { %v3153_v32 = vpop.f32.mrb[64].mxu0  ;;  %v3194_v54 = vpop.f32.mrb[64].mxu1 }
 0xb4e   :  { %v3154_v26 = vadd.f32 %v3153_v32, %v2942_v17  ;;  %v3155_v59 = vpop.f32.mrb[65].mxu0  ;;  %v3196_v62 = vpop.f32.mrb[65].mxu1  ;;  %v3195_v46 = vadd.f32 %v3194_v54, %v2950_v41 }
 0xb4f   :  { %v3156_v0 = vadd.f32 %v3155_v59, %v2946_v50  ;;  %v3157_v1 = vpop.f32.mrb[66].mxu0  ;;  %v3198_v60 = vpop.f32.mrb[66].mxu1  ;;  %v3197_v34 = vadd.f32 %v3196_v62, %v2954_v61  ;;  %v7598_v59 = vld [vmem:[%s12450_s8 + $0x4] sm:$0xf] }
 0xb50   :  { %v7563_v38 = vmul.f32 -1.442695, %v3154_v26  ;;  %v3158_v24 = vpop.f32.mrb[67].mxu0  ;;  %v3199_v2 = vpop.f32.mrb[67].mxu1  ;;  %v3265_v54 = vrot.slane %v7598_v59, %v12543_v45 }
 0xb51   :  { %v7564_v40 = vmul.f32 -1.442695, %v3156_v0  ;;  %v7565_v28 = vmul.f32 -1.442695, %v3197_v34 }
 0xb52   :  { %9046 = vpow2.f32 %v7563_v38 }
 0xb53   :  { %9048 = vpow2.f32 %v7564_v40 }
 0xb54   :  { %9050 = vpow2.f32 %v7565_v28 }
 0xb55   :  { %9052 = vtanh.f32 %v3195_v46 }
 0xb5c   :  { %v9047_v22 = vpop.eup %9046 }
 0xb5d   :  { %v9049_v17 = vpop.eup %9048  ;;  %v3204_v32 = vadd.f32 1.0, %v9047_v22  ;;  %v3269_v22 = vrot.slane %v7598_v59, %v12544_v21 }
 0xb5e   :  { %v3210_v50 = vadd.f32 1.0, %v9049_v17  ;;  %v9051_v26 = vpop.eup %9050 }
 0xb5f   :  { %9054 = vrcp.f32 %v3204_v32  ;;  %v9053_v0 = vpop.eup %9052  ;;  %v3217_v14 = vadd.f32 1.0, %v9051_v26 }
 0xb60   :  { %9056 = vrcp.f32 %v3210_v50 }
 0xb61   :  { %9058 = vrcp.f32 %v3217_v14 }
 0xb69   :  { %v9055_v1 = vpop.eup %9054 }
 0xb6a   :  { %v9057_v62 = vpop.eup %9056  ;;  %v3221_v60 = vmul.f32 %v9055_v1, %v9053_v0 }
 0xb6b   :  { %v3220_v38 = vmul.f32 %v9057_v62, %v10898_v3  ;;  %v3277_v3 = vrot.slane %v7598_v59, %v12545_v53  ;;  %v3273_v62 = vrot.slane %v7598_v59, %v12546_v58 }
 0xb6d   :  { %v11166_v24 = vadd.f32 %v3221_v60, %v3220_v38  ;;  %v3476_v2 = vpop.f32.mrb[68].mxu0  ;;  %v3517_v40 = vpop.f32.mrb[68].mxu1 }
 0xb6e   :  { %v3477_v61 = vadd.f32 %v3476_v2, %v3265_v54  ;;  %v3478_v34 = vpop.f32.mrb[69].mxu0  ;;  %v3519_v41 = vpop.f32.mrb[69].mxu1  ;;  %v3518_v38 = vadd.f32 %v3517_v40, %v3273_v62  ;;  %v11188_v40 = vld [vmem:[%s12448_s6 + $0x124] ss:$16 sps:$4 sm:$0xff]  }
 0xb6f   :  { %9060 = vtanh.f32 %v11166_v24  ;;  %v3479_v28 = vadd.f32 %v3478_v34, %v3269_v22  ;;  %v3480_v46 = vpop.f32.mrb[70].mxu0  ;;  %v3521_v17 = vpop.f32.mrb[70].mxu1  ;;  %v3520_v1 = vadd.f32 %v3519_v41, %v3277_v3  ;;  %v11176_v22 = vld [vmem:[%s12448_s6 + $0x100] ss:$16 sps:$4 sm:$0xff]   ;;  %v11193_v41 = vld [vmem:[%s12448_s6 + $0x12c] ss:$16 sps:$4 sm:$0xff]  }
 0xb70   :  { %v7631_v32 = vmul.f32 -1.442695, %v3477_v61  ;;  %v3481_v50 = vpop.f32.mrb[71].mxu0  ;;  %v3522_v26 = vpop.f32.mrb[71].mxu1  ;;  %v11181_v61 = vld [vmem:[%s12448_s6 + $0x108] ss:$16 sps:$4 sm:$0xff]  }
 0xb71   :  { %v7632_v0 = vmul.f32 -1.442695, %v3479_v28  ;;  %v9059_v60 = vpop.eup %9058  ;;  %v7633_v54 = vmul.f32 -1.442695, %v3520_v1  ;;  %v11205_v50 = vld [vmem:[%s12448_s6 + $0x128] ss:$16 sps:$4 sm:$0xff]  }
 0xb72   :  { %9062 = vpow2.f32 %v7631_v32  ;;  %v11200_v32 = vld [vmem:[%s12448_s6 + $0x120] ss:$16 sps:$4 sm:$0xff]   ;;  %v11212_v26 = vld [vmem:[%s12448_s6 + $0x144] ss:$16 sps:$4 sm:$0xff]   ;;  %v11231_v1 = vld [vmem:[%s12448_s6 + $0x148] ss:$16 sps:$4 sm:$0xff]  }
 0xb73   :  { %9064 = vpow2.f32 %v7632_v0  ;;  %v11217_v0 = vld [vmem:[%s12448_s6 + $0x14c] ss:$16 sps:$4 sm:$0xff]   ;;  %v11226_v3 = vld [vmem:[%s12448_s6 + $0x140] ss:$16 sps:$4 sm:$0xff]   ;;  %v11238_v62 = vld [vmem:[%s12448_s6 + $0x164] ss:$16 sps:$4 sm:$0xff]  }
 0xb74   :  { %9066 = vpow2.f32 %v7633_v54  ;;  %12574 = vst [vmem:[#allocation25_spill] sm:$0xff] %v11238_v62  ;;  %v11250_v54 = vld [vmem:[%s12448_s6 + $0x160] ss:$16 sps:$4 sm:$0xff]  }
 0xb75   :  { %9068 = vtanh.f32 %v3518_v38  ;;  %v11255_v38 = vld [vmem:[%s12448_s6 + $0x168] ss:$16 sps:$4 sm:$0xff]  }
 0xb79   :  { %v9061_v14 = vpop.eup %9060 }
 0xb7a   :  { %v11171_v2 = vmul.f32 %v9061_v14, %v9059_v60  ;;  %v11243_v60 = vld [vmem:[%s12448_s6 + $0x16c] ss:$16 sps:$4 sm:$0xff]  }
 0xb7b   :  { %12575 = vst [vmem:[#allocation26_spill] sm:$0xff] %v11243_v60 }
 0xb7c   :  { %12573 = vst [vmem:[#allocation24_spill] sm:$0xff] %v11171_v2  ;;  %v9063_v34 = vpop.eup %9062  ;;  %v3550_v59 = vpack.c.bf16 %v11171_v2, %v11171_v2 }
 0xb7d   :  { %v9065_v28 = vpop.eup %9064  ;;  %v3527_v46 = vadd.f32 1.0, %v9063_v34 }
 0xb7e   :  { %v3533_v17 = vadd.f32 1.0, %v9065_v28  ;;  %3798 = vmatmul.mubr.bf16.vlgmr.msra.gmra.mrb[72].mxu0 %v3550_v59  ;;  %3839 = vmatmul.mubr.bf16.vlgmr.msra.gmra.mrb[72].mxu1 %v3550_v59  ;;  %v9067_v14 = vpop.eup %9066  ;;  %v11262_v59 = vld [vmem:[%s12448_s6 + $0x184] ss:$16 sps:$4 sm:$0xff]   ;;  %v11267_v28 = vld [vmem:[%s12448_s6 + $0x18c] ss:$16 sps:$4 sm:$0xff]  }
 0xb7f   :  { %9070 = vrcp.f32 %v3527_v46  ;;  %4089 = vmatpush1.bf16.msra.mxu0 %v11176_v22  ;;  %4130 = vmatpush1.bf16.msra.mxu1 %v11181_v61  ;;  %v9069_v34 = vpop.eup %9068  ;;  %v3540_v2 = vadd.f32 1.0, %v9067_v14  ;;  %v11292_v14 = vld [vmem:[%s12448_s6 + $0x1ac] ss:$16 sps:$4 sm:$0xff]  }
 0xb80   :  { %9072 = vrcp.f32 %v3533_v17  ;;  %4090 = vmatprep.subr.bf16.mxu0 %v11188_v40  ;;  %4131 = vmatprep.subr.bf16.mxu1 %v11193_v41  ;;  %12579 = vst [vmem:[#allocation12_spill] sm:$0xff] %v11292_v14 }
 0xb81   :  { %4120 = vmatprep.mubr.bf16.mxu0 %v12528_v49  ;;  %4161 = vmatprep.mubr.bf16.mxu1 %v12528_v49  ;;  %9074 = vrcp.f32 %v3540_v2  ;;  %v11326_v2 = vld [vmem:[%s12448_s6 + $0x1c0] ss:$16 sps:$4 sm:$0xff]  }
 0xb83   :  { %4091 = vmatpush1.bf16.msra.mxu0 %v11200_v32  ;;  %4132 = vmatpush1.bf16.msra.mxu1 %v11205_v50 }
 0xb84   :  { %4092 = vmatprep.subr.bf16.mxu0 %v11212_v26  ;;  %4133 = vmatprep.subr.bf16.mxu1 %v11217_v0 }
 0xb87   :  { %4093 = vmatpush1.bf16.msra.mxu0 %v11226_v3  ;;  %4134 = vmatpush1.bf16.msra.mxu1 %v11231_v1 }
 0xb88   :  { %4094 = vmatprep.subr.bf16.mxu0 %v11238_v62  ;;  %4135 = vmatprep.subr.bf16.mxu1 %v11243_v60  ;;  %v11275_v60 = vld [vmem:[%s12448_s6 + $0x180] ss:$16 sps:$4 sm:$0xff]   ;;  %v11280_v62 = vld [vmem:[%s12448_s6 + $0x188] ss:$16 sps:$4 sm:$0xff]  }
 0xb89   :  { %v9071_v46 = vpop.eup %9070  ;;  %12576 = vst [vmem:[#allocation9_spill] sm:$0xff] %v11275_v60  ;;  %12577 = vst [vmem:[#allocation10_spill] sm:$0xff] %v11280_v62 }
 0xb8a   :  { %v9073_v17 = vpop.eup %9072  ;;  %v3544_v16 = vmul.f32 %v9071_v46, %v9069_v34  ;;  %v11302_v46 = vld [vmem:[%s12448_s6 + $0x1a0] ss:$16 sps:$4 sm:$0xff]  }
 0xb8b   :  { %v3543_v7 = vmul.f32 %v9073_v17, %v10926_v63  ;;  %4095 = vmatpush1.bf16.msra.mxu0 %v11250_v54  ;;  %4136 = vmatpush1.bf16.msra.mxu1 %v11255_v38  ;;  %v11287_v63 = vld [vmem:[%s12448_s6 + $0x1a4] ss:$16 sps:$4 sm:$0xff]   ;;  %12580 = vst [vmem:[#allocation13_spill] sm:$0xff] %v11302_v46  ;;  %v11307_v17 = vld [vmem:[%s12448_s6 + $0x1a8] ss:$16 sps:$4 sm:$0xff]  }
 0xb8c   :  { %4096 = vmatprep.subr.bf16.mxu0 %v11262_v59  ;;  %4137 = vmatprep.subr.bf16.mxu1 %v11267_v28  ;;  %12578 = vst [vmem:[#allocation11_spill] sm:$0xff] %v11287_v63  ;;  %12581 = vst [vmem:[#allocation15_spill] sm:$0xff] %v11307_v17 }
 0xb8d   :  { %v11294_v34 = vadd.f32 %v3544_v16, %v3543_v7  ;;  %v11314_v7 = vld [vmem:[%s12448_s6 + $0x1c4] ss:$16 sps:$4 sm:$0xff]   ;;  %v11319_v16 = vld [vmem:[%s12448_s6 + $0x1cc] ss:$16 sps:$4 sm:$0xff]  }
 0xb8e   :  { %12582 = vst [vmem:[#allocation16_spill] sm:$0xff] %v11314_v7  ;;  %12583 = vst [vmem:[#allocation17_spill] sm:$0xff] %v11319_v16 }
 0xb8f   :  { %9076 = vtanh.f32 %v11294_v34  ;;  %4097 = vmatpush1.bf16.msra.mxu0 %v11275_v60  ;;  %4138 = vmatpush1.bf16.msra.mxu1 %v11280_v62 }
 0xb90   :  { %4098 = vmatprep.subr.bf16.mxu0 %v11287_v63  ;;  %4139 = vmatprep.subr.bf16.mxu1 %v11292_v14  ;;  %v11331_v14 = vld [vmem:[%s12448_s6 + $0x1c8] ss:$16 sps:$4 sm:$0xff]   ;;  %v9075_v63 = vpop.eup %9074 }
 0xb91   :  { %12584 = vst [vmem:[#allocation18_spill] sm:$0xff] %v11331_v14 }
 0xb93   :  { %4099 = vmatpush1.bf16.msra.mxu0 %v11302_v46  ;;  %4140 = vmatpush1.bf16.msra.mxu1 %v11307_v17  ;;  %v11338_v46 = vld [vmem:[%s12448_s6 + $0x1e4] ss:$16 sps:$4 sm:$0xff]   ;;  %v11343_v17 = vld [vmem:[%s12448_s6 + $0x1ec] ss:$16 sps:$4 sm:$0xff]  }
 0xb94   :  { %4100 = vmatprep.subr.bf16.mxu0 %v11314_v7  ;;  %4141 = vmatprep.subr.bf16.mxu1 %v11319_v16  ;;  %v11350_v7 = vld [vmem:[%s12448_s6 + $0x1e0] ss:$16 sps:$4 sm:$0xff]   ;;  %v11355_v16 = vld [vmem:[%s12448_s6 + $0x1e8] ss:$16 sps:$4 sm:$0xff]  }
 0xb97   :  { %4101 = vmatpush1.bf16.msra.mxu0 %v11326_v2  ;;  %4142 = vmatpush1.bf16.msra.mxu1 %v11331_v14 }
 0xb98   :  { %4102 = vmatprep.subr.bf16.mxu0 %v11338_v46  ;;  %4143 = vmatprep.subr.bf16.mxu1 %v11343_v17 }
 0xb99   :  { %v9077_v62 = vpop.eup %9076 }
 0xb9a   :  { %v11359_v60 = vmul.f32 %v9077_v62, %v9075_v63 }
 0xb9b   :  { %4103 = vmatpush1.bf16.msra.mxu0 %v11350_v7  ;;  %4144 = vmatpush1.bf16.msra.mxu1 %v11355_v16 }
 0xb9c   :  { %12585 = vst [vmem:[#allocation19_spill] sm:$0xff] %v11359_v60  ;;  %v3873_v14 = vpack.c.bf16 %v11359_v60, %v11359_v60  ;;  %4411 = vmatprep.subr.bf16.mxu0 %v10952_v12  ;;  %4452 = vmatprep.subr.bf16.mxu1 %v10957_v52  ;;  %v3583_v12 = vld [vmem:[%s12450_s8] sm:$0xf] }
 0xb9d   :  { %v3588_v52 = vrot.slane %v3583_v12, %v12543_v45 }
 0xb9e   :  { %4121 = vmatmul.mubr.bf16.vlgmr.msra.gmra.mrb[76].mxu0 %v3873_v14  ;;  %4162 = vmatmul.mubr.bf16.vlgmr.msra.gmra.mrb[76].mxu1 %v3873_v14 }
 0xb9f   :  { %4412 = vmatpush1.bf16.msra.mxu0 %v10962_v31  ;;  %4453 = vmatpush1.bf16.msra.mxu1 %v10967_v55  ;;  %v3592_v31 = vrot.slane %v3583_v12, %v12544_v21 }
 0xba0   :  { %4413 = vmatprep.subr.bf16.mxu0 %v10976_v57  ;;  %4454 = vmatprep.subr.bf16.mxu1 %v10981_v25 }
 0xba1   :  { %4443 = vmatprep.mubr.bf16.mxu0 %v12528_v49  ;;  %4484 = vmatprep.mubr.bf16.mxu1 %v12528_v49 }
 0xba3   :  { %4414 = vmatpush1.bf16.msra.mxu0 %v10986_v29  ;;  %4455 = vmatpush1.bf16.msra.mxu1 %v10991_v47 }
 0xba4   :  { %4415 = vmatprep.subr.bf16.mxu0 %v11000_v11  ;;  %4456 = vmatprep.subr.bf16.mxu1 %v11005_v9 }
 0xba7   :  { %4416 = vmatpush1.bf16.msra.mxu0 %v11010_v30  ;;  %4457 = vmatpush1.bf16.msra.mxu1 %v11015_v56 }
 0xba8   :  { %4417 = vmatprep.subr.bf16.mxu0 %v11024_v4  ;;  %4458 = vmatprep.subr.bf16.mxu1 %v11029_v5 }
 0xbab   :  { %4418 = vmatpush1.bf16.msra.mxu0 %v11034_v6  ;;  %4459 = vmatpush1.bf16.msra.mxu1 %v11039_v13  ;;  %v3600_v13 = vrot.slane %v3583_v12, %v12545_v53 }
 0xbac   :  { %4419 = vmatprep.subr.bf16.mxu0 %v11048_v18  ;;  %4460 = vmatprep.subr.bf16.mxu1 %v11053_v19  ;;  %v3596_v19 = vrot.slane %v3583_v12, %v12546_v58 }
 0xbaf   :  { %4420 = vmatpush1.bf16.msra.mxu0 %v11058_v8  ;;  %4461 = vmatpush1.bf16.msra.mxu1 %v11063_v20 }
 0xbb0   :  { %4421 = vmatprep.subr.bf16.mxu0 %v11072_v10  ;;  %4462 = vmatprep.subr.bf16.mxu1 %v11077_v15 }
 0xbb3   :  { %4422 = vmatpush1.bf16.msra.mxu0 %v11082_v27  ;;  %4463 = vmatpush1.bf16.msra.mxu1 %v11087_v43 }
 0xbb4   :  { %4423 = vmatprep.subr.bf16.mxu0 %v11096_v23  ;;  %4464 = vmatprep.subr.bf16.mxu1 %v11101_v44  ;;  %v7701_v44 = vld [vmem:[%s12450_s8 + $0x4] sm:$0xf] }
 0xbb7   :  { %4424 = vmatpush1.bf16.msra.mxu0 %v11106_v42  ;;  %4465 = vmatpush1.bf16.msra.mxu1 %v11111_v48 }
 0xbb8   :  { %4425 = vmatprep.subr.bf16.mxu0 %v11120_v36  ;;  %4466 = vmatprep.subr.bf16.mxu1 %v11125_v37 }
 0xbbb   :  { %4426 = vmatpush1.bf16.msra.mxu0 %v11130_v35  ;;  %4467 = vmatpush1.bf16.msra.mxu1 %v11135_v33  ;;  %v3911_v33 = vrot.slane %v7701_v44, %v12543_v45 }
 0xbbc   :  { %4734 = vmatprep.subr.bf16.mxu0 %v11144_v51  ;;  %4775 = vmatprep.subr.bf16.mxu1 %v11149_v39  ;;  %v3915_v39 = vrot.slane %v7701_v44, %v12544_v21 }
 0xc51   :  { %v3799_v55 = vpop.f32.mrb[72].mxu0  ;;  %v3840_v57 = vpop.f32.mrb[72].mxu1 }
 0xc52   :  { %v3800_v25 = vadd.f32 %v3799_v55, %v3588_v52  ;;  %v3801_v29 = vpop.f32.mrb[73].mxu0  ;;  %v3842_v47 = vpop.f32.mrb[73].mxu1  ;;  %v3841_v20 = vadd.f32 %v3840_v57, %v3596_v19 }
 0xc53   :  { %v3802_v11 = vadd.f32 %v3801_v29, %v3592_v31  ;;  %v3803_v9 = vpop.f32.mrb[74].mxu0  ;;  %v3844_v30 = vpop.f32.mrb[74].mxu1  ;;  %v3843_v18 = vadd.f32 %v3842_v47, %v3600_v13 }
 0xc54   :  { %v7666_v56 = vmul.f32 -1.442695, %v3800_v25  ;;  %v3804_v4 = vpop.f32.mrb[75].mxu0  ;;  %v3845_v5 = vpop.f32.mrb[75].mxu1 }
 0xc55   :  { %v7667_v6 = vmul.f32 -1.442695, %v3802_v11  ;;  %v7668_v8 = vmul.f32 -1.442695, %v3843_v18 }
 0xc56   :  { %9078 = vpow2.f32 %v7666_v56  ;;  %v3919_v56 = vrot.slane %v7701_v44, %v12546_v58 }
 0xc57   :  { %9080 = vpow2.f32 %v7667_v6 }
 0xc58   :  { %9082 = vpow2.f32 %v7668_v8 }
 0xc59   :  { %9084 = vtanh.f32 %v3841_v20 }
 0xc60   :  { %v9079_v10 = vpop.eup %9078 }
 0xc61   :  { %v9081_v15 = vpop.eup %9080  ;;  %v3850_v27 = vadd.f32 1.0, %v9079_v10 }
 0xc62   :  { %v3856_v43 = vadd.f32 1.0, %v9081_v15  ;;  %v9083_v23 = vpop.eup %9082 }
 0xc63   :  { %9086 = vrcp.f32 %v3850_v27  ;;  %v9085_v42 = vpop.eup %9084  ;;  %v3863_v35 = vadd.f32 1.0, %v9083_v23 }
 0xc64   :  { %9088 = vrcp.f32 %v3856_v43 }
 0xc65   :  { %9090 = vrcp.f32 %v3863_v35  ;;  %v11497_v35 = vld [vmem:[%s12448_s6 + $0x2c] ss:$16 sps:$4 sm:$0xff]  }
 0xc6d   :  { %v9087_v48 = vpop.eup %9086 }
 0xc6e   :  { %v9089_v36 = vpop.eup %9088  ;;  %v3867_v37 = vmul.f32 %v9087_v48, %v9085_v42 }
 0xc6f   :  { %v3866_v51 = vmul.f32 %v9089_v36, %v11166_v24  ;;  %v3923_v24 = vrot.slane %v7701_v44, %v12545_v53  ;;  %v9091_v4 = vpop.eup %9090  ;;  %v12597_v44 = vld [vmem:[#allocation18_spill] sm:$0xff] }
 0xc71   :  { %v11414_v62 = vadd.f32 %v3867_v37, %v3866_v51  ;;  %v4122_v63 = vpop.f32.mrb[76].mxu0  ;;  %v4163_v14 = vpop.f32.mrb[76].mxu1  ;;  %v11507_v51 = vld [vmem:[%s12448_s6 + $0x28] ss:$16 sps:$4 sm:$0xff]  }
 0xc72   :  { %v4123_v12 = vadd.f32 %v4122_v63, %v3911_v33  ;;  %v4124_v52 = vpop.f32.mrb[77].mxu0  ;;  %v4165_v31 = vpop.f32.mrb[77].mxu1  ;;  %v4164_v13 = vadd.f32 %v4163_v14, %v3919_v56  ;;  %v11502_v33 = vld [vmem:[%s12448_s6 + $0x20] ss:$16 sps:$4 sm:$0xff]   ;;  %v11521_v63 = vld [vmem:[%s12448_s6 + $0x4c] ss:$16 sps:$4 sm:$0xff]  }
 0xc73   :  { %9092 = vtanh.f32 %v11414_v62  ;;  %v4125_v55 = vadd.f32 %v4124_v52, %v3915_v39  ;;  %v4126_v57 = vpop.f32.mrb[78].mxu0  ;;  %v4167_v25 = vpop.f32.mrb[78].mxu1  ;;  %v4166_v30 = vadd.f32 %v4165_v31, %v3923_v24  ;;  %v11516_v39 = vld [vmem:[%s12448_s6 + $0x44] ss:$16 sps:$4 sm:$0xff]   ;;  %v11526_v14 = vld [vmem:[%s12448_s6 + $0x40] ss:$16 sps:$4 sm:$0xff]  }
 0xc74   :  { %v7734_v29 = vmul.f32 -1.442695, %v4123_v12  ;;  %v4127_v47 = vpop.f32.mrb[79].mxu0  ;;  %v4168_v11 = vpop.f32.mrb[79].mxu1  ;;  %v11531_v12 = vld [vmem:[%s12448_s6 + $0x48] ss:$16 sps:$4 sm:$0xff]  }
 0xc75   :  { %v7735_v9 = vmul.f32 -1.442695, %v4125_v55  ;;  %v7736_v6 = vmul.f32 -1.442695, %v4166_v30  ;;  %v11540_v52 = vld [vmem:[%s12448_s6 + $0x64] ss:$16 sps:$4 sm:$0xff]  }
 0xc76   :  { %9094 = vpow2.f32 %v7734_v29  ;;  %v11545_v31 = vld [vmem:[%s12448_s6 + $0x6c] ss:$16 sps:$4 sm:$0xff]   ;;  %v11550_v55 = vld [vmem:[%s12448_s6 + $0x60] ss:$16 sps:$4 sm:$0xff]   ;;  %v11555_v57 = vld [vmem:[%s12448_s6 + $0x68] ss:$16 sps:$4 sm:$0xff]  }
 0xc77   :  { %9096 = vpow2.f32 %v7735_v9  ;;  %v11564_v25 = vld [vmem:[%s12448_s6 + $0x84] ss:$16 sps:$4 sm:$0xff]   ;;  %v11569_v29 = vld [vmem:[%s12448_s6 + $0x8c] ss:$16 sps:$4 sm:$0xff]   ;;  %v11574_v47 = vld [vmem:[%s12448_s6 + $0x80] ss:$16 sps:$4 sm:$0xff]  }
 0xc78   :  { %9098 = vpow2.f32 %v7736_v6  ;;  %v11579_v11 = vld [vmem:[%s12448_s6 + $0x88] ss:$16 sps:$4 sm:$0xff]   ;;  %v11588_v9 = vld [vmem:[%s12448_s6 + $0xa4] ss:$16 sps:$4 sm:$0xff]   ;;  %v11593_v24 = vld [vmem:[%s12448_s6 + $0xac] ss:$16 sps:$4 sm:$0xff]  }
 0xc79   :  { %9100 = vtanh.f32 %v4164_v13  ;;  %v11598_v30 = vld [vmem:[%s12448_s6 + $0xa0] ss:$16 sps:$4 sm:$0xff]   ;;  %v11603_v56 = vld [vmem:[%s12448_s6 + $0xa8] ss:$16 sps:$4 sm:$0xff]  }
 0xc7a   :  { %v11622_v6 = vld [vmem:[%s12448_s6 + $0xc0] ss:$16 sps:$4 sm:$0xff]   ;;  %v11627_v13 = vld [vmem:[%s12448_s6 + $0xc8] ss:$16 sps:$4 sm:$0xff]  }
 0xc7d   :  { %v9093_v5 = vpop.eup %9092 }
 0xc7e   :  { %v11419_v18 = vmul.f32 %v9093_v5, %v9091_v4  ;;  %v11612_v4 = vld [vmem:[%s12448_s6 + $0xc4] ss:$16 sps:$4 sm:$0xff]   ;;  %v11617_v5 = vld [vmem:[%s12448_s6 + $0xcc] ss:$16 sps:$4 sm:$0xff]  }
 0xc80   :  { %12586 = vst [vmem:[#allocation20_spill] sm:$0xff] %v11419_v18  ;;  %v9095_v19 = vpop.eup %9094  ;;  %v4196_v8 = vpack.c.bf16 %v11419_v18, %v11419_v18 }
 0xc81   :  { %v9097_v20 = vpop.eup %9096  ;;  %v4173_v10 = vadd.f32 1.0, %v9095_v19  ;;  %v11636_v19 = vld [vmem:[%s12448_s6 + $0xe4] ss:$16 sps:$4 sm:$0xff]  }
 0xc82   :  { %v4179_v15 = vadd.f32 1.0, %v9097_v20  ;;  %4444 = vmatmul.mubr.bf16.vlgmr.msra.gmra.mrb[80].mxu0 %v4196_v8  ;;  %4485 = vmatmul.mubr.bf16.vlgmr.msra.gmra.mrb[80].mxu1 %v4196_v8  ;;  %v11641_v8 = vld [vmem:[%s12448_s6 + $0xec] ss:$16 sps:$4 sm:$0xff]   ;;  %v11646_v20 = vld [vmem:[%s12448_s6 + $0xe0] ss:$16 sps:$4 sm:$0xff]  }
 0xc83   :  { %9102 = vrcp.f32 %v4173_v10  ;;  %4735 = vmatpush1.bf16.msra.mxu0 %v11176_v22  ;;  %4776 = vmatpush1.bf16.msra.mxu1 %v11181_v61  ;;  %v9099_v22 = vpop.eup %9098  ;;  %v11651_v10 = vld [vmem:[%s12448_s6 + $0xe8] ss:$16 sps:$4 sm:$0xff]  }
 0xc84   :  { %9104 = vrcp.f32 %v4179_v15  ;;  %4736 = vmatprep.subr.bf16.mxu0 %v11188_v40  ;;  %4777 = vmatprep.subr.bf16.mxu1 %v11193_v41  ;;  %v9101_v61 = vpop.eup %9100  ;;  %v12587_v40 = vld [vmem:[#allocation25_spill] sm:$0xff]  ;;  %v12588_v41 = vld [vmem:[#allocation26_spill] sm:$0xff] }
 0xc85   :  { %4766 = vmatprep.mubr.bf16.mxu0 %v12528_v49  ;;  %4807 = vmatprep.mubr.bf16.mxu1 %v12528_v49  ;;  %v11660_v15 = vld [vmem:[%s12448_s6 + $0x104] ss:$16 sps:$4 sm:$0xff]  }
 0xc87   :  { %4737 = vmatpush1.bf16.msra.mxu0 %v11200_v32  ;;  %4778 = vmatpush1.bf16.msra.mxu1 %v11205_v50  ;;  %v4186_v32 = vadd.f32 1.0, %v9099_v22  ;;  %v11665_v22 = vld [vmem:[%s12448_s6 + $0x10c] ss:$16 sps:$4 sm:$0xff]  }
 0xc88   :  { %4738 = vmatprep.subr.bf16.mxu0 %v11212_v26  ;;  %4779 = vmatprep.subr.bf16.mxu1 %v11217_v0  ;;  %v12589_v0 = vld [vmem:[#allocation9_spill] sm:$0xff] }
 0xc89   :  { %9106 = vrcp.f32 %v4186_v32 }
 0xc8b   :  { %4739 = vmatpush1.bf16.msra.mxu0 %v11226_v3  ;;  %4780 = vmatpush1.bf16.msra.mxu1 %v11231_v1  ;;  %v12590_v3 = vld [vmem:[#allocation10_spill] sm:$0xff]  ;;  %v12591_v1 = vld [vmem:[#allocation11_spill] sm:$0xff] }
 0xc8c   :  { %4740 = vmatprep.subr.bf16.mxu0 %v12587_v40  ;;  %4781 = vmatprep.subr.bf16.mxu1 %v12588_v41 }
 0xc8d   :  { %v9103_v27 = vpop.eup %9102 }
 0xc8e   :  { %v9105_v43 = vpop.eup %9104  ;;  %v4190_v23 = vmul.f32 %v9103_v27, %v9101_v61  ;;  %v4229_v61 = vld [vmem:[%s12450_s8] sm:$0xf] }
 0xc8f   :  { %v4189_v50 = vmul.f32 %v9105_v43, %v11294_v34  ;;  %4741 = vmatpush1.bf16.msra.mxu0 %v11250_v54  ;;  %4782 = vmatpush1.bf16.msra.mxu1 %v11255_v38  ;;  %v12592_v34 = vld [vmem:[#allocation12_spill] sm:$0xff]  ;;  %v12593_v54 = vld [vmem:[#allocation13_spill] sm:$0xff]  ;;  %v12594_v38 = vld [vmem:[#allocation15_spill] sm:$0xff]  ;;  %v4234_v40 = vrot.slane %v4229_v61, %v12543_v45  ;;  %v4238_v41 = vrot.slane %v4229_v61, %v12544_v21 }
 0xc90   :  { %4742 = vmatprep.subr.bf16.mxu0 %v11262_v59  ;;  %4783 = vmatprep.subr.bf16.mxu1 %v11267_v28  ;;  %v12595_v59 = vld [vmem:[#allocation16_spill] sm:$0xff]  ;;  %v12596_v28 = vld [vmem:[#allocation17_spill] sm:$0xff] }
 0xc91   :  { %v11442_v26 = vadd.f32 %v4190_v23, %v4189_v50 }
 0xc93   :  { %9108 = vtanh.f32 %v11442_v26  ;;  %4743 = vmatpush1.bf16.msra.mxu0 %v12589_v0  ;;  %4784 = vmatpush1.bf16.msra.mxu1 %v12590_v3  ;;  %v9107_v42 = vpop.eup %9106 }
 0xc94   :  { %4744 = vmatprep.subr.bf16.mxu0 %v12591_v1  ;;  %4785 = vmatprep.subr.bf16.mxu1 %v12592_v34 }
 0xc97   :  { %4745 = vmatpush1.bf16.msra.mxu0 %v12593_v54  ;;  %4786 = vmatpush1.bf16.msra.mxu1 %v12594_v38 }
 0xc98   :  { %4746 = vmatprep.subr.bf16.mxu0 %v12595_v59  ;;  %4787 = vmatprep.subr.bf16.mxu1 %v12596_v28  ;;  %v4246_v28 = vrot.slane %v4229_v61, %v12545_v53 }
 0xc9b   :  { %4747 = vmatpush1.bf16.msra.mxu0 %v11326_v2  ;;  %4788 = vmatpush1.bf16.msra.mxu1 %v12597_v44  ;;  %v11492_v2 = vld [vmem:[%s12448_s6 + $0x24] ss:$16 sps:$4 sm:$0xff]  }
 0xc9c   :  { %4748 = vmatprep.subr.bf16.mxu0 %v11338_v46  ;;  %4789 = vmatprep.subr.bf16.mxu1 %v11343_v17  ;;  %v11468_v46 = vld [vmem:[%s12448_s6 + $0x4] ss:$16 sps:$4 sm:$0xff]   ;;  %v11473_v17 = vld [vmem:[%s12448_s6 + $0xc] ss:$16 sps:$4 sm:$0xff]  }
 0xc9d   :  { %v9109_v48 = vpop.eup %9108 }
 0xc9e   :  { %v11457_v36 = vmul.f32 %v9109_v48, %v9107_v42  ;;  %v4242_v42 = vrot.slane %v4229_v61, %v12546_v58 }
 0xc9f   :  { %4749 = vmatpush1.bf16.msra.mxu0 %v11350_v7  ;;  %4790 = vmatpush1.bf16.msra.mxu1 %v11355_v16  ;;  %v11478_v7 = vld [vmem:[%s12448_s6] ss:$16 sps:$4 sm:$0xff]   ;;  %v11483_v16 = vld [vmem:[%s12448_s6 + $0x8] ss:$16 sps:$4 sm:$0xff]  }
 0xca0   :  { %12598 = vst [vmem:[#allocation25_spill] sm:$0xff] %v11457_v36  ;;  %v4519_v37 = vpack.c.bf16 %v11457_v36, %v11457_v36  ;;  %5057 = vmatprep.subr.bf16.mxu0 %v11468_v46  ;;  %5098 = vmatprep.subr.bf16.mxu1 %v11473_v17 }
 0xca2   :  { %4767 = vmatmul.mubr.bf16.vlgmr.msra.gmra.mrb[84].mxu0 %v4519_v37  ;;  %4808 = vmatmul.mubr.bf16.vlgmr.msra.gmra.mrb[84].mxu1 %v4519_v37 }
 0xca3   :  { %5089 = vmatprep.mubr.bf16.mxu0 %v12528_v49  ;;  %5130 = vmatprep.mubr.bf16.mxu1 %v12528_v49 }
 0xca4   :  { %5058 = vmatpush1.bf16.msra.mxu0 %v11478_v7  ;;  %5099 = vmatpush1.bf16.msra.mxu1 %v11483_v16 }
 0xca5   :  { %5059 = vmatprep.subr.bf16.mxu0 %v11492_v2  ;;  %5100 = vmatprep.subr.bf16.mxu1 %v11497_v35 }
 0xca8   :  { %5060 = vmatpush1.bf16.msra.mxu0 %v11502_v33  ;;  %5101 = vmatpush1.bf16.msra.mxu1 %v11507_v51 }
 0xca9   :  { %5061 = vmatprep.subr.bf16.mxu0 %v11516_v39  ;;  %5102 = vmatprep.subr.bf16.mxu1 %v11521_v63 }
 0xcac   :  { %5062 = vmatpush1.bf16.msra.mxu0 %v11526_v14  ;;  %5103 = vmatpush1.bf16.msra.mxu1 %v11531_v12 }
 0xcad   :  { %5063 = vmatprep.subr.bf16.mxu0 %v11540_v52  ;;  %5104 = vmatprep.subr.bf16.mxu1 %v11545_v31 }
 0xcb0   :  { %5064 = vmatpush1.bf16.msra.mxu0 %v11550_v55  ;;  %5105 = vmatpush1.bf16.msra.mxu1 %v11555_v57 }
 0xcb1   :  { %5065 = vmatprep.subr.bf16.mxu0 %v11564_v25  ;;  %5106 = vmatprep.subr.bf16.mxu1 %v11569_v29 }
 0xcb4   :  { %5066 = vmatpush1.bf16.msra.mxu0 %v11574_v47  ;;  %5107 = vmatpush1.bf16.msra.mxu1 %v11579_v11 }
 0xcb5   :  { %5067 = vmatprep.subr.bf16.mxu0 %v11588_v9  ;;  %5108 = vmatprep.subr.bf16.mxu1 %v11593_v24 }
 0xcb8   :  { %5068 = vmatpush1.bf16.msra.mxu0 %v11598_v30  ;;  %5109 = vmatpush1.bf16.msra.mxu1 %v11603_v56 }
 0xcb9   :  { %5069 = vmatprep.subr.bf16.mxu0 %v11612_v4  ;;  %5110 = vmatprep.subr.bf16.mxu1 %v11617_v5 }
 0xcbc   :  { %5070 = vmatpush1.bf16.msra.mxu0 %v11622_v6  ;;  %5111 = vmatpush1.bf16.msra.mxu1 %v11627_v13 }
 0xcbd   :  { %5071 = vmatprep.subr.bf16.mxu0 %v11636_v19  ;;  %5112 = vmatprep.subr.bf16.mxu1 %v11641_v8 }
 0xcc0   :  { %5072 = vmatpush1.bf16.msra.mxu0 %v11646_v20  ;;  %5113 = vmatpush1.bf16.msra.mxu1 %v11651_v10 }
 0xcc1   :  { %5380 = vmatprep.subr.bf16.mxu0 %v11660_v15  ;;  %5421 = vmatprep.subr.bf16.mxu1 %v11665_v22 }
 0xd55   :  { %v4445_v27 = vpop.f32.mrb[80].mxu0  ;;  %v4486_v43 = vpop.f32.mrb[80].mxu1 }
 0xd56   :  { %v4446_v23 = vadd.f32 %v4445_v27, %v4234_v40  ;;  %v4447_v32 = vpop.f32.mrb[81].mxu0  ;;  %v4488_v50 = vpop.f32.mrb[81].mxu1  ;;  %v4487_v37 = vadd.f32 %v4486_v43, %v4242_v42 }
 0xd57   :  { %v4448_v0 = vadd.f32 %v4447_v32, %v4238_v41  ;;  %v4449_v3 = vpop.f32.mrb[82].mxu0  ;;  %v4490_v1 = vpop.f32.mrb[82].mxu1  ;;  %v4489_v44 = vadd.f32 %v4488_v50, %v4246_v28  ;;  %v7804_v32 = vld [vmem:[%s12450_s8 + $0x4] sm:$0xf] }
 0xd58   :  { %v7769_v34 = vmul.f32 -1.442695, %v4446_v23  ;;  %v4450_v54 = vpop.f32.mrb[83].mxu0  ;;  %v4491_v38 = vpop.f32.mrb[83].mxu1  ;;  %v4557_v43 = vrot.slane %v7804_v32, %v12543_v45 }
 0xd59   :  { %v7770_v59 = vmul.f32 -1.442695, %v4448_v0  ;;  %v7771_v48 = vmul.f32 -1.442695, %v4489_v44 }
 0xd5a   :  { %9110 = vpow2.f32 %v7769_v34 }
 0xd5b   :  { %9112 = vpow2.f32 %v7770_v59 }
 0xd5c   :  { %9114 = vpow2.f32 %v7771_v48 }
 0xd5d   :  { %9116 = vtanh.f32 %v4487_v37 }
 0xd64   :  { %v9111_v60 = vpop.eup %9110 }
 0xd65   :  { %v9113_v40 = vpop.eup %9112  ;;  %v4496_v27 = vadd.f32 1.0, %v9111_v60  ;;  %v4561_v60 = vrot.slane %v7804_v32, %v12544_v21 }
 0xd66   :  { %v4502_v41 = vadd.f32 1.0, %v9113_v40  ;;  %v9115_v23 = vpop.eup %9114 }
 0xd67   :  { %9118 = vrcp.f32 %v4496_v27  ;;  %v9117_v0 = vpop.eup %9116  ;;  %v4509_v61 = vadd.f32 1.0, %v9115_v23 }
 0xd68   :  { %9120 = vrcp.f32 %v4502_v41 }
 0xd69   :  { %9122 = vrcp.f32 %v4509_v61 }
 0xd71   :  { %v9119_v3 = vpop.eup %9118 }
 0xd72   :  { %v9121_v50 = vpop.eup %9120  ;;  %v4513_v1 = vmul.f32 %v9119_v3, %v9117_v0 }
 0xd73   :  { %v4512_v34 = vmul.f32 %v9121_v50, %v11414_v62  ;;  %v4569_v62 = vrot.slane %v7804_v32, %v12545_v53  ;;  %v4565_v50 = vrot.slane %v7804_v32, %v12546_v58 }
 0xd75   :  { %v11682_v54 = vadd.f32 %v4513_v1, %v4512_v34  ;;  %v4768_v38 = vpop.f32.mrb[84].mxu0  ;;  %v4809_v59 = vpop.f32.mrb[84].mxu1 }
 0xd76   :  { %v4769_v28 = vadd.f32 %v4768_v38, %v4557_v43  ;;  %v4770_v44 = vpop.f32.mrb[85].mxu0  ;;  %v4811_v42 = vpop.f32.mrb[85].mxu1  ;;  %v4810_v34 = vadd.f32 %v4809_v59, %v4565_v50  ;;  %v11704_v59 = vld [vmem:[%s12448_s6 + $0x124] ss:$16 sps:$4 sm:$0xff]  }
 0xd77   :  { %9124 = vtanh.f32 %v11682_v54  ;;  %v4771_v48 = vadd.f32 %v4770_v44, %v4561_v60  ;;  %v4772_v37 = vpop.f32.mrb[86].mxu0  ;;  %v4813_v40 = vpop.f32.mrb[86].mxu1  ;;  %v4812_v3 = vadd.f32 %v4811_v42, %v4569_v62  ;;  %v11692_v60 = vld [vmem:[%s12448_s6 + $0x100] ss:$16 sps:$4 sm:$0xff]   ;;  %v11709_v42 = vld [vmem:[%s12448_s6 + $0x12c] ss:$16 sps:$4 sm:$0xff]  }
 0xd78   :  { %v7837_v27 = vmul.f32 -1.442695, %v4769_v28  ;;  %v4773_v41 = vpop.f32.mrb[87].mxu0  ;;  %v4814_v23 = vpop.f32.mrb[87].mxu1  ;;  %v11697_v28 = vld [vmem:[%s12448_s6 + $0x108] ss:$16 sps:$4 sm:$0xff]  }
 0xd79   :  { %v7838_v0 = vmul.f32 -1.442695, %v4771_v48  ;;  %v9123_v1 = vpop.eup %9122  ;;  %v7839_v43 = vmul.f32 -1.442695, %v4812_v3  ;;  %v11721_v41 = vld [vmem:[%s12448_s6 + $0x128] ss:$16 sps:$4 sm:$0xff]  }
 0xd7a   :  { %9126 = vpow2.f32 %v7837_v27  ;;  %v11716_v27 = vld [vmem:[%s12448_s6 + $0x120] ss:$16 sps:$4 sm:$0xff]   ;;  %v11728_v23 = vld [vmem:[%s12448_s6 + $0x144] ss:$16 sps:$4 sm:$0xff]   ;;  %v11747_v3 = vld [vmem:[%s12448_s6 + $0x148] ss:$16 sps:$4 sm:$0xff]  }
 0xd7b   :  { %9128 = vpow2.f32 %v7838_v0  ;;  %v11733_v0 = vld [vmem:[%s12448_s6 + $0x14c] ss:$16 sps:$4 sm:$0xff]   ;;  %v11742_v62 = vld [vmem:[%s12448_s6 + $0x140] ss:$16 sps:$4 sm:$0xff]   ;;  %v11754_v50 = vld [vmem:[%s12448_s6 + $0x164] ss:$16 sps:$4 sm:$0xff]  }
 0xd7c   :  { %9130 = vpow2.f32 %v7839_v43  ;;  %12600 = vst [vmem:[#allocation9_spill] sm:$0xff] %v11754_v50  ;;  %v11766_v43 = vld [vmem:[%s12448_s6 + $0x160] ss:$16 sps:$4 sm:$0xff]  }
 0xd7d   :  { %9132 = vtanh.f32 %v4810_v34  ;;  %v11771_v34 = vld [vmem:[%s12448_s6 + $0x168] ss:$16 sps:$4 sm:$0xff]  }
 0xd81   :  { %v9125_v61 = vpop.eup %9124 }
 0xd82   :  { %v11687_v38 = vmul.f32 %v9125_v61, %v9123_v1  ;;  %v11759_v1 = vld [vmem:[%s12448_s6 + $0x16c] ss:$16 sps:$4 sm:$0xff]  }
 0xd83   :  { %12601 = vst [vmem:[#allocation10_spill] sm:$0xff] %v11759_v1 }
 0xd84   :  { %12599 = vst [vmem:[#allocation26_spill] sm:$0xff] %v11687_v38  ;;  %v9127_v44 = vpop.eup %9126  ;;  %v4842_v32 = vpack.c.bf16 %v11687_v38, %v11687_v38 }
 0xd85   :  { %v9129_v48 = vpop.eup %9128  ;;  %v4819_v37 = vadd.f32 1.0, %v9127_v44 }
 0xd86   :  { %v4825_v40 = vadd.f32 1.0, %v9129_v48  ;;  %5090 = vmatmul.mubr.bf16.vlgmr.msra.gmra.mrb[88].mxu0 %v4842_v32  ;;  %5131 = vmatmul.mubr.bf16.vlgmr.msra.gmra.mrb[88].mxu1 %v4842_v32  ;;  %v9131_v61 = vpop.eup %9130  ;;  %v11778_v32 = vld [vmem:[%s12448_s6 + $0x184] ss:$16 sps:$4 sm:$0xff]   ;;  %v11783_v48 = vld [vmem:[%s12448_s6 + $0x18c] ss:$16 sps:$4 sm:$0xff]  }
 0xd87   :  { %9134 = vrcp.f32 %v4819_v37  ;;  %5381 = vmatpush1.bf16.msra.mxu0 %v11692_v60  ;;  %5422 = vmatpush1.bf16.msra.mxu1 %v11697_v28  ;;  %v9133_v44 = vpop.eup %9132  ;;  %v4832_v38 = vadd.f32 1.0, %v9131_v61  ;;  %v11808_v61 = vld [vmem:[%s12448_s6 + $0x1ac] ss:$16 sps:$4 sm:$0xff]  }
 0xd88   :  { %9136 = vrcp.f32 %v4825_v40  ;;  %5382 = vmatprep.subr.bf16.mxu0 %v11704_v59  ;;  %5423 = vmatprep.subr.bf16.mxu1 %v11709_v42  ;;  %12605 = vst [vmem:[#allocation15_spill] sm:$0xff] %v11808_v61 }
 0xd89   :  { %5412 = vmatprep.mubr.bf16.mxu0 %v12528_v49  ;;  %5453 = vmatprep.mubr.bf16.mxu1 %v12528_v49  ;;  %9138 = vrcp.f32 %v4832_v38  ;;  %v11842_v38 = vld [vmem:[%s12448_s6 + $0x1c0] ss:$16 sps:$4 sm:$0xff]  }
 0xd8b   :  { %5383 = vmatpush1.bf16.msra.mxu0 %v11716_v27  ;;  %5424 = vmatpush1.bf16.msra.mxu1 %v11721_v41 }
 0xd8c   :  { %5384 = vmatprep.subr.bf16.mxu0 %v11728_v23  ;;  %5425 = vmatprep.subr.bf16.mxu1 %v11733_v0 }
 0xd8f   :  { %5385 = vmatpush1.bf16.msra.mxu0 %v11742_v62  ;;  %5426 = vmatpush1.bf16.msra.mxu1 %v11747_v3 }
 0xd90   :  { %5386 = vmatprep.subr.bf16.mxu0 %v11754_v50  ;;  %5427 = vmatprep.subr.bf16.mxu1 %v11759_v1  ;;  %v11791_v1 = vld [vmem:[%s12448_s6 + $0x180] ss:$16 sps:$4 sm:$0xff]   ;;  %v11796_v50 = vld [vmem:[%s12448_s6 + $0x188] ss:$16 sps:$4 sm:$0xff]  }
 0xd91   :  { %v9135_v37 = vpop.eup %9134  ;;  %12602 = vst [vmem:[#allocation11_spill] sm:$0xff] %v11791_v1  ;;  %12603 = vst [vmem:[#allocation12_spill] sm:$0xff] %v11796_v50 }
 0xd92   :  { %v9137_v40 = vpop.eup %9136  ;;  %v4836_v36 = vmul.f32 %v9135_v37, %v9133_v44  ;;  %v11818_v37 = vld [vmem:[%s12448_s6 + $0x1a0] ss:$16 sps:$4 sm:$0xff]  }
 0xd93   :  { %v4835_v18 = vmul.f32 %v9137_v40, %v11442_v26  ;;  %5387 = vmatpush1.bf16.msra.mxu0 %v11766_v43  ;;  %5428 = vmatpush1.bf16.msra.mxu1 %v11771_v34  ;;  %v11803_v26 = vld [vmem:[%s12448_s6 + $0x1a4] ss:$16 sps:$4 sm:$0xff]   ;;  %12606 = vst [vmem:[#allocation16_spill] sm:$0xff] %v11818_v37  ;;  %v11823_v40 = vld [vmem:[%s12448_s6 + $0x1a8] ss:$16 sps:$4 sm:$0xff]  }
 0xd94   :  { %5388 = vmatprep.subr.bf16.mxu0 %v11778_v32  ;;  %5429 = vmatprep.subr.bf16.mxu1 %v11783_v48  ;;  %12604 = vst [vmem:[#allocation13_spill] sm:$0xff] %v11803_v26  ;;  %12607 = vst [vmem:[#allocation17_spill] sm:$0xff] %v11823_v40 }
 0xd95   :  { %v11810_v44 = vadd.f32 %v4836_v36, %v4835_v18  ;;  %v11830_v18 = vld [vmem:[%s12448_s6 + $0x1c4] ss:$16 sps:$4 sm:$0xff]   ;;  %v11835_v36 = vld [vmem:[%s12448_s6 + $0x1cc] ss:$16 sps:$4 sm:$0xff]  }
 0xd96   :  { %12608 = vst [vmem:[#allocation18_spill] sm:$0xff] %v11830_v18  ;;  %12609 = vst [vmem:[#allocation27_spill] sm:$0xff] %v11835_v36 }
 0xd97   :  { %9140 = vtanh.f32 %v11810_v44  ;;  %5389 = vmatpush1.bf16.msra.mxu0 %v11791_v1  ;;  %5430 = vmatpush1.bf16.msra.mxu1 %v11796_v50 }
 0xd98   :  { %5390 = vmatprep.subr.bf16.mxu0 %v11803_v26  ;;  %5431 = vmatprep.subr.bf16.mxu1 %v11808_v61  ;;  %v11847_v61 = vld [vmem:[%s12448_s6 + $0x1c8] ss:$16 sps:$4 sm:$0xff]   ;;  %v9139_v26 = vpop.eup %9138 }
 0xd99   :  { %12610 = vst [vmem:[#allocation28_spill] sm:$0xff] %v11847_v61 }
 0xd9b   :  { %5391 = vmatpush1.bf16.msra.mxu0 %v11818_v37  ;;  %5432 = vmatpush1.bf16.msra.mxu1 %v11823_v40  ;;  %v11854_v37 = vld [vmem:[%s12448_s6 + $0x1e4] ss:$16 sps:$4 sm:$0xff]   ;;  %v11859_v40 = vld [vmem:[%s12448_s6 + $0x1ec] ss:$16 sps:$4 sm:$0xff]  }
 0xd9c   :  { %5392 = vmatprep.subr.bf16.mxu0 %v11830_v18  ;;  %5433 = vmatprep.subr.bf16.mxu1 %v11835_v36  ;;  %v11866_v18 = vld [vmem:[%s12448_s6 + $0x1e0] ss:$16 sps:$4 sm:$0xff]   ;;  %v11871_v36 = vld [vmem:[%s12448_s6 + $0x1e8] ss:$16 sps:$4 sm:$0xff]  }
 0xd9f   :  { %5393 = vmatpush1.bf16.msra.mxu0 %v11842_v38  ;;  %5434 = vmatpush1.bf16.msra.mxu1 %v11847_v61 }
 0xda0   :  { %5394 = vmatprep.subr.bf16.mxu0 %v11854_v37  ;;  %5435 = vmatprep.subr.bf16.mxu1 %v11859_v40 }
 0xda1   :  { %v9141_v50 = vpop.eup %9140 }
 0xda2   :  { %v11875_v1 = vmul.f32 %v9141_v50, %v9139_v26 }
 0xda3   :  { %5395 = vmatpush1.bf16.msra.mxu0 %v11866_v18  ;;  %5436 = vmatpush1.bf16.msra.mxu1 %v11871_v36 }
 0xda4   :  { %v5165_v61 = vpack.c.bf16 %v11875_v1, %v11875_v1  ;;  %5703 = vmatprep.subr.bf16.mxu0 %v11468_v46  ;;  %5744 = vmatprep.subr.bf16.mxu1 %v11473_v17  ;;  %v4875_v46 = vld [vmem:[%s12450_s8] sm:$0xf] }
 0xda5   :  { %v4880_v17 = vrot.slane %v4875_v46, %v12543_v45 }
 0xda6   :  { %5413 = vmatmul.mubr.bf16.vlgmr.msra.gmra.mrb[92].mxu0 %v5165_v61  ;;  %5454 = vmatmul.mubr.bf16.vlgmr.msra.gmra.mrb[92].mxu1 %v5165_v61 }
 0xda7   :  { %5704 = vmatpush1.bf16.msra.mxu0 %v11478_v7  ;;  %5745 = vmatpush1.bf16.msra.mxu1 %v11483_v16  ;;  %v4884_v7 = vrot.slane %v4875_v46, %v12544_v21 }
 0xda8   :  { %5705 = vmatprep.subr.bf16.mxu0 %v11492_v2  ;;  %5746 = vmatprep.subr.bf16.mxu1 %v11497_v35 }
 0xda9   :  { %5735 = vmatprep.mubr.bf16.mxu0 %v12528_v49  ;;  %5776 = vmatprep.mubr.bf16.mxu1 %v12528_v49 }
 0xdab   :  { %5706 = vmatpush1.bf16.msra.mxu0 %v11502_v33  ;;  %5747 = vmatpush1.bf16.msra.mxu1 %v11507_v51 }
 0xdac   :  { %5707 = vmatprep.subr.bf16.mxu0 %v11516_v39  ;;  %5748 = vmatprep.subr.bf16.mxu1 %v11521_v63 }
 0xdaf   :  { %5708 = vmatpush1.bf16.msra.mxu0 %v11526_v14  ;;  %5749 = vmatpush1.bf16.msra.mxu1 %v11531_v12 }
 0xdb0   :  { %5709 = vmatprep.subr.bf16.mxu0 %v11540_v52  ;;  %5750 = vmatprep.subr.bf16.mxu1 %v11545_v31 }
 0xdb3   :  { %5710 = vmatpush1.bf16.msra.mxu0 %v11550_v55  ;;  %5751 = vmatpush1.bf16.msra.mxu1 %v11555_v57  ;;  %v4892_v57 = vrot.slane %v4875_v46, %v12545_v53 }
 0xdb4   :  { %5711 = vmatprep.subr.bf16.mxu0 %v11564_v25  ;;  %5752 = vmatprep.subr.bf16.mxu1 %v11569_v29  ;;  %v4888_v29 = vrot.slane %v4875_v46, %v12546_v58 }
 0xdb7   :  { %5712 = vmatpush1.bf16.msra.mxu0 %v11574_v47  ;;  %5753 = vmatpush1.bf16.msra.mxu1 %v11579_v11 }
 0xdb8   :  { %5713 = vmatprep.subr.bf16.mxu0 %v11588_v9  ;;  %5754 = vmatprep.subr.bf16.mxu1 %v11593_v24 }
 0xdbb   :  { %5714 = vmatpush1.bf16.msra.mxu0 %v11598_v30  ;;  %5755 = vmatpush1.bf16.msra.mxu1 %v11603_v56 }
 0xdbc   :  { %5715 = vmatprep.subr.bf16.mxu0 %v11612_v4  ;;  %5756 = vmatprep.subr.bf16.mxu1 %v11617_v5  ;;  %v7907_v5 = vld [vmem:[%s12450_s8 + $0x4] sm:$0xf] }
 0xdbf   :  { %5716 = vmatpush1.bf16.msra.mxu0 %v11622_v6  ;;  %5757 = vmatpush1.bf16.msra.mxu1 %v11627_v13 }
 0xdc0   :  { %5717 = vmatprep.subr.bf16.mxu0 %v11636_v19  ;;  %5758 = vmatprep.subr.bf16.mxu1 %v11641_v8 }
 0xdc3   :  { %5718 = vmatpush1.bf16.msra.mxu0 %v11646_v20  ;;  %5759 = vmatpush1.bf16.msra.mxu1 %v11651_v10  ;;  %v5203_v10 = vrot.slane %v7907_v5, %v12543_v45 }
 0xdc4   :  { %6026 = vmatprep.subr.bf16.mxu0 %v11660_v15  ;;  %6067 = vmatprep.subr.bf16.mxu1 %v11665_v22  ;;  %v5207_v22 = vrot.slane %v7907_v5, %v12544_v21 }
 0xe59   :  { %v5091_v16 = vpop.f32.mrb[88].mxu0  ;;  %v5132_v2 = vpop.f32.mrb[88].mxu1 }
 0xe5a   :  { %v5092_v35 = vadd.f32 %v5091_v16, %v4880_v17  ;;  %v5093_v33 = vpop.f32.mrb[89].mxu0  ;;  %v5134_v51 = vpop.f32.mrb[89].mxu1  ;;  %v5133_v11 = vadd.f32 %v5132_v2, %v4888_v29 }
 0xe5b   :  { %v5094_v39 = vadd.f32 %v5093_v33, %v4884_v7  ;;  %v5095_v63 = vpop.f32.mrb[90].mxu0  ;;  %v5136_v14 = vpop.f32.mrb[90].mxu1  ;;  %v5135_v25 = vadd.f32 %v5134_v51, %v4892_v57 }
 0xe5c   :  { %v7872_v12 = vmul.f32 -1.442695, %v5092_v35  ;;  %v5096_v52 = vpop.f32.mrb[91].mxu0  ;;  %v5137_v31 = vpop.f32.mrb[91].mxu1 }
 0xe5d   :  { %v7873_v55 = vmul.f32 -1.442695, %v5094_v39  ;;  %v7874_v47 = vmul.f32 -1.442695, %v5135_v25 }
 0xe5e   :  { %9142 = vpow2.f32 %v7872_v12  ;;  %v5211_v12 = vrot.slane %v7907_v5, %v12546_v58 }
 0xe5f   :  { %9144 = vpow2.f32 %v7873_v55 }
 0xe60   :  { %9146 = vpow2.f32 %v7874_v47 }
 0xe61   :  { %9148 = vtanh.f32 %v5133_v11 }
 0xe68   :  { %v9143_v9 = vpop.eup %9142 }
 0xe69   :  { %v9145_v24 = vpop.eup %9144  ;;  %v5142_v30 = vadd.f32 1.0, %v9143_v9 }
 0xe6a   :  { %v5148_v56 = vadd.f32 1.0, %v9145_v24  ;;  %v9147_v4 = vpop.eup %9146 }
 0xe6b   :  { %9150 = vrcp.f32 %v5142_v30  ;;  %v9149_v6 = vpop.eup %9148  ;;  %v5155_v20 = vadd.f32 1.0, %v9147_v4 }
 0xe6c   :  { %9152 = vrcp.f32 %v5148_v56 }
 0xe6d   :  { %9154 = vrcp.f32 %v5155_v20  ;;  %v8753_v20 = vld [vmem:[%s12448_s6 + $0x2c] ss:$16 sps:$4 sm:$0xff]  }
 0xe75   :  { %v9151_v13 = vpop.eup %9150 }
 0xe76   :  { %v9153_v19 = vpop.eup %9152  ;;  %v5159_v8 = vmul.f32 %v9151_v13, %v9149_v6 }
 0xe77   :  { %v5158_v15 = vmul.f32 %v9153_v19, %v11682_v54  ;;  %v5215_v54 = vrot.slane %v7907_v5, %v12545_v53  ;;  %v9155_v52 = vpop.eup %9154  ;;  %v12621_v5 = vld [vmem:[#allocation28_spill] sm:$0xff] }
 0xe79   :  { %v11930_v50 = vadd.f32 %v5159_v8, %v5158_v15  ;;  %v5414_v26 = vpop.f32.mrb[92].mxu0  ;;  %v5455_v61 = vpop.f32.mrb[92].mxu1  ;;  %v8751_v15 = vld [vmem:[%s12448_s6 + $0x28] ss:$16 sps:$4 sm:$0xff]  }
 0xe7a   :  { %v5415_v46 = vadd.f32 %v5414_v26, %v5203_v10  ;;  %v5416_v17 = vpop.f32.mrb[93].mxu0  ;;  %v5457_v7 = vpop.f32.mrb[93].mxu1  ;;  %v5456_v57 = vadd.f32 %v5455_v61, %v5211_v12  ;;  %v8748_v10 = vld [vmem:[%s12448_s6 + $0x20] ss:$16 sps:$4 sm:$0xff]   ;;  %v8759_v26 = vld [vmem:[%s12448_s6 + $0x4c] ss:$16 sps:$4 sm:$0xff]  }
 0xe7b   :  { %9156 = vtanh.f32 %v11930_v50  ;;  %v5417_v16 = vadd.f32 %v5416_v17, %v5207_v22  ;;  %v5418_v2 = vpop.f32.mrb[94].mxu0  ;;  %v5459_v35 = vpop.f32.mrb[94].mxu1  ;;  %v5458_v14 = vadd.f32 %v5457_v7, %v5215_v54  ;;  %v8756_v22 = vld [vmem:[%s12448_s6 + $0x44] ss:$16 sps:$4 sm:$0xff]   ;;  %v8754_v61 = vld [vmem:[%s12448_s6 + $0x40] ss:$16 sps:$4 sm:$0xff]  }
 0xe7c   :  { %v7940_v33 = vmul.f32 -1.442695, %v5415_v46  ;;  %v5419_v51 = vpop.f32.mrb[95].mxu0  ;;  %v5460_v39 = vpop.f32.mrb[95].mxu1  ;;  %v8757_v46 = vld [vmem:[%s12448_s6 + $0x48] ss:$16 sps:$4 sm:$0xff]  }
 0xe7d   :  { %v7941_v63 = vmul.f32 -1.442695, %v5417_v16  ;;  %v7942_v55 = vmul.f32 -1.442695, %v5458_v14  ;;  %v8762_v17 = vld [vmem:[%s12448_s6 + $0x64] ss:$16 sps:$4 sm:$0xff]  }
 0xe7e   :  { %9158 = vpow2.f32 %v7940_v33  ;;  %v8765_v7 = vld [vmem:[%s12448_s6 + $0x6c] ss:$16 sps:$4 sm:$0xff]   ;;  %v8760_v16 = vld [vmem:[%s12448_s6 + $0x60] ss:$16 sps:$4 sm:$0xff]   ;;  %v8763_v2 = vld [vmem:[%s12448_s6 + $0x68] ss:$16 sps:$4 sm:$0xff]  }
 0xe7f   :  { %9160 = vpow2.f32 %v7941_v63  ;;  %v8768_v35 = vld [vmem:[%s12448_s6 + $0x84] ss:$16 sps:$4 sm:$0xff]   ;;  %v8771_v33 = vld [vmem:[%s12448_s6 + $0x8c] ss:$16 sps:$4 sm:$0xff]   ;;  %v8766_v51 = vld [vmem:[%s12448_s6 + $0x80] ss:$16 sps:$4 sm:$0xff]  }
 0xe80   :  { %9162 = vpow2.f32 %v7942_v55  ;;  %v8769_v39 = vld [vmem:[%s12448_s6 + $0x88] ss:$16 sps:$4 sm:$0xff]   ;;  %v8774_v63 = vld [vmem:[%s12448_s6 + $0xa4] ss:$16 sps:$4 sm:$0xff]   ;;  %v8777_v54 = vld [vmem:[%s12448_s6 + $0xac] ss:$16 sps:$4 sm:$0xff]  }
 0xe81   :  { %9164 = vtanh.f32 %v5456_v57  ;;  %v8772_v14 = vld [vmem:[%s12448_s6 + $0xa0] ss:$16 sps:$4 sm:$0xff]   ;;  %v8775_v12 = vld [vmem:[%s12448_s6 + $0xa8] ss:$16 sps:$4 sm:$0xff]  }
 0xe82   :  { %v8778_v55 = vld [vmem:[%s12448_s6 + $0xc0] ss:$16 sps:$4 sm:$0xff]   ;;  %v8781_v57 = vld [vmem:[%s12448_s6 + $0xc8] ss:$16 sps:$4 sm:$0xff]  }
 0xe85   :  { %v9157_v31 = vpop.eup %9156 }
 0xe86   :  { %v11935_v25 = vmul.f32 %v9157_v31, %v9155_v52  ;;  %v8780_v52 = vld [vmem:[%s12448_s6 + $0xc4] ss:$16 sps:$4 sm:$0xff]   ;;  %v8783_v31 = vld [vmem:[%s12448_s6 + $0xcc] ss:$16 sps:$4 sm:$0xff]  }
 0xe88   :  { %v9159_v29 = vpop.eup %9158  ;;  %v5488_v47 = vpack.c.bf16 %v11935_v25, %v11935_v25 }
 0xe89   :  { %v9161_v11 = vpop.eup %9160  ;;  %v5465_v9 = vadd.f32 1.0, %v9159_v29  ;;  %v8786_v29 = vld [vmem:[%s12448_s6 + $0xe4] ss:$16 sps:$4 sm:$0xff]  }
 0xe8a   :  { %v5471_v24 = vadd.f32 1.0, %v9161_v11  ;;  %5736 = vmatmul.mubr.bf16.vlgmr.msra.gmra.mrb[96].mxu0 %v5488_v47  ;;  %5777 = vmatmul.mubr.bf16.vlgmr.msra.gmra.mrb[96].mxu1 %v5488_v47  ;;  %v8789_v47 = vld [vmem:[%s12448_s6 + $0xec] ss:$16 sps:$4 sm:$0xff]   ;;  %v8784_v11 = vld [vmem:[%s12448_s6 + $0xe0] ss:$16 sps:$4 sm:$0xff]  }
 0xe8b   :  { %9166 = vrcp.f32 %v5465_v9  ;;  %6027 = vmatpush1.bf16.msra.mxu0 %v11692_v60  ;;  %6068 = vmatpush1.bf16.msra.mxu1 %v11697_v28  ;;  %v9163_v60 = vpop.eup %9162  ;;  %v8787_v9 = vld [vmem:[%s12448_s6 + $0xe8] ss:$16 sps:$4 sm:$0xff]  }
 0xe8c   :  { %9168 = vrcp.f32 %v5471_v24  ;;  %6028 = vmatprep.subr.bf16.mxu0 %v11704_v59  ;;  %6069 = vmatprep.subr.bf16.mxu1 %v11709_v42  ;;  %v9165_v28 = vpop.eup %9164  ;;  %v12611_v59 = vld [vmem:[#allocation9_spill] sm:$0xff]  ;;  %v12612_v42 = vld [vmem:[#allocation10_spill] sm:$0xff] }
 0xe8d   :  { %6058 = vmatprep.mubr.bf16.mxu0 %v12528_v49  ;;  %6099 = vmatprep.mubr.bf16.mxu1 %v12528_v49  ;;  %v8792_v24 = vld [vmem:[%s12448_s6 + $0x104] ss:$16 sps:$4 sm:$0xff]  }
 0xe8f   :  { %6029 = vmatpush1.bf16.msra.mxu0 %v11716_v27  ;;  %6070 = vmatpush1.bf16.msra.mxu1 %v11721_v41  ;;  %v5478_v27 = vadd.f32 1.0, %v9163_v60  ;;  %v8795_v60 = vld [vmem:[%s12448_s6 + $0x10c] ss:$16 sps:$4 sm:$0xff]  }
 0xe90   :  { %6030 = vmatprep.subr.bf16.mxu0 %v11728_v23  ;;  %6071 = vmatprep.subr.bf16.mxu1 %v11733_v0  ;;  %v12613_v0 = vld [vmem:[#allocation11_spill] sm:$0xff] }
 0xe91   :  { %9170 = vrcp.f32 %v5478_v27 }
 0xe93   :  { %6031 = vmatpush1.bf16.msra.mxu0 %v11742_v62  ;;  %6072 = vmatpush1.bf16.msra.mxu1 %v11747_v3  ;;  %v12614_v62 = vld [vmem:[#allocation12_spill] sm:$0xff]  ;;  %v12615_v3 = vld [vmem:[#allocation13_spill] sm:$0xff] }
 0xe94   :  { %6032 = vmatprep.subr.bf16.mxu0 %v12611_v59  ;;  %6073 = vmatprep.subr.bf16.mxu1 %v12612_v42 }
 0xe95   :  { %v9167_v30 = vpop.eup %9166 }
 0xe96   :  { %v9169_v56 = vpop.eup %9168  ;;  %v5482_v4 = vmul.f32 %v9167_v30, %v9165_v28  ;;  %v5521_v28 = vld [vmem:[%s12450_s8] sm:$0xf] }
 0xe97   :  { %v5481_v41 = vmul.f32 %v9169_v56, %v11810_v44  ;;  %6033 = vmatpush1.bf16.msra.mxu0 %v11766_v43  ;;  %6074 = vmatpush1.bf16.msra.mxu1 %v11771_v34  ;;  %v12616_v44 = vld [vmem:[#allocation15_spill] sm:$0xff]  ;;  %v12617_v43 = vld [vmem:[#allocation16_spill] sm:$0xff]  ;;  %v12618_v34 = vld [vmem:[#allocation17_spill] sm:$0xff]  ;;  %v5526_v59 = vrot.slane %v5521_v28, %v12543_v45  ;;  %v5530_v42 = vrot.slane %v5521_v28, %v12544_v21 }
 0xe98   :  { %6034 = vmatprep.subr.bf16.mxu0 %v11778_v32  ;;  %6075 = vmatprep.subr.bf16.mxu1 %v11783_v48  ;;  %v12619_v32 = vld [vmem:[#allocation18_spill] sm:$0xff]  ;;  %v12620_v48 = vld [vmem:[#allocation27_spill] sm:$0xff] }
 0xe99   :  { %v11958_v23 = vadd.f32 %v5482_v4, %v5481_v41 }
 0xe9b   :  { %9172 = vtanh.f32 %v11958_v23  ;;  %6035 = vmatpush1.bf16.msra.mxu0 %v12613_v0  ;;  %6076 = vmatpush1.bf16.msra.mxu1 %v12614_v62  ;;  %v9171_v6 = vpop.eup %9170 }
 0xe9c   :  { %6036 = vmatprep.subr.bf16.mxu0 %v12615_v3  ;;  %6077 = vmatprep.subr.bf16.mxu1 %v12616_v44 }
 0xe9f   :  { %6037 = vmatpush1.bf16.msra.mxu0 %v12617_v43  ;;  %6078 = vmatpush1.bf16.msra.mxu1 %v12618_v34 }
 0xea0   :  { %6038 = vmatprep.subr.bf16.mxu0 %v12619_v32  ;;  %6079 = vmatprep.subr.bf16.mxu1 %v12620_v48  ;;  %v5538_v48 = vrot.slane %v5521_v28, %v12545_v53 }
 0xea3   :  { %6039 = vmatpush1.bf16.msra.mxu0 %v11842_v38  ;;  %6080 = vmatpush1.bf16.msra.mxu1 %v12621_v5  ;;  %v8750_v38 = vld [vmem:[%s12448_s6 + $0x24] ss:$16 sps:$4 sm:$0xff]  }
 0xea4   :  { %6040 = vmatprep.subr.bf16.mxu0 %v11854_v37  ;;  %6081 = vmatprep.subr.bf16.mxu1 %v11859_v40  ;;  %v8744_v37 = vld [vmem:[%s12448_s6 + $0x4] ss:$16 sps:$4 sm:$0xff]   ;;  %v8747_v40 = vld [vmem:[%s12448_s6 + $0xc] ss:$16 sps:$4 sm:$0xff]  }
 0xea5   :  { %v9173_v13 = vpop.eup %9172 }
 0xea6   :  { %v11973_v19 = vmul.f32 %v9173_v13, %v9171_v6  ;;  %v5534_v6 = vrot.slane %v5521_v28, %v12546_v58  ;;  %v8790_v28 = vld [vmem:[%s12448_s6 + $0x100] ss:$16 sps:$4 sm:$0xff]  }
 0xea7   :  { %6041 = vmatpush1.bf16.msra.mxu0 %v11866_v18  ;;  %6082 = vmatpush1.bf16.msra.mxu1 %v11871_v36  ;;  %v8742_v18 = vld [vmem:[%s12448_s6] ss:$16 sps:$4 sm:$0xff]   ;;  %v8745_v36 = vld [vmem:[%s12448_s6 + $0x8] ss:$16 sps:$4 sm:$0xff]  }
 0xea8   :  { %v5811_v8 = vpack.c.bf16 %v11973_v19, %v11973_v19  ;;  %6349 = vmatprep.subr.bf16.mxu0 %v8744_v37  ;;  %6390 = vmatprep.subr.bf16.mxu1 %v8747_v40 }
 0xeaa   :  { %6059 = vmatmul.mubr.bf16.vlgmr.msra.gmra.mrb[100].mxu0 %v5811_v8  ;;  %6100 = vmatmul.mubr.bf16.vlgmr.msra.gmra.mrb[100].mxu1 %v5811_v8 }
 0xeab   :  { %6381 = vmatprep.mubr.bf16.mxu0 %v12528_v49  ;;  %6422 = vmatprep.mubr.bf16.mxu1 %v12528_v49 }
 0xeac   :  { %6350 = vmatpush1.bf16.msra.mxu0 %v8742_v18  ;;  %6391 = vmatpush1.bf16.msra.mxu1 %v8745_v36 }
 0xead   :  { %6351 = vmatprep.subr.bf16.mxu0 %v8750_v38  ;;  %6392 = vmatprep.subr.bf16.mxu1 %v8753_v20  ;;  %v8010_v20 = vld [vmem:[%s12450_s8 + $0x4] sm:$0xf] }
 0xeb0   :  { %6352 = vmatpush1.bf16.msra.mxu0 %v8748_v10  ;;  %6393 = vmatpush1.bf16.msra.mxu1 %v8751_v15 }
 0xeb1   :  { %6353 = vmatprep.subr.bf16.mxu0 %v8756_v22  ;;  %6394 = vmatprep.subr.bf16.mxu1 %v8759_v26 }
 0xeb4   :  { %6354 = vmatpush1.bf16.msra.mxu0 %v8754_v61  ;;  %6395 = vmatpush1.bf16.msra.mxu1 %v8757_v46  ;;  %v5849_v46 = vrot.slane %v8010_v20, %v12543_v45 }
 0xeb5   :  { %6355 = vmatprep.subr.bf16.mxu0 %v8762_v17  ;;  %6396 = vmatprep.subr.bf16.mxu1 %v8765_v7  ;;  %v5853_v7 = vrot.slane %v8010_v20, %v12544_v21 }
 0xeb8   :  { %6356 = vmatpush1.bf16.msra.mxu0 %v8760_v16  ;;  %6397 = vmatpush1.bf16.msra.mxu1 %v8763_v2 }
 0xeb9   :  { %6357 = vmatprep.subr.bf16.mxu0 %v8768_v35  ;;  %6398 = vmatprep.subr.bf16.mxu1 %v8771_v33 }
 0xebc   :  { %6358 = vmatpush1.bf16.msra.mxu0 %v8766_v51  ;;  %6399 = vmatpush1.bf16.msra.mxu1 %v8769_v39 }
 0xebd   :  { %6359 = vmatprep.subr.bf16.mxu0 %v8774_v63  ;;  %6400 = vmatprep.subr.bf16.mxu1 %v8777_v54 }
 0xec0   :  { %6360 = vmatpush1.bf16.msra.mxu0 %v8772_v14  ;;  %6401 = vmatpush1.bf16.msra.mxu1 %v8775_v12 }
 0xec1   :  { %6361 = vmatprep.subr.bf16.mxu0 %v8780_v52  ;;  %6402 = vmatprep.subr.bf16.mxu1 %v8783_v31 }
 0xec4   :  { %6362 = vmatpush1.bf16.msra.mxu0 %v8778_v55  ;;  %6403 = vmatpush1.bf16.msra.mxu1 %v8781_v57 }
 0xec5   :  { %6363 = vmatprep.subr.bf16.mxu0 %v8786_v29  ;;  %6404 = vmatprep.subr.bf16.mxu1 %v8789_v47  ;;  %v5857_v29 = vrot.slane %v8010_v20, %v12546_v58 }
 0xec8   :  { %6364 = vmatpush1.bf16.msra.mxu0 %v8784_v11  ;;  %6405 = vmatpush1.bf16.msra.mxu1 %v8787_v9 }
 0xec9   :  { %6672 = vmatprep.subr.bf16.mxu0 %v8792_v24  ;;  %6713 = vmatprep.subr.bf16.mxu1 %v8795_v60 }
 0xf5d   :  { %v5737_v30 = vpop.f32.mrb[96].mxu0  ;;  %v5778_v56 = vpop.f32.mrb[96].mxu1 }
 0xf5e   :  { %v5738_v4 = vadd.f32 %v5737_v30, %v5526_v59  ;;  %v5739_v27 = vpop.f32.mrb[97].mxu0  ;;  %v5780_v41 = vpop.f32.mrb[97].mxu1  ;;  %v5779_v8 = vadd.f32 %v5778_v56, %v5534_v6  ;;  %v8793_v59 = vld [vmem:[%s12448_s6 + $0x108] ss:$16 sps:$4 sm:$0xff]   ;;  %v8798_v56 = vld [vmem:[%s12448_s6 + $0x124] ss:$16 sps:$4 sm:$0xff]  }
 0xf5f   :  { %v5740_v0 = vadd.f32 %v5739_v27, %v5530_v42  ;;  %v5741_v62 = vpop.f32.mrb[98].mxu0  ;;  %v5782_v3 = vpop.f32.mrb[98].mxu1  ;;  %v5781_v5 = vadd.f32 %v5780_v41, %v5538_v48  ;;  %v8810_v48 = vld [vmem:[%s12448_s6 + $0x164] ss:$16 sps:$4 sm:$0xff]   ;;  %v8808_v6 = vld [vmem:[%s12448_s6 + $0x160] ss:$16 sps:$4 sm:$0xff]  }
 0xf60   :  { %v7975_v44 = vmul.f32 -1.442695, %v5738_v4  ;;  %v5742_v43 = vpop.f32.mrb[99].mxu0  ;;  %v5783_v34 = vpop.f32.mrb[99].mxu1  ;;  %v8801_v4 = vld [vmem:[%s12448_s6 + $0x12c] ss:$16 sps:$4 sm:$0xff]  }
 0xf61   :  { %v7976_v32 = vmul.f32 -1.442695, %v5740_v0  ;;  %v7977_v13 = vmul.f32 -1.442695, %v5781_v5  ;;  %v8796_v62 = vld [vmem:[%s12448_s6 + $0x120] ss:$16 sps:$4 sm:$0xff]  }
 0xf62   :  { %9174 = vpow2.f32 %v7975_v44  ;;  %v8799_v3 = vld [vmem:[%s12448_s6 + $0x128] ss:$16 sps:$4 sm:$0xff]   ;;  %v8804_v44 = vld [vmem:[%s12448_s6 + $0x144] ss:$16 sps:$4 sm:$0xff]   ;;  %v8807_v43 = vld [vmem:[%s12448_s6 + $0x14c] ss:$16 sps:$4 sm:$0xff]  }
 0xf63   :  { %9176 = vpow2.f32 %v7976_v32  ;;  %v8802_v34 = vld [vmem:[%s12448_s6 + $0x140] ss:$16 sps:$4 sm:$0xff]   ;;  %v8805_v32 = vld [vmem:[%s12448_s6 + $0x148] ss:$16 sps:$4 sm:$0xff]  }
 0xf64   :  { %9178 = vpow2.f32 %v7977_v13  ;;  %v8811_v13 = vld [vmem:[%s12448_s6 + $0x168] ss:$16 sps:$4 sm:$0xff]  }
 0xf65   :  { %9180 = vtanh.f32 %v5779_v8 }
 0xf6c   :  { %v9175_v37 = vpop.eup %9174 }
 0xf6d   :  { %v9177_v40 = vpop.eup %9176  ;;  %v5788_v18 = vadd.f32 1.0, %v9175_v37  ;;  %v8816_v37 = vld [vmem:[%s12448_s6 + $0x184] ss:$16 sps:$4 sm:$0xff]  }
 0xf6e   :  { %v5794_v36 = vadd.f32 1.0, %v9177_v40  ;;  %v9179_v38 = vpop.eup %9178  ;;  %v8819_v40 = vld [vmem:[%s12448_s6 + $0x18c] ss:$16 sps:$4 sm:$0xff]  }
 0xf6f   :  { %9182 = vrcp.f32 %v5788_v18  ;;  %v9181_v10 = vpop.eup %9180  ;;  %v5801_v61 = vadd.f32 1.0, %v9179_v38 }
 0xf70   :  { %9184 = vrcp.f32 %v5794_v36 }
 0xf71   :  { %9186 = vrcp.f32 %v5801_v61 }
 0xf79   :  { %v9183_v15 = vpop.eup %9182 }
 0xf7a   :  { %v9185_v22 = vpop.eup %9184  ;;  %v5805_v26 = vmul.f32 %v9183_v15, %v9181_v10  ;;  %v8814_v15 = vld [vmem:[%s12448_s6 + $0x180] ss:$16 sps:$4 sm:$0xff]  }
 0xf7b   :  { %v5804_v17 = vmul.f32 %v9185_v22, %v11930_v50  ;;  %v5861_v50 = vrot.slane %v8010_v20, %v12545_v53  ;;  %v9187_v47 = vpop.eup %9186  ;;  %v8817_v22 = vld [vmem:[%s12448_s6 + $0x188] ss:$16 sps:$4 sm:$0xff]  }
 0xf7d   :  { %v12096_v16 = vadd.f32 %v5805_v26, %v5804_v17  ;;  %v6060_v2 = vpop.f32.mrb[100].mxu0  ;;  %v6101_v35 = vpop.f32.mrb[100].mxu1  ;;  %v8822_v26 = vld [vmem:[%s12448_s6 + $0x1a4] ss:$16 sps:$4 sm:$0xff]   ;;  %v8823_v17 = vld [vmem:[%s12448_s6 + $0x1a8] ss:$16 sps:$4 sm:$0xff]  }
 0xf7e   :  { %v6061_v33 = vadd.f32 %v6060_v2, %v5849_v46  ;;  %v6062_v51 = vpop.f32.mrb[101].mxu0  ;;  %v6103_v39 = vpop.f32.mrb[101].mxu1  ;;  %v6102_v24 = vadd.f32 %v6101_v35, %v5857_v29  ;;  %v8820_v46 = vld [vmem:[%s12448_s6 + $0x1a0] ss:$16 sps:$4 sm:$0xff]   ;;  %v8831_v2 = vld [vmem:[%s12448_s6 + $0x1cc] ss:$16 sps:$4 sm:$0xff]  }
 0xf7f   :  { %9188 = vtanh.f32 %v12096_v16  ;;  %v6063_v63 = vadd.f32 %v6062_v51, %v5853_v7  ;;  %v6064_v54 = vpop.f32.mrb[102].mxu0  ;;  %v6105_v14 = vpop.f32.mrb[102].mxu1  ;;  %v6104_v57 = vadd.f32 %v6103_v39, %v5861_v50  ;;  %v8828_v7 = vld [vmem:[%s12448_s6 + $0x1c4] ss:$16 sps:$4 sm:$0xff]   ;;  %v8826_v35 = vld [vmem:[%s12448_s6 + $0x1c0] ss:$16 sps:$4 sm:$0xff]  }
 0xf80   :  { %v8043_v12 = vmul.f32 -1.442695, %v6061_v33  ;;  %v6065_v52 = vpop.f32.mrb[103].mxu0  ;;  %v6106_v31 = vpop.f32.mrb[103].mxu1  ;;  %v8829_v33 = vld [vmem:[%s12448_s6 + $0x1c8] ss:$16 sps:$4 sm:$0xff]  }
 0xf81   :  { %v8044_v55 = vmul.f32 -1.442695, %v6063_v63  ;;  %v8045_v9 = vmul.f32 -1.442695, %v6104_v57  ;;  %v8834_v51 = vld [vmem:[%s12448_s6 + $0x1e4] ss:$16 sps:$4 sm:$0xff]  }
 0xf82   :  { %9190 = vpow2.f32 %v8043_v12  ;;  %v8837_v39 = vld [vmem:[%s12448_s6 + $0x1ec] ss:$16 sps:$4 sm:$0xff]   ;;  %v8832_v63 = vld [vmem:[%s12448_s6 + $0x1e0] ss:$16 sps:$4 sm:$0xff]   ;;  %v8835_v54 = vld [vmem:[%s12448_s6 + $0x1e8] ss:$16 sps:$4 sm:$0xff]  }
 0xf83   :  { %9192 = vpow2.f32 %v8044_v55  ;;  %v8838_v12 = vld [vmem:[%s12451_s9] sm:$0xff]   ;;  %v8839_v50 = vld [vmem:[%s12451_s9 + $0x8] sm:$0xff]   ;;  %v12623_v29 = vld [vmem:[#allocation22_spill] sm:$0xff] }
 0xf84   :  { %9194 = vpow2.f32 %v8045_v9  ;;  %v12622_v57 = vld [vmem:[#allocation8_spill] sm:$0xff]  ;;  %v8841_v9 = vld [vmem:[%s12451_s9 + $0x18] sm:$0xff]  }
 0xf85   :  { %9196 = vtanh.f32 %v6102_v24  ;;  %v8842_v24 = vld [vmem:[%s12451_s9 + $0x20] sm:$0xff]  }
 0xf89   :  { %v9189_v11 = vpop.eup %9188 }
 0xf8a   :  { %v12101_v60 = vmul.f32 %v9189_v11, %v9187_v47  ;;  %v6823_v47 = vpack.c.bf16 %v12623_v29, %v12622_v57  ;;  %v8840_v11 = vld [vmem:[%s12451_s9 + $0x10] sm:$0xff]  }
 0xf8c   :  { %v9191_v42 = vpop.eup %9190  ;;  %v6134_v30 = vpack.c.bf16 %v12101_v60, %v12101_v60 }
 0xf8d   :  { %v9193_v27 = vpop.eup %9192  ;;  %v6111_v41 = vadd.f32 1.0, %v9191_v42  ;;  %v8845_v42 = vld [vmem:[%s12451_s9 + $0x38] sm:$0xff]  }
 0xf8e   :  { %v6117_v0 = vadd.f32 1.0, %v9193_v27  ;;  %6382 = vmatmul.mubr.bf16.vlgmr.msra.gmra.mrb[104].mxu0 %v6134_v30  ;;  %6423 = vmatmul.mubr.bf16.vlgmr.msra.gmra.mrb[104].mxu1 %v6134_v30  ;;  %v9195_v5 = vpop.eup %9194  ;;  %v12624_v30 = vld [vmem:[#allocation24_spill] sm:$0xff]  ;;  %v12626_v27 = vld [vmem:[#allocation26_spill] sm:$0xff] }
 0xf8f   :  { %9198 = vrcp.f32 %v6111_v41  ;;  %6673 = vmatpush1.bf16.msra.mxu0 %v8790_v28  ;;  %6714 = vmatpush1.bf16.msra.mxu1 %v8793_v59  ;;  %v9197_v8 = vpop.eup %9196  ;;  %v6124_v20 = vadd.f32 1.0, %v9195_v5  ;;  %v8843_v28 = vld [vmem:[%s12451_s9 + $0x28] sm:$0xff]   ;;  %v8844_v59 = vld [vmem:[%s12451_s9 + $0x30] sm:$0xff]   ;;  %v6825_v41 = vpack.c.bf16 %v11935_v25, %v12626_v27  ;;  %v8849_v25 = vld [vmem:[%s12451_s9 + $0x58] sm:$0xff]  }
 0xf90   :  { %9200 = vrcp.f32 %v6117_v0  ;;  %6674 = vmatprep.subr.bf16.mxu0 %v8798_v56  ;;  %6715 = vmatprep.subr.bf16.mxu1 %v8801_v4  ;;  %v12625_v56 = vld [vmem:[#allocation20_spill] sm:$0xff] }
 0xf91   :  { %6704 = vmatprep.mubr.bf16.mxu0 %v12528_v49  ;;  %6745 = vmatprep.mubr.bf16.mxu1 %v12528_v49  ;;  %v8813_v49 = vld [vmem:[%s12448_s6 + $0x16c] ss:$16 sps:$4 sm:$0xff]   ;;  %9202 = vrcp.f32 %v6124_v20  ;;  %v6824_v4 = vpack.c.bf16 %v12625_v56, %v12624_v30  ;;  %v8846_v0 = vld [vmem:[%s12451_s9 + $0x40] sm:$0xff]  }
 0xf93   :  { %6675 = vmatpush1.bf16.msra.mxu0 %v8796_v62  ;;  %6716 = vmatpush1.bf16.msra.mxu1 %v8799_v3  ;;  %v8847_v62 = vld [vmem:[%s12451_s9 + $0x48] sm:$0xff]   ;;  %v8848_v3 = vld [vmem:[%s12451_s9 + $0x50] sm:$0xff]  }
 0xf94   :  { %6676 = vmatprep.subr.bf16.mxu0 %v8804_v44  ;;  %6717 = vmatprep.subr.bf16.mxu1 %v8807_v43  ;;  %v8850_v44 = vld [vmem:[%s12451_s9 + $0x60] sm:$0xff]   ;;  %v8851_v43 = vld [vmem:[%s12451_s9 + $0x68] sm:$0xff]  }
 0xf97   :  { %6677 = vmatpush1.bf16.msra.mxu0 %v8802_v34  ;;  %6718 = vmatpush1.bf16.msra.mxu1 %v8805_v32  ;;  %v8852_v34 = vld [vmem:[%s12451_s9 + $0x70] sm:$0xff]   ;;  %v8853_v32 = vld [vmem:[%s12451_s9 + $0x78] sm:$0xff]  }
 0xf98   :  { %6678 = vmatprep.subr.bf16.mxu0 %v8810_v48  ;;  %6719 = vmatprep.subr.bf16.mxu1 %v8813_v49  ;;  %v6167_v48 = vld [vmem:[%s12450_s8] sm:$0xf] }
 0xf99   :  { %v9199_v18 = vpop.eup %9198  ;;  %v6172_v49 = vrot.slane %v6167_v48, %v12543_v45  ;;  %v6176_v5 = vrot.slane %v6167_v48, %v12544_v21 }
 0xf9a   :  { %v9201_v36 = vpop.eup %9200  ;;  %v6128_v38 = vmul.f32 %v9199_v18, %v9197_v8 }
 0xf9b   :  { %v6127_v10 = vmul.f32 %v9201_v36, %v11958_v23  ;;  %6679 = vmatpush1.bf16.msra.mxu0 %v8808_v6  ;;  %6720 = vmatpush1.bf16.msra.mxu1 %v8811_v13  ;;  %v8825_v23 = vld [vmem:[%s12448_s6 + $0x1ac] ss:$16 sps:$4 sm:$0xff]   ;;  %v9203_v14 = vpop.eup %9202 }
 0xf9c   :  { %6680 = vmatprep.subr.bf16.mxu0 %v8816_v37  ;;  %6721 = vmatprep.subr.bf16.mxu1 %v8819_v40 }
 0xf9d   :  { %v12168_v61 = vadd.f32 %v6128_v38, %v6127_v10 }
 0xf9f   :  { %9204 = vtanh.f32 %v12168_v61  ;;  %6681 = vmatpush1.bf16.msra.mxu0 %v8814_v15  ;;  %6722 = vmatpush1.bf16.msra.mxu1 %v8817_v22 }
 0xfa0   :  { %6682 = vmatprep.subr.bf16.mxu0 %v8822_v26  ;;  %6723 = vmatprep.subr.bf16.mxu1 %v8825_v23  ;;  %v6184_v26 = vrot.slane %v6167_v48, %v12545_v53 }
 0xfa3   :  { %6683 = vmatpush1.bf16.msra.mxu0 %v8820_v46  ;;  %6724 = vmatpush1.bf16.msra.mxu1 %v8823_v17  ;;  %v6180_v46 = vrot.slane %v6167_v48, %v12546_v58 }
 0xfa4   :  { %6684 = vmatprep.subr.bf16.mxu0 %v8828_v7  ;;  %6725 = vmatprep.subr.bf16.mxu1 %v8831_v2 }
 0xfa7   :  { %6685 = vmatpush1.bf16.msra.mxu0 %v8826_v35  ;;  %6726 = vmatpush1.bf16.msra.mxu1 %v8829_v33 }
 0xfa8   :  { %6686 = vmatprep.subr.bf16.mxu0 %v8834_v51  ;;  %6727 = vmatprep.subr.bf16.mxu1 %v8837_v39 }
 0xfa9   :  { %v9205_v52 = vpop.eup %9204 }
 0xfaa   :  { %v12204_v31 = vmul.f32 %v9205_v52, %v9203_v14 }
 0xfab   :  { %6687 = vmatpush1.bf16.msra.mxu0 %v8832_v63  ;;  %6728 = vmatpush1.bf16.msra.mxu1 %v8835_v54  ;;  %v8113_v63 = vld [vmem:[%s12450_s8 + $0x4] sm:$0xf] }
 0xfac   :  { %v6457_v55 = vpack.c.bf16 %v12204_v31, %v12204_v31  ;;  %8208 = vmatprep.subr.bf16.mxu0 %v8838_v12  ;;  %8232 = vmatprep.subr.bf16.mxu1 %v8846_v0  ;;  %v6499_v29 = vrot.slane %v8113_v63, %v12544_v21 }
 0xfae   :  { %6705 = vmatmul.mubr.bf16.vlgmr.msra.gmra.mrb[108].mxu0 %v6457_v55  ;;  %6746 = vmatmul.mubr.bf16.vlgmr.msra.gmra.mrb[108].mxu1 %v6457_v55 }
 0xfaf   :  { %8209 = vmatpush3.bf16.msra.mxu0 %v8838_v12  ;;  %8224 = vmatprep.mubr.bf16.mxu0 %v6823_v47 }
 0xfb0   :  { %8210 = vmatprep.subr.bf16.mxu0 %v8839_v50  ;;  %8233 = vmatpush3.bf16.msra.mxu1 %v8846_v0 }
 0xfb1   :  { %8234 = vmatprep.subr.bf16.mxu1 %v8847_v62 }
 0xfb3   :  { %8211 = vmatpush3.bf16.msra.mxu0 %v8839_v50  ;;  %v6495_v50 = vrot.slane %v8113_v63, %v12543_v45  ;;  %v6507_v45 = vrot.slane %v8113_v63, %v12545_v53  ;;  %v12627_v53 = vld [vmem:[#allocation14_spill] sm:$0xff] }
 0xfb4   :  { %8212 = vmatprep.subr.bf16.mxu0 %v8840_v11  ;;  %8235 = vmatpush3.bf16.msra.mxu1 %v8847_v62 }
 0xfb5   :  { %8236 = vmatprep.subr.bf16.mxu1 %v8848_v3 }
 0xfb7   :  { %8213 = vmatpush3.bf16.msra.mxu0 %v8840_v11 }
 0xfb8   :  { %8214 = vmatprep.subr.bf16.mxu0 %v8841_v9  ;;  %8237 = vmatpush3.bf16.msra.mxu1 %v8848_v3 }
 0xfb9   :  { %8238 = vmatprep.subr.bf16.mxu1 %v8849_v25 }
 0xfbb   :  { %8215 = vmatpush3.bf16.msra.mxu0 %v8841_v9 }
 0xfbc   :  { %8216 = vmatprep.subr.bf16.mxu0 %v8842_v24  ;;  %8239 = vmatpush3.bf16.msra.mxu1 %v8849_v25 }
 0xfbd   :  { %8240 = vmatprep.subr.bf16.mxu1 %v8850_v44 }
 0xfbf   :  { %8217 = vmatpush3.bf16.msra.mxu0 %v8842_v24 }
 0xfc0   :  { %8218 = vmatprep.subr.bf16.mxu0 %v8843_v28  ;;  %8241 = vmatpush3.bf16.msra.mxu1 %v8850_v44 }
 0xfc1   :  { %8242 = vmatprep.subr.bf16.mxu1 %v8851_v43 }
 0xfc3   :  { %8219 = vmatpush3.bf16.msra.mxu0 %v8843_v28 }
 0xfc4   :  { %8220 = vmatprep.subr.bf16.mxu0 %v8844_v59  ;;  %8243 = vmatpush3.bf16.msra.mxu1 %v8851_v43 }
 0xfc5   :  { %8244 = vmatprep.subr.bf16.mxu1 %v8852_v34 }
 0xfc7   :  { %8221 = vmatpush3.bf16.msra.mxu0 %v8844_v59 }
 0xfc8   :  { %8222 = vmatprep.subr.bf16.mxu0 %v8845_v42  ;;  %8245 = vmatpush3.bf16.msra.mxu1 %v8852_v34 }
 0xfc9   :  { %8246 = vmatprep.subr.bf16.mxu1 %v8853_v32 }
 0xfcb   :  { %8223 = vmatpush3.bf16.msra.mxu0 %v8845_v42 }
 0xfcc   :  { %8247 = vmatpush3.bf16.msra.mxu1 %v8853_v32 }
 0xfce   :  { %8225 = vmatmul.mubr.bf16.vlgmr.msra.gmra.mrb[112].mxu0 %v6824_v4 }
 0xfcf   :  { %8228 = vmatprep.mubr.bf16.mxu0 %v6825_v41 }
0x1061   :  { %v6383_v6 = vpop.f32.mrb[104].mxu0  ;;  %v6424_v13 = vpop.f32.mrb[104].mxu1 }
0x1062   :  { %v6384_v8 = vadd.f32 %v6383_v6, %v6172_v49  ;;  %v6385_v37 = vpop.f32.mrb[105].mxu0  ;;  %v6426_v40 = vpop.f32.mrb[105].mxu1  ;;  %v6425_v7 = vadd.f32 %v6424_v13, %v6180_v46  ;;  %v6782_v6 = vadd.s32 16, %v12627_v53 }
0x1063   :  { %v6386_v18 = vadd.f32 %v6385_v37, %v6176_v5  ;;  %v6387_v36 = vpop.f32.mrb[106].mxu0  ;;  %v6428_v38 = vpop.f32.mrb[106].mxu1  ;;  %v6427_v23 = vadd.f32 %v6426_v40, %v6184_v26  ;;  %v12628_v40 = vlaneseq  ;;  %v12286_v26 = vld [vmem:[%s12452_s10] ss:$0 sm:$0xff] }
0x1064   :  { %v8078_v20 = vmul.f32 -1.442695, %v6384_v8  ;;  %v6388_v10 = vpop.f32.mrb[107].mxu0  ;;  %v6429_v15 = vpop.f32.mrb[107].mxu1  ;;  %v6783_v36 = vadd.s32 24, %v12627_v53 }
0x1065   :  { %v8079_v22 = vmul.f32 -1.442695, %v6386_v18  ;;  %v8080_v17 = vmul.f32 -1.442695, %v6427_v23  ;;  %v12278_v18 = vand.u32 127, %v12628_v40  ;;  %v6790_v15 = vand.u32 7, %v6782_v6 }
0x1066   :  { %9206 = vpow2.f32 %v8078_v20  ;;  %v6784_v6 = vadd.s32 32, %v12627_v53 }
0x1067   :  { %9208 = vpow2.f32 %v8079_v22  ;;  %vm6806_vm0 = vcmp.lt.s32.totalorder %v12278_v18, 16  ;;  %vm6800_vm2 = vcmp.lt.s32.totalorder %v6790_v15, 2 }
0x1068   :  { %9210 = vpow2.f32 %v8080_v17  ;;  %v6791_v17 = vand.u32 7, %v6783_v36  ;;  %vm12312_vm5 = vmand %vm6800_vm2, %vm6806_vm0  ;;  %v6969_v36 = vld [vmem:[%s12443_s1 + $0x30] sm:$0xff] }
0x1069   :  { %9212 = vtanh.f32 %v6425_v7 }
0x106a   :  { %vm6801_vm6 = vcmp.lt.s32.totalorder %v6791_v17, 2  ;;  %v6968_v17 = vld [vmem:[%s12443_s1 + $0x28] sm:$0xff] }
0x106b   :  { %vm12327_vm8 = vmand %vm6801_vm6, %vm6806_vm0 }
0x1070   :  { %v9207_v2 = vpop.eup %9206 }
0x1071   :  { %v9209_v35 = vpop.eup %9208  ;;  %v6434_v33 = vadd.f32 1.0, %v9207_v2 }
0x1072   :  { %v6440_v51 = vadd.f32 1.0, %v9209_v35  ;;  %v9211_v39 = vpop.eup %9210 }
0x1073   :  { %9214 = vrcp.f32 %v6434_v33  ;;  %v9213_v54 = vpop.eup %9212  ;;  %v6447_v55 = vadd.f32 1.0, %v9211_v39  ;;  %v6963_v33 = vld [vmem:[%s12443_s1] sm:$0xff] }
0x1074   :  { %9216 = vrcp.f32 %v6440_v51 }
0x1075   :  { %9218 = vrcp.f32 %v6447_v55 }
0x107d   :  { %v9215_v14 = vpop.eup %9214 }
0x107e   :  { %v9217_v12 = vpop.eup %9216  ;;  %v6451_v52 = vmul.f32 %v9215_v14, %v9213_v54  ;;  %v6966_v14 = vld [vmem:[%s12443_s1 + $0x18] sm:$0xff] }
0x107f   :  { %v6450_v57 = vmul.f32 %v9217_v12, %v12096_v16  ;;  %v6503_v16 = vrot.slane %v8113_v63, %v12546_v58  ;;  %v9219_v62 = vpop.eup %9218  ;;  %v6781_v58 = vadd.s32 8, %v12627_v53  ;;  %v7141_v63 = vld [vmem:[%s12442_s0 + $0x20] sm:$0xff] }
0x1081   :  { %v6706_v47 = vpop.f32.mrb[108].mxu0  ;;  %v6747_v11 = vpop.f32.mrb[108].mxu1  ;;  %v6452_v9 = vadd.f32 %v6451_v52, %v6450_v57  ;;  %v6789_v23 = vand.u32 7, %v6781_v58  ;;  %v6964_v52 = vld [vmem:[%s12443_s1 + $0x8] sm:$0xff]  ;;  %v6792_v58 = vand.u32 7, %v6784_v6 }
0x1082   :  { %v6707_v24 = vadd.f32 %v6706_v47, %v6495_v50  ;;  %v6708_v28 = vpop.f32.mrb[109].mxu0  ;;  %v6749_v59 = vpop.f32.mrb[109].mxu1  ;;  %v6748_v44 = vadd.f32 %v6747_v11, %v6503_v16 }
0x1083   :  { %v6709_v42 = vadd.f32 %v6708_v28, %v6499_v29  ;;  %v6710_v30 = vpop.f32.mrb[110].mxu0  ;;  %v6751_v56 = vpop.f32.mrb[110].mxu1  ;;  %9220 = vtanh.f32 %v6452_v9  ;;  %v6750_v21 = vadd.f32 %v6749_v59, %v6507_v45  ;;  %vm6799_vm3 = vcmp.lt.s32.totalorder %v6789_v23, 2  ;;  %v6970_v23 = vld [vmem:[%s12443_s1 + $0x38] sm:$0xff] }
0x1084   :  { %v8146_v4 = vmul.f32 -1.442695, %v6707_v24  ;;  %v6711_v27 = vpop.f32.mrb[111].mxu0  ;;  %v6752_v41 = vpop.f32.mrb[111].mxu1  ;;  %vm12319_vm7 = vmand %vm6799_vm3, %vm6806_vm0  ;;  %vm6802_vm9 = vcmp.lt.s32.totalorder %v6792_v58, 2 }
0x1085   :  { %v8147_v0 = vmul.f32 -1.442695, %v6709_v42  ;;  %v8148_v25 = vmul.f32 -1.442695, %v6750_v21  ;;  %vm12358_vm12 = vmand %vm6802_vm9, %vm6806_vm0 }
0x1086   :  { %9222 = vpow2.f32 %v8146_v4 }
0x1087   :  { %9224 = vpow2.f32 %v8147_v0 }
0x1088   :  { %9226 = vpow2.f32 %v8148_v25 }
0x1089   :  { %9228 = vtanh.f32 %v6748_v44  ;;  %v6996_v44 = vpack.c.bf16 %v11875_v1, %v11973_v19 }
0x108d   :  { %v9221_v3 = vpop.eup %9220 }
0x108e   :  { %v6454_v43 = vmul.f32 %v9221_v3, %v9219_v62 }
0x1090   :  { %v9223_v34 = vpop.eup %9222  ;;  %v6826_v32 = vpack.c.bf16 %v6454_v43, %v12101_v60  ;;  %v6788_v60 = vand.u32 7, %v12627_v53  ;;  %v12637_v43 = vld [vmem:[#allocation25_spill] sm:$0xff] }
0x1091   :  { %v9225_v48 = vpop.eup %9224  ;;  %v6757_v49 = vadd.f32 1.0, %v9223_v34  ;;  %v12638_v34 = vld [vmem:[#allocation19_spill] sm:$0xff] }
0x1092   :  { %v6763_v5 = vadd.f32 1.0, %v9225_v48  ;;  %8229 = vmatmul.mubr.bf16.gmra.mrb[116].mxu0 %v6826_v32  ;;  %v9227_v13 = vpop.eup %9226  ;;  %vm6798_vm1 = vcmp.lt.s32.totalorder %v6788_v60, 2  ;;  %v6997_v32 = vpack.c.bf16 %v12638_v34, %v12637_v43  ;;  %v12639_v48 = vld [vmem:[#allocation23_spill] sm:$0xff] }
0x1093   :  { %9230 = vrcp.f32 %v6757_v49  ;;  %v9229_v8 = vpop.eup %9228  ;;  %v6770_v10 = vadd.f32 1.0, %v9227_v13  ;;  %vm12299_vm4 = vmand %vm6798_vm1, %vm6806_vm0  ;;  %v12640_v49 = vld [vmem:[#allocation21_spill] sm:$0xff]  ;;  %v6786_v13 = vadd.s32 48, %v12627_v53 }
0x1094   :  { %9232 = vrcp.f32 %v6763_v5  ;;  %v6998_v5 = vpack.c.bf16 %v12640_v49, %v12639_v48 }
0x1095   :  { %9234 = vrcp.f32 %v6770_v10  ;;  %v6794_v1 = vand.u32 7, %v6786_v13 }
0x1097   :  { %vm6804_vm10 = vcmp.lt.s32.totalorder %v6794_v1, 2 }
0x1098   :  { %vm12371_vm13 = vmand %vm6804_vm10, %vm6806_vm0 }
0x109d   :  { %v9231_v37 = vpop.eup %9230 }
0x109e   :  { %v9233_v38 = vpop.eup %9232  ;;  %v6774_v20 = vmul.f32 %v9231_v37, %v9229_v8  ;;  %v6787_v8 = vadd.s32 56, %v12627_v53 }
0x109f   :  { %v6773_v22 = vmul.f32 %v9233_v38, %v12168_v61  ;;  %v6965_v61 = vld [vmem:[%s12443_s1 + $0x10] sm:$0xff]  ;;  %v9235_v27 = vpop.eup %9234 }
0x10a0   :  { %v6795_v40 = vand.u32 7, %v6787_v8  ;;  %v7143_v8 = vld [vmem:[%s12442_s0 + $0x30] sm:$0xff] }
0x10a1   :  { %v8226_v46 = vpop.f32.mrb[112].mxu0  ;;  %v6775_v7 = vadd.f32 %v6774_v20, %v6773_v22  ;;  %v6967_v20 = vld [vmem:[%s12443_s1 + $0x20] sm:$0xff] }
0x10a2   :  { %v6941_v2 = vadd.f32 %v8226_v46, %v12286_v26  ;;  %v6932_v35 = vpop.f32.mrb[113].mxu0  ;;  %vm6805_vm14 = vcmp.lt.s32.totalorder %v6795_v40, 2 }
0x10a3   :  { %v6933_v51 = vadd.f32 %v12286_v26, %v6932_v35  ;;  %v8227_v39 = vpop.f32.mrb[114].mxu0  ;;  %9236 = vtanh.f32 %v6775_v7  ;;  %vm12386_vm1 = vmand %vm6805_vm14, %vm6806_vm0 }
0x10a4   :  { %v6944_v54 = vadd.f32 %v8227_v39, %v12286_v26  ;;  %v6935_v12 = vpop.f32.mrb[115].mxu0  ;;  %v6973_v50 = vsub.f32 %v6941_v2, %v6965_v61 }
0x10a5   :  { %v6971_v57 = vsub.f32 %v6933_v51, %v6963_v33  ;;  %v6936_v29 = vadd.f32 %v12286_v26, %v6935_v12 }
0x10a6   :  { %v6974_v9 = vsub.f32 %v6944_v54, %v6966_v14  ;;  %v6981_v59 = vsel %vm12312_vm5, %v6973_v50, 0.0 }
0x10a7   :  { %v6979_v11 = vsel %vm12299_vm4, %v6971_v57, 0.0  ;;  %v6972_v24 = vsub.f32 %v6936_v29, %v6964_v52  ;;  %v7190_v41 = vmul.f32 %v6981_v59, %v6981_v59 }
0x10a8   :  { %v7188_v30 = vmul.f32 %v6979_v11, %v6979_v11  ;;  %v6982_v4 = vsel %vm12327_vm8, %v6974_v9, 0.0 }
0x10a9   :  { %v6980_v42 = vsel %vm12319_vm7, %v6972_v24, 0.0  ;;  %v7191_v21 = vmul.f32 %v6982_v4, %v6982_v4  ;;  %v7139_v4 = vld [vmem:[%s12442_s0 + $0x10] sm:$0xff] }
0x10aa   :  { %v7189_v56 = vmul.f32 %v6980_v42, %v6980_v42  ;;  %v8175_v42 = vld [vmem:[%s12452_s10 + $0x1] ss:$0 sm:$0xff] }
0x10ac   :  { %v7196_v0 = vadd.f32 %v7189_v56, %v7188_v30 }
0x10ad   :  { %v9237_v45 = vpop.eup %9236 }
0x10ae   :  { %v7197_v16 = vadd.f32 %v7196_v0, %v7190_v41  ;;  %v6777_v62 = vmul.f32 %v9237_v45, %v9235_v27  ;;  %v7137_v41 = vld [vmem:[%s12442_s0] sm:$0xff] }
0x10b0   :  { %v6995_v3 = vpack.c.bf16 %v12204_v31, %v6777_v62  ;;  %v7198_v25 = vadd.f32 %v7197_v16, %v7191_v21  ;;  %v6785_v31 = vadd.s32 40, %v12627_v53  ;;  %v7140_v16 = vld [vmem:[%s12442_s0 + $0x18] sm:$0xff] }
0x10b2   :  { %8248 = vmatprep.mubr.bf16.mxu1 %v6995_v3  ;;  %v6793_v19 = vand.u32 7, %v6785_v31  ;;  %v7138_v3 = vld [vmem:[%s12442_s0 + $0x8] sm:$0xff] }
0x10b3   :  { %8249 = vmatmul.mubr.bf16.vlgmr.msra.gmra.mrb[112].mxu1 %v6996_v44 }
0x10b4   :  { %8252 = vmatprep.mubr.bf16.mxu1 %v6997_v32  ;;  %vm6803_vm11 = vcmp.lt.s32.totalorder %v6793_v19, 2 }
0x10b5   :  { %vm12378_vm15 = vmand %vm6803_vm11, %vm6806_vm0 }
0x10bb   :  { %8253 = vmatmul.mubr.bf16.gmra.mrb[116].mxu1 %v6998_v5 }
0x1165   :  { %v8230_v37 = vpop.f32.mrb[116].mxu0 }
0x1166   :  { %v6957_v60 = vadd.f32 %v8230_v37, %v12286_v26  ;;  %v6948_v38 = vpop.f32.mrb[117].mxu0 }
0x1167   :  { %v6949_v10 = vadd.f32 %v12286_v26, %v6948_v38  ;;  %v8231_v53 = vpop.f32.mrb[118].mxu0 }
0x1168   :  { %v6960_v22 = vadd.f32 %v8231_v53, %v12286_v26  ;;  %v6951_v46 = vpop.f32.mrb[119].mxu0  ;;  %v6977_v2 = vsub.f32 %v6957_v60, %v6969_v36  ;;  %v7144_v36 = vld [vmem:[%s12442_s0 + $0x38] sm:$0xff] }
0x1169   :  { %v6975_v61 = vsub.f32 %v6949_v10, %v6967_v20  ;;  %v6952_v35 = vadd.f32 %v12286_v26, %v6951_v46  ;;  %v7142_v20 = vld [vmem:[%s12442_s0 + $0x28] sm:$0xff] }
0x116a   :  { %v6978_v39 = vsub.f32 %v6960_v22, %v6970_v23  ;;  %v6985_v26 = vsel %vm12371_vm13, %v6977_v2, 0.0 }
0x116b   :  { %v6983_v51 = vsel %vm12358_vm12, %v6975_v61, 0.0  ;;  %v6976_v54 = vsub.f32 %v6952_v35, %v6968_v17  ;;  %v7194_v11 = vmul.f32 %v6985_v26, %v6985_v26 }
0x116c   :  { %v7192_v14 = vmul.f32 %v6983_v51, %v6983_v51  ;;  %v6986_v29 = vsel %vm12386_vm1, %v6978_v39, 0.0 }
0x116d   :  { %v6984_v52 = vsel %vm12378_vm15, %v6976_v54, 0.0  ;;  %v7195_v24 = vmul.f32 %v6986_v29, %v6986_v29 }
0x116e   :  { %v7199_v50 = vadd.f32 %v7198_v25, %v7192_v14  ;;  %v7193_v57 = vmul.f32 %v6984_v52, %v6984_v52 }
0x1170   :  { %v7200_v9 = vadd.f32 %v7199_v50, %v7193_v57 }
0x1172   :  { %v7201_v59 = vadd.f32 %v7200_v9, %v7194_v11 }
0x1174   :  { %v7202_v18 = vadd.f32 %v7201_v59, %v7195_v24 }
0x1186   :  { %v8250_v30 = vpop.f32.mrb[112].mxu1 }
0x1187   :  { %v7115_v56 = vadd.f32 %v8250_v30, %v8175_v42  ;;  %v7106_v27 = vpop.f32.mrb[113].mxu1 }
0x1188   :  { %v7107_v0 = vadd.f32 %v8175_v42, %v7106_v27  ;;  %v8251_v45 = vpop.f32.mrb[114].mxu1 }
0x1189   :  { %v7118_v21 = vadd.f32 %v8251_v45, %v8175_v42  ;;  %v7109_v62 = vpop.f32.mrb[115].mxu1  ;;  %v7147_v25 = vsub.f32 %v7115_v56, %v7139_v4 }
0x118a   :  { %v7145_v44 = vsub.f32 %v7107_v0, %v7137_v41  ;;  %v7110_v43 = vadd.f32 %v8175_v42, %v7109_v62 }
0x118b   :  { %v7148_v32 = vsub.f32 %v7118_v21, %v7140_v16  ;;  %v7155_v49 = vsel %vm12312_vm5, %v7147_v25, 0.0 }
0x118c   :  { %v7153_v34 = vsel %vm12299_vm4, %v7145_v44, 0.0  ;;  %v7146_v48 = vsub.f32 %v7110_v43, %v7138_v3  ;;  %v7163_v47 = vmul.f32 %v7155_v49, %v7155_v49 }
0x118d   :  { %v7161_v13 = vmul.f32 %v7153_v34, %v7153_v34  ;;  %v7156_v55 = vsel %vm12327_vm8, %v7148_v32, 0.0 }
0x118e   :  { %v7154_v5 = vsel %vm12319_vm7, %v7146_v48, 0.0  ;;  %v8254_v6 = vpop.f32.mrb[116].mxu1  ;;  %v7164_v23 = vmul.f32 %v7156_v55, %v7156_v55 }
0x118f   :  { %v7162_v31 = vmul.f32 %v7154_v5, %v7154_v5  ;;  %v7131_v58 = vadd.f32 %v8254_v6, %v8175_v42  ;;  %v7122_v1 = vpop.f32.mrb[117].mxu1 }
0x1190   :  { %v7123_v19 = vadd.f32 %v8175_v42, %v7122_v1  ;;  %v8255_v37 = vpop.f32.mrb[118].mxu1 }
0x1191   :  { %v7169_v40 = vadd.f32 %v7162_v31, %v7161_v13  ;;  %v7134_v60 = vadd.f32 %v8255_v37, %v8175_v42  ;;  %v7125_v38 = vpop.f32.mrb[119].mxu1  ;;  %v7151_v10 = vsub.f32 %v7131_v58, %v7143_v8 }
0x1192   :  { %v7149_v53 = vsub.f32 %v7123_v19, %v7141_v63  ;;  %v7126_v22 = vadd.f32 %v8175_v42, %v7125_v38 }
0x1193   :  { %v7170_v28 = vadd.f32 %v7169_v40, %v7163_v47  ;;  %v7152_v17 = vsub.f32 %v7134_v60, %v7144_v36  ;;  %v7159_v39 = vsel %vm12371_vm13, %v7151_v10, 0.0 }
0x1194   :  { %v7157_v46 = vsel %vm12358_vm12, %v7149_v53, 0.0  ;;  %v7150_v2 = vsub.f32 %v7126_v22, %v7142_v20  ;;  %v7167_v52 = vmul.f32 %v7159_v39, %v7159_v39 }
0x1195   :  { %v7165_v61 = vmul.f32 %v7157_v46, %v7157_v46  ;;  %v7171_v35 = vadd.f32 %v7170_v28, %v7164_v23  ;;  %v7160_v26 = vsel %vm12386_vm1, %v7152_v17, 0.0 }
0x1196   :  { %v7158_v51 = vsel %vm12378_vm15, %v7150_v2, 0.0  ;;  %v7168_v57 = vmul.f32 %v7160_v26, %v7160_v26 }
0x1197   :  { %v7166_v54 = vmul.f32 %v7158_v51, %v7158_v51  ;;  %v7172_v14 = vadd.f32 %v7171_v35, %v7165_v61 }
0x1199   :  { %v7173_v50 = vadd.f32 %v7172_v14, %v7166_v54 }
0x119b   :  { %v7174_v15 = vadd.f32 %v7173_v50, %v7167_v52 }
0x119d   :  { %v7175_v29 = vadd.f32 %v7174_v15, %v7168_v57 }
0x119f   :  { %7176 = vadd.xlane.f32.xlu0 %v7175_v29 }
0x11a3   :  { %7203 = vadd.xlane.f32.xlu0 %v7202_v18 }
0x122c   :  { %v7177_v11 = vpop.xlane.xlu0 %7176 }
0x122d   :  { %v7178_v9 = vrot.slane %v7177_v11, 4 }
0x122f   :  { %v7179_v24 = vadd.f32 %v7178_v9, %v7177_v11 }
0x1230   :  { %v7204_v33 = vpop.xlane.xlu0 %7203 }
0x1231   :  { %v7180_v59 = vrot.slane %v7179_v24, 2  ;;  %v7205_v42 = vrot.slane %v7204_v33, 4 }
0x1233   :  { %v7206_v7 = vadd.f32 %v7205_v42, %v7204_v33  ;;  %v7181_v30 = vadd.f32 %v7180_v59, %v7179_v24 }
0x1235   :  { %v7207_v56 = vrot.slane %v7206_v7, 2  ;;  %v7182_v4 = vrot.slane %v7181_v30, 1 }
0x1237   :  { %v7208_v27 = vadd.f32 %v7207_v56, %v7206_v7  ;;  %v7183_v12 = vadd.f32 %v7182_v4, %v7181_v30 }
0x1239   :  { %8256 = vpush %v7183_v12  ;;  %v7209_v41 = vrot.slane %v7208_v27, 1 }
0x123b   :  { %v7210_v0 = vadd.f32 %v7209_v41, %v7208_v27 }
0x123d   :  { %8258 = vpush %v7210_v0 }
0x126a   :  { %s8257_s0 = spop %8256 }
0x126b   :  { %s7185_s3 = smul.f32 0.00390625, %s8257_s0 }
0x126d   :  { %7187 = sst [smem:[#allocation5]] %s7185_s3 }
0x126e   :  { %s8259_s29 = spop %8258 }
0x126f   :  { %s7212_s30 = smul.f32 0.00390625, %s8259_s29 }
0x1271   :  { %7214 = sst [smem:[#allocation5 + $0x1]] %s7212_s30 }
0x1272   :  { %9281 = shalt.err (!%p9278_p4)
}
0x1273   :  { %s9285_s2 = smov [#allocation5]  }
0x1274   :  { %7224 = dma.smem_to_vmem %s9285_s2, 16, %s7222_s28, [#allocation6]  }
0x1275   :  { %9282 = dma.done.wait [#allocation6], 16  }
0x1276   :  { %9283 = vsyncadd [#allocation6], 4294967280 }
0x1277   :  { %7228 = sfence }
0x1278   :  { %7229 = vsyncpa [#allocation6], 1 }

</bundles_post_ra>
